<compile_context>
chip_gen: v5e
topology: v5e:2x2
jax: 0.10.0
libtpu: 0.0.40
codegen_flags: <defaults>
</compile_context>

<pallas_src>
import functools
import math

import jax
import jax.numpy as jnp
from jax.experimental import pallas as pl
from jax.experimental.pallas import tpu as pltpu

jax.config.update("jax_default_matmul_precision", "highest")

# ----------------------------- small BERT config ------------------------------
VOCAB_SIZE = 30
MAX_POSITIONS = 64
TYPE_VOCAB_SIZE = 2
COMB_ROWS = VOCAB_SIZE + MAX_POSITIONS + TYPE_VOCAB_SIZE        # 96 <= 128 lanes
INITIAL_VOCAB = 23 + 5                                          # SpeechModel.initialEmbeddings
HIDDEN = 32
NUM_HEADS = 2
HEAD_DIM = HIDDEN // NUM_HEADS
INTERMEDIATE = 64
NUM_LAYERS = 2
LN_EPS = 1e-12


# ---------------------------------- kernel ------------------------------------
def _speech_model_kernel(word_ids_ref, pos_ids_ref, type_ids_ref, init_ids_ref,
                         attn_bias_ref,
                         comb_tab_ref, init_tab_ref, emb_g_ref, emb_b_ref,
                         wq_ref, bq_ref, wk_ref, bk_ref, wv_ref, bv_ref,
                         wo_ref, bo_ref, ln1_g_ref, ln1_b_ref,
                         wi_ref, bi_ref, wo2_ref, bo2_ref, ln2_g_ref, ln2_b_ref,
                         out_ref, *, num_heads, head_dim, num_layers):
    """Whole SpeechModel forward on [N = B*S, H] token rows, weights resident."""
    n, hidden = out_ref.shape

    def layernorm(v, g, b):
        mu = jnp.mean(v, axis=-1, keepdims=True)
        var = jnp.mean(jnp.square(v - mu), axis=-1, keepdims=True)
        return (v - mu) * jax.lax.rsqrt(var + LN_EPS) * g + b

    # ---- embeddings: word + position + token-type via ONE "three-hot" matmul ----
    comb_rows = comb_tab_ref.shape[0]
    iota_c = jax.lax.broadcasted_iota(jnp.int32, (n, comb_rows), 1)
    three_hot = ((iota_c == word_ids_ref[...]) |
                 (iota_c == pos_ids_ref[...]) |
                 (iota_c == type_ids_ref[...])).astype(jnp.float32)        # [N, 96]
    x = jnp.dot(three_hot, comb_tab_ref[...], preferred_element_type=jnp.float32)
    x = layernorm(x, emb_g_ref[...], emb_b_ref[...])

    # SpeechModel: initialEmbeddings(initial_ids) added AFTER the embedding LN
    # (dropout is identity at inference).
    init_rows = init_tab_ref.shape[0]
    iota_i = jax.lax.broadcasted_iota(jnp.int32, (n, init_rows), 1)
    init_hot = (iota_i == init_ids_ref[...]).astype(jnp.float32)           # [N, 28]
    x = x + jnp.dot(init_hot, init_tab_ref[...], preferred_element_type=jnp.float32)

    attn_bias = attn_bias_ref[...]            # [N, N]: 0 within a batch row, -1e30 across
    scale = 1.0 / math.sqrt(head_dim)

    for l in range(num_layers):               # static unroll (2 layers)
        attn = jnp.zeros((n, hidden), jnp.float32)
        for h in range(num_heads):            # static unroll (2 heads), leading-axis weight index
            qh = jnp.dot(x, wq_ref[l, h], preferred_element_type=jnp.float32) + bq_ref[l, h]
            kh = jnp.dot(x, wk_ref[l, h], preferred_element_type=jnp.float32) + bk_ref[l, h]
            vh = jnp.dot(x, wv_ref[l, h], preferred_element_type=jnp.float32) + bv_ref[l, h]
            # scores = qh @ kh^T over ALL B*S rows, batch isolation via block-diag bias.
            s = jax.lax.dot_general(qh, kh, (((1,), (1,)), ((), ())),
                                    preferred_element_type=jnp.float32)
            s = s * scale + attn_bias
            s = s - jnp.max(s, axis=-1, keepdims=True)
            p = jnp.exp(s)
            p = p * pl.reciprocal(jnp.sum(p, axis=-1, keepdims=True), approx=True)
            ctx = jnp.dot(p, vh, preferred_element_type=jnp.float32)       # [N, dH]
            # Per-head output projection accumulate (no lane-concat / lane-slice).
            attn = attn + jnp.dot(ctx, wo_ref[l, h], preferred_element_type=jnp.float32)
        attn = attn + bo_ref[l]

        h1 = layernorm(x + attn, ln1_g_ref[l], ln1_b_ref[l])

        ffn = jnp.dot(h1, wi_ref[l], preferred_element_type=jnp.float32) + bi_ref[l]
        # TODO(synk): original BERT uses exact erf-GELU; tanh approximation used here.
        ffn = jax.nn.gelu(ffn, approximate=True)
        ffn_out = jnp.dot(ffn, wo2_ref[l], preferred_element_type=jnp.float32) + bo2_ref[l]
        x = layernorm(h1 + ffn_out, ln2_g_ref[l], ln2_b_ref[l])

    out_ref[...] = x


# --------------------------------- wrappers ------------------------------------
def _full_spec(arr):
    """Whole-array VMEM block (everything resident; single grid step)."""
    zeros = (0,) * arr.ndim
    return pl.BlockSpec(arr.shape, lambda *_: zeros)


def pack_params(params):
    """Re-layout raw params for the fused kernel (concat tables, stack layers,
    pre-split heads on a leading axis)."""
    layers = params["layers"]

    def stack(name):
        return jnp.stack([lw[name] for lw in layers])

    def split_w_in(name):   # [H, H] -> [L, NH, H, dH]
        return jnp.stack([lw[name].reshape(HIDDEN, NUM_HEADS, HEAD_DIM)
                          .transpose(1, 0, 2) for lw in layers])

    def split_b(name):      # [1, H] -> [L, NH, 1, dH]
        return jnp.stack([lw[name].reshape(1, NUM_HEADS, HEAD_DIM)
                          .transpose(1, 0, 2) for lw in layers])

    return {
        "comb_tab": jnp.concatenate(
            [params["word_emb"], params["pos_emb"], params["type_emb"]], axis=0),
        "init_tab": params["init_emb"],
        "emb_g": params["emb_ln_g"], "emb_b": params["emb_ln_b"],
        "wq": split_w_in("wq"), "bq": split_b("bq"),
        "wk": split_w_in("wk"), "bk": split_b("bk"),
        "wv": split_w_in("wv"), "bv": split_b("bv"),
        "wo": jnp.stack([lw["wo"].reshape(NUM_HEADS, HEAD_DIM, HIDDEN)
                         for lw in layers]),                    # [L, NH, dH, H]
        "bo": stack("bo"),
        "ln1_g": stack("ln1_g"), "ln1_b": stack("ln1_b"),
        "wi": stack("wi"), "bi": stack("bi"),
        "wo2": stack("wo2"), "bo2": stack("bo2"),
        "ln2_g": stack("ln2_g"), "ln2_b": stack("ln2_b"),
    }


def speech_forward(packed, input_ids, token_type_ids, initial_ids):
    B, S = input_ids.shape
    N = B * S

    def col(ids, off=0):
        return ids.astype(jnp.int32).reshape(N, 1) + off

    position_ids = jnp.broadcast_to(jnp.arange(S, dtype=jnp.int32), (B, S))
    # Block-diagonal additive bias: tokens only attend within their own batch row.
    seg = jnp.repeat(jnp.arange(B, dtype=jnp.int32), S)
    attn_bias = jnp.where(seg[:, None] == seg[None, :], 0.0, -1e30).astype(jnp.float32)

    args = [
        col(input_ids),
        col(position_ids, VOCAB_SIZE),
        col(token_type_ids, VOCAB_SIZE + MAX_POSITIONS),
        col(initial_ids),
        attn_bias,
        packed["comb_tab"], packed["init_tab"], packed["emb_g"], packed["emb_b"],
        packed["wq"], packed["bq"], packed["wk"], packed["bk"],
        packed["wv"], packed["bv"], packed["wo"], packed["bo"],
        packed["ln1_g"], packed["ln1_b"], packed["wi"], packed["bi"],
        packed["wo2"], packed["bo2"], packed["ln2_g"], packed["ln2_b"],
    ]

    kernel = functools.partial(_speech_model_kernel,
                               num_heads=NUM_HEADS, head_dim=HEAD_DIM,
                               num_layers=NUM_LAYERS)

    out = pl.pallas_call(
        kernel,
        out_shape=jax.ShapeDtypeStruct((N, HIDDEN), jnp.float32),
        grid=(1,),
        in_specs=[_full_spec(a) for a in args],
        out_specs=pl.BlockSpec((N, HIDDEN), lambda *_: (0, 0)),
        compiler_params=pltpu.CompilerParams(
            dimension_semantics=("arbitrary",)),
    )(*args)
    return out.reshape(B, S, HIDDEN)


speech_forward_jit = jax.jit(speech_forward)


class SpeechModel:
    """Pallas-TPU forward of the PyTorch SpeechModel (inference)."""

    def __init__(self, params):
        self.params = params
        self.packed = pack_params(params)

    def __call__(self, input_ids, token_type_ids=None, attention_mask=None,
                 initial_ids=None, final_ids=None, tune_ids=None, **kwargs):
        del attention_mask, final_ids, tune_ids, kwargs   # unused by reference forward
        if token_type_ids is None:
            token_type_ids = jnp.zeros_like(input_ids)
        return speech_forward_jit(self.packed, input_ids, token_type_ids, initial_ids)


# ------------------------------- parameters ------------------------------------
def init_params(key):
    def nrm(k, shape, scale=0.02):
        return scale * jax.random.normal(k, shape, dtype=jnp.float32)

    keys = iter(jax.random.split(key, 64))
    params = {
        "word_emb": nrm(next(keys), (VOCAB_SIZE, HIDDEN)),
        "pos_emb": nrm(next(keys), (MAX_POSITIONS, HIDDEN)),
        "type_emb": nrm(next(keys), (TYPE_VOCAB_SIZE, HIDDEN)),
        "init_emb": nrm(next(keys), (INITIAL_VOCAB, HIDDEN)),
        "emb_ln_g": jnp.ones((1, HIDDEN), jnp.float32),
        "emb_ln_b": jnp.zeros((1, HIDDEN), jnp.float32),
        "layers": [],
    }
    for _ in range(NUM_LAYERS):
        lw = {
            "wq": nrm(next(keys), (HIDDEN, HIDDEN)),
            "bq": jnp.zeros((1, HIDDEN), jnp.float32),
            "wk": nrm(next(keys), (HIDDEN, HIDDEN)),
            "bk": jnp.zeros((1, HIDDEN), jnp.float32),
            "wv": nrm(next(keys), (HIDDEN, HIDDEN)),
            "bv": jnp.zeros((1, HIDDEN), jnp.float32),
            "wo": nrm(next(keys), (HIDDEN, HIDDEN)),
            "bo": jnp.zeros((1, HIDDEN), jnp.float32),
            "ln1_g": jnp.ones((1, HIDDEN), jnp.float32),
            "ln1_b": jnp.zeros((1, HIDDEN), jnp.float32),
            "wi": nrm(next(keys), (HIDDEN, INTERMEDIATE)),
            "bi": jnp.zeros((1, INTERMEDIATE), jnp.float32),
            "wo2": nrm(next(keys), (INTERMEDIATE, HIDDEN)),
            "bo2": jnp.zeros((1, HIDDEN), jnp.float32),
            "ln2_g": jnp.ones((1, HIDDEN), jnp.float32),
            "ln2_b": jnp.zeros((1, HIDDEN), jnp.float32),
        }
        params["layers"].append(lw)
    return params


# --------------------------- pure-JAX reference ---------------------------------
def _ln_ref(v, g, b):
    mu = v.mean(-1, keepdims=True)
    var = jnp.square(v - mu).mean(-1, keepdims=True)
    return (v - mu) / jnp.sqrt(var + LN_EPS) * g + b


def ref_forward(params, input_ids, token_type_ids, initial_ids):
    B, S = input_ids.shape
    e = (params["word_emb"][input_ids]
         + params["pos_emb"][jnp.arange(S)][None]
         + params["type_emb"][token_type_ids])
    e = _ln_ref(e, params["emb_ln_g"][0], params["emb_ln_b"][0])
    x = e + params["init_emb"][initial_ids]
    for lw in params["layers"]:
        q = (x @ lw["wq"] + lw["bq"][0]).reshape(B, S, NUM_HEADS, HEAD_DIM)
        k = (x @ lw["wk"] + lw["bk"][0]).reshape(B, S, NUM_HEADS, HEAD_DIM)
        v = (x @ lw["wv"] + lw["bv"][0]).reshape(B, S, NUM_HEADS, HEAD_DIM)
        q, k, v = (t.transpose(0, 2, 1, 3) for t in (q, k, v))
        s = (q @ jnp.swapaxes(k, -1, -2)) / math.sqrt(HEAD_DIM)
        p = jax.nn.softmax(s, axis=-1)
        ctx = (p @ v).transpose(0, 2, 1, 3).reshape(B, S, HIDDEN)
        a = ctx @ lw["wo"] + lw["bo"][0]
        x = _ln_ref(x + a, lw["ln1_g"][0], lw["ln1_b"][0])
        f = jax.nn.gelu(x @ lw["wi"] + lw["bi"][0], approximate=True)
        f = f @ lw["wo2"] + lw["bo2"][0]
        x = _ln_ref(x + f, lw["ln2_g"][0], lw["ln2_b"][0])
    return x


# ----------------------------------- main ---------------------------------------
if __name__ == "__main__":
    key = jax.random.PRNGKey(0)
    k_params, k_ids, k_init = jax.random.split(key, 3)

    B, S = 2, 8
    params = init_params(k_params)
    input_ids = jax.random.randint(k_ids, (B, S), 0, VOCAB_SIZE, dtype=jnp.int32)
    token_type_ids = jnp.zeros((B, S), dtype=jnp.int32)
    attention_mask = jnp.ones((B, S), dtype=jnp.int32)
    initial_ids = jax.random.randint(k_init, (B, S), 0, INITIAL_VOCAB, dtype=jnp.int32)

    model = SpeechModel(params)
    out = model(input_ids, token_type_ids=token_type_ids,
                attention_mask=attention_mask, initial_ids=initial_ids)
    out = jax.block_until_ready(out)

    assert out.shape == (B, S, HIDDEN), out.shape
    ref = ref_forward(params, input_ids, token_type_ids, initial_ids)
    assert bool(jnp.all(jnp.isfinite(out)))
    assert jnp.allclose(out, ref, rtol=5e-3, atol=5e-3), \
        float(jnp.max(jnp.abs(out - ref)))

    print("KERNEL_OK")
</pallas_src>

<mosaic_0001>
module attributes {stable_mosaic.version = 11 : i64} {
  func.func @_speech_model_kernel(%arg0: i32, %arg1: memref<16x1xi32, #tpu.memory_space<vmem>>, %arg2: memref<16x1xi32, #tpu.memory_space<vmem>>, %arg3: memref<16x1xi32, #tpu.memory_space<vmem>>, %arg4: memref<16x1xi32, #tpu.memory_space<vmem>>, %arg5: memref<16x16xf32, #tpu.memory_space<vmem>>, %arg6: memref<96x32xf32, #tpu.memory_space<vmem>>, %arg7: memref<28x32xf32, #tpu.memory_space<vmem>>, %arg8: memref<1x32xf32, #tpu.memory_space<vmem>>, %arg9: memref<1x32xf32, #tpu.memory_space<vmem>>, %arg10: memref<2x2x32x16xf32, #tpu.memory_space<vmem>>, %arg11: memref<2x2x1x16xf32, #tpu.memory_space<vmem>>, %arg12: memref<2x2x32x16xf32, #tpu.memory_space<vmem>>, %arg13: memref<2x2x1x16xf32, #tpu.memory_space<vmem>>, %arg14: memref<2x2x32x16xf32, #tpu.memory_space<vmem>>, %arg15: memref<2x2x1x16xf32, #tpu.memory_space<vmem>>, %arg16: memref<2x2x16x32xf32, #tpu.memory_space<vmem>>, %arg17: memref<2x1x32xf32, #tpu.memory_space<vmem>>, %arg18: memref<2x1x32xf32, #tpu.memory_space<vmem>>, %arg19: memref<2x1x32xf32, #tpu.memory_space<vmem>>, %arg20: memref<2x32x64xf32, #tpu.memory_space<vmem>>, %arg21: memref<2x1x64xf32, #tpu.memory_space<vmem>>, %arg22: memref<2x64x32xf32, #tpu.memory_space<vmem>>, %arg23: memref<2x1x32xf32, #tpu.memory_space<vmem>>, %arg24: memref<2x1x32xf32, #tpu.memory_space<vmem>>, %arg25: memref<2x1x32xf32, #tpu.memory_space<vmem>>, %arg26: memref<16x32xf32, #tpu.memory_space<vmem>>) attributes {dimension_semantics = [#tpu.dimension_semantics<arbitrary>], iteration_bounds = array<i64: 1>, scalar_prefetch = 0 : i64, scratch_operands = 0 : i64, tpu.core_type = #tpu.core_type<tc>, window_params = [{pipeline_mode = #tpu.pipeline_mode<synchronous>, transform_indices = @transform_0, window_bounds = array<i64: 16, 1>}, {pipeline_mode = #tpu.pipeline_mode<synchronous>, transform_indices = @transform_1, window_bounds = array<i64: 16, 1>}, {pipeline_mode = #tpu.pipeline_mode<synchronous>, transform_indices = @transform_2, window_bounds = array<i64: 16, 1>}, {pipeline_mode = #tpu.pipeline_mode<synchronous>, transform_indices = @transform_3, window_bounds = array<i64: 16, 1>}, {pipeline_mode = #tpu.pipeline_mode<synchronous>, transform_indices = @transform_4, window_bounds = array<i64: 16, 16>}, {pipeline_mode = #tpu.pipeline_mode<synchronous>, transform_indices = @transform_5, window_bounds = array<i64: 96, 32>}, {pipeline_mode = #tpu.pipeline_mode<synchronous>, transform_indices = @transform_6, window_bounds = array<i64: 28, 32>}, {pipeline_mode = #tpu.pipeline_mode<synchronous>, transform_indices = @transform_7, window_bounds = array<i64: 1, 32>}, {pipeline_mode = #tpu.pipeline_mode<synchronous>, transform_indices = @transform_8, window_bounds = array<i64: 1, 32>}, {pipeline_mode = #tpu.pipeline_mode<synchronous>, transform_indices = @transform_9, window_bounds = array<i64: 2, 2, 32, 16>}, {pipeline_mode = #tpu.pipeline_mode<synchronous>, transform_indices = @transform_10, window_bounds = array<i64: 2, 2, 1, 16>}, {pipeline_mode = #tpu.pipeline_mode<synchronous>, transform_indices = @transform_11, window_bounds = array<i64: 2, 2, 32, 16>}, {pipeline_mode = #tpu.pipeline_mode<synchronous>, transform_indices = @transform_12, window_bounds = array<i64: 2, 2, 1, 16>}, {pipeline_mode = #tpu.pipeline_mode<synchronous>, transform_indices = @transform_13, window_bounds = array<i64: 2, 2, 32, 16>}, {pipeline_mode = #tpu.pipeline_mode<synchronous>, transform_indices = @transform_14, window_bounds = array<i64: 2, 2, 1, 16>}, {pipeline_mode = #tpu.pipeline_mode<synchronous>, transform_indices = @transform_15, window_bounds = array<i64: 2, 2, 16, 32>}, {pipeline_mode = #tpu.pipeline_mode<synchronous>, transform_indices = @transform_16, window_bounds = array<i64: 2, 1, 32>}, {pipeline_mode = #tpu.pipeline_mode<synchronous>, transform_indices = @transform_17, window_bounds = array<i64: 2, 1, 32>}, {pipeline_mode = #tpu.pipeline_mode<synchronous>, transform_indices = @transform_18, window_bounds = array<i64: 2, 1, 32>}, {pipeline_mode = #tpu.pipeline_mode<synchronous>, transform_indices = @transform_19, window_bounds = array<i64: 2, 32, 64>}, {pipeline_mode = #tpu.pipeline_mode<synchronous>, transform_indices = @transform_20, window_bounds = array<i64: 2, 1, 64>}, {pipeline_mode = #tpu.pipeline_mode<synchronous>, transform_indices = @transform_21, window_bounds = array<i64: 2, 64, 32>}, {pipeline_mode = #tpu.pipeline_mode<synchronous>, transform_indices = @transform_22, window_bounds = array<i64: 2, 1, 32>}, {pipeline_mode = #tpu.pipeline_mode<synchronous>, transform_indices = @transform_23, window_bounds = array<i64: 2, 1, 32>}, {pipeline_mode = #tpu.pipeline_mode<synchronous>, transform_indices = @transform_24, window_bounds = array<i64: 2, 1, 32>}, {pipeline_mode = #tpu.pipeline_mode<synchronous>, transform_indices = @transform_25, window_bounds = array<i64: 16, 32>}]} {
    %0 = tpu.iota {dimensions = array<i32: 1>} : vector<16x96xi32>
    %c0 = arith.constant 0 : index
    %c0_0 = arith.constant 0 : index
    %1 = vector.load %arg1[%c0, %c0_0] : memref<16x1xi32, #tpu.memory_space<vmem>>, vector<16x1xi32>
    %2 = vector.broadcast %1 : vector<16x1xi32> to vector<16x96xi32>
    %3 = arith.cmpi eq, %0, %2 : vector<16x96xi32>
    %c0_1 = arith.constant 0 : index
    %c0_2 = arith.constant 0 : index
    %4 = vector.load %arg2[%c0_1, %c0_2] : memref<16x1xi32, #tpu.memory_space<vmem>>, vector<16x1xi32>
    %5 = vector.broadcast %4 : vector<16x1xi32> to vector<16x96xi32>
    %6 = arith.cmpi eq, %0, %5 : vector<16x96xi32>
    %7 = arith.ori %3, %6 : vector<16x96xi1>
    %c0_3 = arith.constant 0 : index
    %c0_4 = arith.constant 0 : index
    %8 = vector.load %arg3[%c0_3, %c0_4] : memref<16x1xi32, #tpu.memory_space<vmem>>, vector<16x1xi32>
    %9 = vector.broadcast %8 : vector<16x1xi32> to vector<16x96xi32>
    %10 = arith.cmpi eq, %0, %9 : vector<16x96xi32>
    %11 = arith.ori %7, %10 : vector<16x96xi1>
    %12 = arith.extui %11 : vector<16x96xi1> to vector<16x96xi32>
    %13 = arith.sitofp %12 : vector<16x96xi32> to vector<16x96xf32>
    %c0_5 = arith.constant 0 : index
    %c0_6 = arith.constant 0 : index
    %14 = vector.load %arg6[%c0_5, %c0_6] : memref<96x32xf32, #tpu.memory_space<vmem>>, vector<96x32xf32>
    %cst = arith.constant dense<0.000000e+00> : vector<16x32xf32>
    %15 = tpu.matmul %13, %14, %cst {dimension_numbers = #tpu.dot_dimension_numbers<[1], [0], [0], [1], [0, 0, 1, 1], [], []>, precision = #tpu.contract_precision<fp32>} : vector<16x96xf32>, vector<96x32xf32>, vector<16x32xf32> -> vector<16x32xf32>
    %c0_7 = arith.constant 0 : index
    %c0_8 = arith.constant 0 : index
    %16 = vector.load %arg8[%c0_7, %c0_8] : memref<1x32xf32, #tpu.memory_space<vmem>>, vector<1x32xf32>
    %c0_9 = arith.constant 0 : index
    %c0_10 = arith.constant 0 : index
    %17 = vector.load %arg9[%c0_9, %c0_10] : memref<1x32xf32, #tpu.memory_space<vmem>>, vector<1x32xf32>
    %cst_11 = arith.constant dense<0.000000e+00> : vector<16xf32>
    %18 = vector.multi_reduction <add>, %15, %cst_11 [1] : vector<16x32xf32> to vector<16xf32>
    %19 = vector.shape_cast %18 : vector<16xf32> to vector<16x1xf32>
    %cst_12 = arith.constant 3.200000e+01 : f32
    %20 = vector.broadcast %cst_12 : f32 to vector<16x1xf32>
    %21 = arith.divf %19, %20 : vector<16x1xf32>
    %22 = vector.broadcast %21 : vector<16x1xf32> to vector<16x32xf32>
    %23 = arith.subf %15, %22 : vector<16x32xf32>
    %24 = arith.mulf %23, %23 : vector<16x32xf32>
    %cst_13 = arith.constant dense<0.000000e+00> : vector<16xf32>
    %25 = vector.multi_reduction <add>, %24, %cst_13 [1] : vector<16x32xf32> to vector<16xf32>
    %26 = vector.shape_cast %25 : vector<16xf32> to vector<16x1xf32>
    %cst_14 = arith.constant 3.200000e+01 : f32
    %27 = vector.broadcast %cst_14 : f32 to vector<16x1xf32>
    %28 = arith.divf %26, %27 : vector<16x1xf32>
    %29 = vector.broadcast %21 : vector<16x1xf32> to vector<16x32xf32>
    %30 = arith.subf %15, %29 : vector<16x32xf32>
    %cst_15 = arith.constant 9.99999996E-13 : f32
    %31 = vector.broadcast %cst_15 : f32 to vector<16x1xf32>
    %32 = arith.addf %28, %31 : vector<16x1xf32>
    %33 = math.rsqrt %32 : vector<16x1xf32>
    %34 = vector.broadcast %33 : vector<16x1xf32> to vector<16x32xf32>
    %35 = arith.mulf %30, %34 : vector<16x32xf32>
    %36 = vector.broadcast %16 : vector<1x32xf32> to vector<16x32xf32>
    %37 = arith.mulf %35, %36 : vector<16x32xf32>
    %38 = vector.broadcast %17 : vector<1x32xf32> to vector<16x32xf32>
    %39 = arith.addf %37, %38 : vector<16x32xf32>
    %40 = tpu.iota {dimensions = array<i32: 1>} : vector<16x28xi32>
    %c0_16 = arith.constant 0 : index
    %c0_17 = arith.constant 0 : index
    %41 = vector.load %arg4[%c0_16, %c0_17] : memref<16x1xi32, #tpu.memory_space<vmem>>, vector<16x1xi32>
    %42 = vector.broadcast %41 : vector<16x1xi32> to vector<16x28xi32>
    %43 = arith.cmpi eq, %40, %42 : vector<16x28xi32>
    %44 = arith.extui %43 : vector<16x28xi1> to vector<16x28xi32>
    %45 = arith.sitofp %44 : vector<16x28xi32> to vector<16x28xf32>
    %c0_18 = arith.constant 0 : index
    %c0_19 = arith.constant 0 : index
    %46 = vector.load %arg7[%c0_18, %c0_19] : memref<28x32xf32, #tpu.memory_space<vmem>>, vector<28x32xf32>
    %cst_20 = arith.constant dense<0.000000e+00> : vector<16x32xf32>
    %47 = tpu.matmul %45, %46, %cst_20 {dimension_numbers = #tpu.dot_dimension_numbers<[1], [0], [0], [1], [0, 0, 1, 1], [], []>, precision = #tpu.contract_precision<fp32>} : vector<16x28xf32>, vector<28x32xf32>, vector<16x32xf32> -> vector<16x32xf32>
    %48 = arith.addf %39, %47 : vector<16x32xf32>
    %c0_21 = arith.constant 0 : index
    %c0_22 = arith.constant 0 : index
    %49 = vector.load %arg5[%c0_21, %c0_22] : memref<16x16xf32, #tpu.memory_space<vmem>>, vector<16x16xf32>
    %cst_23 = arith.constant 0.000000e+00 : f32
    %50 = vector.broadcast %cst_23 : f32 to vector<16x32xf32>
    %c0_24 = arith.constant 0 : index
    %c0_25 = arith.constant 0 : index
    %c0_26 = arith.constant 0 : index
    %c0_27 = arith.constant 0 : index
    %51 = vector.load %arg10[%c0_24, %c0_25, %c0_26, %c0_27] : memref<2x2x32x16xf32, #tpu.memory_space<vmem>>, vector<1x1x32x16xf32>
    %52 = vector.shape_cast %51 : vector<1x1x32x16xf32> to vector<32x16xf32>
    %cst_28 = arith.constant dense<0.000000e+00> : vector<16x16xf32>
    %53 = tpu.matmul %48, %52, %cst_28 {dimension_numbers = #tpu.dot_dimension_numbers<[1], [0], [0], [1], [0, 0, 1, 1], [], []>, precision = #tpu.contract_precision<fp32>} : vector<16x32xf32>, vector<32x16xf32>, vector<16x16xf32> -> vector<16x16xf32>
    %c0_29 = arith.constant 0 : index
    %c0_30 = arith.constant 0 : index
    %c0_31 = arith.constant 0 : index
    %c0_32 = arith.constant 0 : index
    %54 = vector.load %arg11[%c0_29, %c0_30, %c0_31, %c0_32] : memref<2x2x1x16xf32, #tpu.memory_space<vmem>>, vector<1x1x1x16xf32>
    %55 = vector.shape_cast %54 : vector<1x1x1x16xf32> to vector<1x16xf32>
    %56 = vector.broadcast %55 : vector<1x16xf32> to vector<16x16xf32>
    %57 = arith.addf %53, %56 : vector<16x16xf32>
    %c0_33 = arith.constant 0 : index
    %c0_34 = arith.constant 0 : index
    %c0_35 = arith.constant 0 : index
    %c0_36 = arith.constant 0 : index
    %58 = vector.load %arg12[%c0_33, %c0_34, %c0_35, %c0_36] : memref<2x2x32x16xf32, #tpu.memory_space<vmem>>, vector<1x1x32x16xf32>
    %59 = vector.shape_cast %58 : vector<1x1x32x16xf32> to vector<32x16xf32>
    %cst_37 = arith.constant dense<0.000000e+00> : vector<16x16xf32>
    %60 = tpu.matmul %48, %59, %cst_37 {dimension_numbers = #tpu.dot_dimension_numbers<[1], [0], [0], [1], [0, 0, 1, 1], [], []>, precision = #tpu.contract_precision<fp32>} : vector<16x32xf32>, vector<32x16xf32>, vector<16x16xf32> -> vector<16x16xf32>
    %c0_38 = arith.constant 0 : index
    %c0_39 = arith.constant 0 : index
    %c0_40 = arith.constant 0 : index
    %c0_41 = arith.constant 0 : index
    %61 = vector.load %arg13[%c0_38, %c0_39, %c0_40, %c0_41] : memref<2x2x1x16xf32, #tpu.memory_space<vmem>>, vector<1x1x1x16xf32>
    %62 = vector.shape_cast %61 : vector<1x1x1x16xf32> to vector<1x16xf32>
    %63 = vector.broadcast %62 : vector<1x16xf32> to vector<16x16xf32>
    %64 = arith.addf %60, %63 : vector<16x16xf32>
    %c0_42 = arith.constant 0 : index
    %c0_43 = arith.constant 0 : index
    %c0_44 = arith.constant 0 : index
    %c0_45 = arith.constant 0 : index
    %65 = vector.load %arg14[%c0_42, %c0_43, %c0_44, %c0_45] : memref<2x2x32x16xf32, #tpu.memory_space<vmem>>, vector<1x1x32x16xf32>
    %66 = vector.shape_cast %65 : vector<1x1x32x16xf32> to vector<32x16xf32>
    %cst_46 = arith.constant dense<0.000000e+00> : vector<16x16xf32>
    %67 = tpu.matmul %48, %66, %cst_46 {dimension_numbers = #tpu.dot_dimension_numbers<[1], [0], [0], [1], [0, 0, 1, 1], [], []>, precision = #tpu.contract_precision<fp32>} : vector<16x32xf32>, vector<32x16xf32>, vector<16x16xf32> -> vector<16x16xf32>
    %c0_47 = arith.constant 0 : index
    %c0_48 = arith.constant 0 : index
    %c0_49 = arith.constant 0 : index
    %c0_50 = arith.constant 0 : index
    %68 = vector.load %arg15[%c0_47, %c0_48, %c0_49, %c0_50] : memref<2x2x1x16xf32, #tpu.memory_space<vmem>>, vector<1x1x1x16xf32>
    %69 = vector.shape_cast %68 : vector<1x1x1x16xf32> to vector<1x16xf32>
    %70 = vector.broadcast %69 : vector<1x16xf32> to vector<16x16xf32>
    %71 = arith.addf %67, %70 : vector<16x16xf32>
    %cst_51 = arith.constant dense<0.000000e+00> : vector<16x16xf32>
    %72 = tpu.matmul %57, %64, %cst_51 {dimension_numbers = #tpu.dot_dimension_numbers<[1], [1], [0], [0], [0, 0, 1, 0], [], []>, precision = #tpu.contract_precision<fp32>} : vector<16x16xf32>, vector<16x16xf32>, vector<16x16xf32> -> vector<16x16xf32>
    %cst_52 = arith.constant 2.500000e-01 : f32
    %73 = vector.broadcast %cst_52 : f32 to vector<16x16xf32>
    %74 = arith.mulf %72, %73 : vector<16x16xf32>
    %75 = arith.addf %74, %49 : vector<16x16xf32>
    %cst_53 = arith.constant dense<0xFF800000> : vector<16xf32>
    %76 = vector.multi_reduction <maximumf>, %75, %cst_53 [1] : vector<16x16xf32> to vector<16xf32>
    %77 = vector.shape_cast %76 : vector<16xf32> to vector<16x1xf32>
    %78 = vector.broadcast %77 : vector<16x1xf32> to vector<16x16xf32>
    %79 = arith.subf %75, %78 : vector<16x16xf32>
    %80 = math.exp %79 : vector<16x16xf32>
    %cst_54 = arith.constant dense<0.000000e+00> : vector<16xf32>
    %81 = vector.multi_reduction <add>, %80, %cst_54 [1] : vector<16x16xf32> to vector<16xf32>
    %82 = vector.shape_cast %81 : vector<16xf32> to vector<16x1xf32>
    %83 = tpu.reciprocal %82 {approx = true} : vector<16x1xf32> -> vector<16x1xf32>
    %84 = vector.broadcast %83 : vector<16x1xf32> to vector<16x16xf32>
    %85 = arith.mulf %80, %84 : vector<16x16xf32>
    %cst_55 = arith.constant dense<0.000000e+00> : vector<16x16xf32>
    %86 = tpu.matmul %85, %71, %cst_55 {dimension_numbers = #tpu.dot_dimension_numbers<[1], [0], [0], [1], [0, 0, 1, 1], [], []>, precision = #tpu.contract_precision<fp32>} : vector<16x16xf32>, vector<16x16xf32>, vector<16x16xf32> -> vector<16x16xf32>
    %c0_56 = arith.constant 0 : index
    %c0_57 = arith.constant 0 : index
    %c0_58 = arith.constant 0 : index
    %c0_59 = arith.constant 0 : index
    %87 = vector.load %arg16[%c0_56, %c0_57, %c0_58, %c0_59] : memref<2x2x16x32xf32, #tpu.memory_space<vmem>>, vector<1x1x16x32xf32>
    %88 = vector.shape_cast %87 : vector<1x1x16x32xf32> to vector<16x32xf32>
    %cst_60 = arith.constant dense<0.000000e+00> : vector<16x32xf32>
    %89 = tpu.matmul %86, %88, %cst_60 {dimension_numbers = #tpu.dot_dimension_numbers<[1], [0], [0], [1], [0, 0, 1, 1], [], []>, precision = #tpu.contract_precision<fp32>} : vector<16x16xf32>, vector<16x32xf32>, vector<16x32xf32> -> vector<16x32xf32>
    %90 = arith.addf %50, %89 : vector<16x32xf32>
    %c0_61 = arith.constant 0 : index
    %c1 = arith.constant 1 : index
    %c0_62 = arith.constant 0 : index
    %c0_63 = arith.constant 0 : index
    %91 = vector.load %arg10[%c0_61, %c1, %c0_62, %c0_63] : memref<2x2x32x16xf32, #tpu.memory_space<vmem>>, vector<1x1x32x16xf32>
    %92 = vector.shape_cast %91 : vector<1x1x32x16xf32> to vector<32x16xf32>
    %cst_64 = arith.constant dense<0.000000e+00> : vector<16x16xf32>
    %93 = tpu.matmul %48, %92, %cst_64 {dimension_numbers = #tpu.dot_dimension_numbers<[1], [0], [0], [1], [0, 0, 1, 1], [], []>, precision = #tpu.contract_precision<fp32>} : vector<16x32xf32>, vector<32x16xf32>, vector<16x16xf32> -> vector<16x16xf32>
    %c0_65 = arith.constant 0 : index
    %c1_66 = arith.constant 1 : index
    %c0_67 = arith.constant 0 : index
    %c0_68 = arith.constant 0 : index
    %94 = vector.load %arg11[%c0_65, %c1_66, %c0_67, %c0_68] : memref<2x2x1x16xf32, #tpu.memory_space<vmem>>, vector<1x1x1x16xf32>
    %95 = vector.shape_cast %94 : vector<1x1x1x16xf32> to vector<1x16xf32>
    %96 = vector.broadcast %95 : vector<1x16xf32> to vector<16x16xf32>
    %97 = arith.addf %93, %96 : vector<16x16xf32>
    %c0_69 = arith.constant 0 : index
    %c1_70 = arith.constant 1 : index
    %c0_71 = arith.constant 0 : index
    %c0_72 = arith.constant 0 : index
    %98 = vector.load %arg12[%c0_69, %c1_70, %c0_71, %c0_72] : memref<2x2x32x16xf32, #tpu.memory_space<vmem>>, vector<1x1x32x16xf32>
    %99 = vector.shape_cast %98 : vector<1x1x32x16xf32> to vector<32x16xf32>
    %cst_73 = arith.constant dense<0.000000e+00> : vector<16x16xf32>
    %100 = tpu.matmul %48, %99, %cst_73 {dimension_numbers = #tpu.dot_dimension_numbers<[1], [0], [0], [1], [0, 0, 1, 1], [], []>, precision = #tpu.contract_precision<fp32>} : vector<16x32xf32>, vector<32x16xf32>, vector<16x16xf32> -> vector<16x16xf32>
    %c0_74 = arith.constant 0 : index
    %c1_75 = arith.constant 1 : index
    %c0_76 = arith.constant 0 : index
    %c0_77 = arith.constant 0 : index
    %101 = vector.load %arg13[%c0_74, %c1_75, %c0_76, %c0_77] : memref<2x2x1x16xf32, #tpu.memory_space<vmem>>, vector<1x1x1x16xf32>
    %102 = vector.shape_cast %101 : vector<1x1x1x16xf32> to vector<1x16xf32>
    %103 = vector.broadcast %102 : vector<1x16xf32> to vector<16x16xf32>
    %104 = arith.addf %100, %103 : vector<16x16xf32>
    %c0_78 = arith.constant 0 : index
    %c1_79 = arith.constant 1 : index
    %c0_80 = arith.constant 0 : index
    %c0_81 = arith.constant 0 : index
    %105 = vector.load %arg14[%c0_78, %c1_79, %c0_80, %c0_81] : memref<2x2x32x16xf32, #tpu.memory_space<vmem>>, vector<1x1x32x16xf32>
    %106 = vector.shape_cast %105 : vector<1x1x32x16xf32> to vector<32x16xf32>
    %cst_82 = arith.constant dense<0.000000e+00> : vector<16x16xf32>
    %107 = tpu.matmul %48, %106, %cst_82 {dimension_numbers = #tpu.dot_dimension_numbers<[1], [0], [0], [1], [0, 0, 1, 1], [], []>, precision = #tpu.contract_precision<fp32>} : vector<16x32xf32>, vector<32x16xf32>, vector<16x16xf32> -> vector<16x16xf32>
    %c0_83 = arith.constant 0 : index
    %c1_84 = arith.constant 1 : index
    %c0_85 = arith.constant 0 : index
    %c0_86 = arith.constant 0 : index
    %108 = vector.load %arg15[%c0_83, %c1_84, %c0_85, %c0_86] : memref<2x2x1x16xf32, #tpu.memory_space<vmem>>, vector<1x1x1x16xf32>
    %109 = vector.shape_cast %108 : vector<1x1x1x16xf32> to vector<1x16xf32>
    %110 = vector.broadcast %109 : vector<1x16xf32> to vector<16x16xf32>
    %111 = arith.addf %107, %110 : vector<16x16xf32>
    %cst_87 = arith.constant dense<0.000000e+00> : vector<16x16xf32>
    %112 = tpu.matmul %97, %104, %cst_87 {dimension_numbers = #tpu.dot_dimension_numbers<[1], [1], [0], [0], [0, 0, 1, 0], [], []>, precision = #tpu.contract_precision<fp32>} : vector<16x16xf32>, vector<16x16xf32>, vector<16x16xf32> -> vector<16x16xf32>
    %cst_88 = arith.constant 2.500000e-01 : f32
    %113 = vector.broadcast %cst_88 : f32 to vector<16x16xf32>
    %114 = arith.mulf %112, %113 : vector<16x16xf32>
    %115 = arith.addf %114, %49 : vector<16x16xf32>
    %cst_89 = arith.constant dense<0xFF800000> : vector<16xf32>
    %116 = vector.multi_reduction <maximumf>, %115, %cst_89 [1] : vector<16x16xf32> to vector<16xf32>
    %117 = vector.shape_cast %116 : vector<16xf32> to vector<16x1xf32>
    %118 = vector.broadcast %117 : vector<16x1xf32> to vector<16x16xf32>
    %119 = arith.subf %115, %118 : vector<16x16xf32>
    %120 = math.exp %119 : vector<16x16xf32>
    %cst_90 = arith.constant dense<0.000000e+00> : vector<16xf32>
    %121 = vector.multi_reduction <add>, %120, %cst_90 [1] : vector<16x16xf32> to vector<16xf32>
    %122 = vector.shape_cast %121 : vector<16xf32> to vector<16x1xf32>
    %123 = tpu.reciprocal %122 {approx = true} : vector<16x1xf32> -> vector<16x1xf32>
    %124 = vector.broadcast %123 : vector<16x1xf32> to vector<16x16xf32>
    %125 = arith.mulf %120, %124 : vector<16x16xf32>
    %cst_91 = arith.constant dense<0.000000e+00> : vector<16x16xf32>
    %126 = tpu.matmul %125, %111, %cst_91 {dimension_numbers = #tpu.dot_dimension_numbers<[1], [0], [0], [1], [0, 0, 1, 1], [], []>, precision = #tpu.contract_precision<fp32>} : vector<16x16xf32>, vector<16x16xf32>, vector<16x16xf32> -> vector<16x16xf32>
    %c0_92 = arith.constant 0 : index
    %c1_93 = arith.constant 1 : index
    %c0_94 = arith.constant 0 : index
    %c0_95 = arith.constant 0 : index
    %127 = vector.load %arg16[%c0_92, %c1_93, %c0_94, %c0_95] : memref<2x2x16x32xf32, #tpu.memory_space<vmem>>, vector<1x1x16x32xf32>
    %128 = vector.shape_cast %127 : vector<1x1x16x32xf32> to vector<16x32xf32>
    %cst_96 = arith.constant dense<0.000000e+00> : vector<16x32xf32>
    %129 = tpu.matmul %126, %128, %cst_96 {dimension_numbers = #tpu.dot_dimension_numbers<[1], [0], [0], [1], [0, 0, 1, 1], [], []>, precision = #tpu.contract_precision<fp32>} : vector<16x16xf32>, vector<16x32xf32>, vector<16x32xf32> -> vector<16x32xf32>
    %130 = arith.addf %90, %129 : vector<16x32xf32>
    %c0_97 = arith.constant 0 : index
    %c0_98 = arith.constant 0 : index
    %c0_99 = arith.constant 0 : index
    %131 = vector.load %arg17[%c0_97, %c0_98, %c0_99] : memref<2x1x32xf32, #tpu.memory_space<vmem>>, vector<1x1x32xf32>
    %132 = vector.shape_cast %131 : vector<1x1x32xf32> to vector<1x32xf32>
    %133 = vector.broadcast %132 : vector<1x32xf32> to vector<16x32xf32>
    %134 = arith.addf %130, %133 : vector<16x32xf32>
    %135 = arith.addf %48, %134 : vector<16x32xf32>
    %c0_100 = arith.constant 0 : index
    %c0_101 = arith.constant 0 : index
    %c0_102 = arith.constant 0 : index
    %136 = vector.load %arg18[%c0_100, %c0_101, %c0_102] : memref<2x1x32xf32, #tpu.memory_space<vmem>>, vector<1x1x32xf32>
    %137 = vector.shape_cast %136 : vector<1x1x32xf32> to vector<1x32xf32>
    %c0_103 = arith.constant 0 : index
    %c0_104 = arith.constant 0 : index
    %c0_105 = arith.constant 0 : index
    %138 = vector.load %arg19[%c0_103, %c0_104, %c0_105] : memref<2x1x32xf32, #tpu.memory_space<vmem>>, vector<1x1x32xf32>
    %139 = vector.shape_cast %138 : vector<1x1x32xf32> to vector<1x32xf32>
    %cst_106 = arith.constant dense<0.000000e+00> : vector<16xf32>
    %140 = vector.multi_reduction <add>, %135, %cst_106 [1] : vector<16x32xf32> to vector<16xf32>
    %141 = vector.shape_cast %140 : vector<16xf32> to vector<16x1xf32>
    %cst_107 = arith.constant 3.200000e+01 : f32
    %142 = vector.broadcast %cst_107 : f32 to vector<16x1xf32>
    %143 = arith.divf %141, %142 : vector<16x1xf32>
    %144 = vector.broadcast %143 : vector<16x1xf32> to vector<16x32xf32>
    %145 = arith.subf %135, %144 : vector<16x32xf32>
    %146 = arith.mulf %145, %145 : vector<16x32xf32>
    %cst_108 = arith.constant dense<0.000000e+00> : vector<16xf32>
    %147 = vector.multi_reduction <add>, %146, %cst_108 [1] : vector<16x32xf32> to vector<16xf32>
    %148 = vector.shape_cast %147 : vector<16xf32> to vector<16x1xf32>
    %cst_109 = arith.constant 3.200000e+01 : f32
    %149 = vector.broadcast %cst_109 : f32 to vector<16x1xf32>
    %150 = arith.divf %148, %149 : vector<16x1xf32>
    %151 = vector.broadcast %143 : vector<16x1xf32> to vector<16x32xf32>
    %152 = arith.subf %135, %151 : vector<16x32xf32>
    %cst_110 = arith.constant 9.99999996E-13 : f32
    %153 = vector.broadcast %cst_110 : f32 to vector<16x1xf32>
    %154 = arith.addf %150, %153 : vector<16x1xf32>
    %155 = math.rsqrt %154 : vector<16x1xf32>
    %156 = vector.broadcast %155 : vector<16x1xf32> to vector<16x32xf32>
    %157 = arith.mulf %152, %156 : vector<16x32xf32>
    %158 = vector.broadcast %137 : vector<1x32xf32> to vector<16x32xf32>
    %159 = arith.mulf %157, %158 : vector<16x32xf32>
    %160 = vector.broadcast %139 : vector<1x32xf32> to vector<16x32xf32>
    %161 = arith.addf %159, %160 : vector<16x32xf32>
    %c0_111 = arith.constant 0 : index
    %c0_112 = arith.constant 0 : index
    %c0_113 = arith.constant 0 : index
    %162 = vector.load %arg20[%c0_111, %c0_112, %c0_113] : memref<2x32x64xf32, #tpu.memory_space<vmem>>, vector<1x32x64xf32>
    %163 = vector.shape_cast %162 : vector<1x32x64xf32> to vector<32x64xf32>
    %cst_114 = arith.constant dense<0.000000e+00> : vector<16x64xf32>
    %164 = tpu.matmul %161, %163, %cst_114 {dimension_numbers = #tpu.dot_dimension_numbers<[1], [0], [0], [1], [0, 0, 1, 1], [], []>, precision = #tpu.contract_precision<fp32>} : vector<16x32xf32>, vector<32x64xf32>, vector<16x64xf32> -> vector<16x64xf32>
    %c0_115 = arith.constant 0 : index
    %c0_116 = arith.constant 0 : index
    %c0_117 = arith.constant 0 : index
    %165 = vector.load %arg21[%c0_115, %c0_116, %c0_117] : memref<2x1x64xf32, #tpu.memory_space<vmem>>, vector<1x1x64xf32>
    %166 = vector.shape_cast %165 : vector<1x1x64xf32> to vector<1x64xf32>
    %167 = vector.broadcast %166 : vector<1x64xf32> to vector<16x64xf32>
    %168 = arith.addf %164, %167 : vector<16x64xf32>
    %169 = arith.mulf %168, %168 : vector<16x64xf32>
    %170 = arith.mulf %168, %169 : vector<16x64xf32>
    %cst_118 = arith.constant 4.471500e-02 : f32
    %171 = vector.broadcast %cst_118 : f32 to vector<16x64xf32>
    %172 = arith.mulf %171, %170 : vector<16x64xf32>
    %173 = arith.addf %168, %172 : vector<16x64xf32>
    %cst_119 = arith.constant 0.797884583 : f32
    %174 = vector.broadcast %cst_119 : f32 to vector<16x64xf32>
    %175 = arith.mulf %174, %173 : vector<16x64xf32>
    %176 = math.tanh %175 : vector<16x64xf32>
    %cst_120 = arith.constant 1.000000e+00 : f32
    %177 = vector.broadcast %cst_120 : f32 to vector<16x64xf32>
    %178 = arith.addf %177, %176 : vector<16x64xf32>
    %cst_121 = arith.constant 5.000000e-01 : f32
    %179 = vector.broadcast %cst_121 : f32 to vector<16x64xf32>
    %180 = arith.mulf %179, %178 : vector<16x64xf32>
    %181 = arith.mulf %168, %180 : vector<16x64xf32>
    %c0_122 = arith.constant 0 : index
    %c0_123 = arith.constant 0 : index
    %c0_124 = arith.constant 0 : index
    %182 = vector.load %arg22[%c0_122, %c0_123, %c0_124] : memref<2x64x32xf32, #tpu.memory_space<vmem>>, vector<1x64x32xf32>
    %183 = vector.shape_cast %182 : vector<1x64x32xf32> to vector<64x32xf32>
    %cst_125 = arith.constant dense<0.000000e+00> : vector<16x32xf32>
    %184 = tpu.matmul %181, %183, %cst_125 {dimension_numbers = #tpu.dot_dimension_numbers<[1], [0], [0], [1], [0, 0, 1, 1], [], []>, precision = #tpu.contract_precision<fp32>} : vector<16x64xf32>, vector<64x32xf32>, vector<16x32xf32> -> vector<16x32xf32>
    %c0_126 = arith.constant 0 : index
    %c0_127 = arith.constant 0 : index
    %c0_128 = arith.constant 0 : index
    %185 = vector.load %arg23[%c0_126, %c0_127, %c0_128] : memref<2x1x32xf32, #tpu.memory_space<vmem>>, vector<1x1x32xf32>
    %186 = vector.shape_cast %185 : vector<1x1x32xf32> to vector<1x32xf32>
    %187 = vector.broadcast %186 : vector<1x32xf32> to vector<16x32xf32>
    %188 = arith.addf %184, %187 : vector<16x32xf32>
    %189 = arith.addf %161, %188 : vector<16x32xf32>
    %c0_129 = arith.constant 0 : index
    %c0_130 = arith.constant 0 : index
    %c0_131 = arith.constant 0 : index
    %190 = vector.load %arg24[%c0_129, %c0_130, %c0_131] : memref<2x1x32xf32, #tpu.memory_space<vmem>>, vector<1x1x32xf32>
    %191 = vector.shape_cast %190 : vector<1x1x32xf32> to vector<1x32xf32>
    %c0_132 = arith.constant 0 : index
    %c0_133 = arith.constant 0 : index
    %c0_134 = arith.constant 0 : index
    %192 = vector.load %arg25[%c0_132, %c0_133, %c0_134] : memref<2x1x32xf32, #tpu.memory_space<vmem>>, vector<1x1x32xf32>
    %193 = vector.shape_cast %192 : vector<1x1x32xf32> to vector<1x32xf32>
    %cst_135 = arith.constant dense<0.000000e+00> : vector<16xf32>
    %194 = vector.multi_reduction <add>, %189, %cst_135 [1] : vector<16x32xf32> to vector<16xf32>
    %195 = vector.shape_cast %194 : vector<16xf32> to vector<16x1xf32>
    %cst_136 = arith.constant 3.200000e+01 : f32
    %196 = vector.broadcast %cst_136 : f32 to vector<16x1xf32>
    %197 = arith.divf %195, %196 : vector<16x1xf32>
    %198 = vector.broadcast %197 : vector<16x1xf32> to vector<16x32xf32>
    %199 = arith.subf %189, %198 : vector<16x32xf32>
    %200 = arith.mulf %199, %199 : vector<16x32xf32>
    %cst_137 = arith.constant dense<0.000000e+00> : vector<16xf32>
    %201 = vector.multi_reduction <add>, %200, %cst_137 [1] : vector<16x32xf32> to vector<16xf32>
    %202 = vector.shape_cast %201 : vector<16xf32> to vector<16x1xf32>
    %cst_138 = arith.constant 3.200000e+01 : f32
    %203 = vector.broadcast %cst_138 : f32 to vector<16x1xf32>
    %204 = arith.divf %202, %203 : vector<16x1xf32>
    %205 = vector.broadcast %197 : vector<16x1xf32> to vector<16x32xf32>
    %206 = arith.subf %189, %205 : vector<16x32xf32>
    %cst_139 = arith.constant 9.99999996E-13 : f32
    %207 = vector.broadcast %cst_139 : f32 to vector<16x1xf32>
    %208 = arith.addf %204, %207 : vector<16x1xf32>
    %209 = math.rsqrt %208 : vector<16x1xf32>
    %210 = vector.broadcast %209 : vector<16x1xf32> to vector<16x32xf32>
    %211 = arith.mulf %206, %210 : vector<16x32xf32>
    %212 = vector.broadcast %191 : vector<1x32xf32> to vector<16x32xf32>
    %213 = arith.mulf %211, %212 : vector<16x32xf32>
    %214 = vector.broadcast %193 : vector<1x32xf32> to vector<16x32xf32>
    %215 = arith.addf %213, %214 : vector<16x32xf32>
    %cst_140 = arith.constant 0.000000e+00 : f32
    %216 = vector.broadcast %cst_140 : f32 to vector<16x32xf32>
    %c1_141 = arith.constant 1 : index
    %c0_142 = arith.constant 0 : index
    %c0_143 = arith.constant 0 : index
    %c0_144 = arith.constant 0 : index
    %217 = vector.load %arg10[%c1_141, %c0_142, %c0_143, %c0_144] : memref<2x2x32x16xf32, #tpu.memory_space<vmem>>, vector<1x1x32x16xf32>
    %218 = vector.shape_cast %217 : vector<1x1x32x16xf32> to vector<32x16xf32>
    %cst_145 = arith.constant dense<0.000000e+00> : vector<16x16xf32>
    %219 = tpu.matmul %215, %218, %cst_145 {dimension_numbers = #tpu.dot_dimension_numbers<[1], [0], [0], [1], [0, 0, 1, 1], [], []>, precision = #tpu.contract_precision<fp32>} : vector<16x32xf32>, vector<32x16xf32>, vector<16x16xf32> -> vector<16x16xf32>
    %c1_146 = arith.constant 1 : index
    %c0_147 = arith.constant 0 : index
    %c0_148 = arith.constant 0 : index
    %c0_149 = arith.constant 0 : index
    %220 = vector.load %arg11[%c1_146, %c0_147, %c0_148, %c0_149] : memref<2x2x1x16xf32, #tpu.memory_space<vmem>>, vector<1x1x1x16xf32>
    %221 = vector.shape_cast %220 : vector<1x1x1x16xf32> to vector<1x16xf32>
    %222 = vector.broadcast %221 : vector<1x16xf32> to vector<16x16xf32>
    %223 = arith.addf %219, %222 : vector<16x16xf32>
    %c1_150 = arith.constant 1 : index
    %c0_151 = arith.constant 0 : index
    %c0_152 = arith.constant 0 : index
    %c0_153 = arith.constant 0 : index
    %224 = vector.load %arg12[%c1_150, %c0_151, %c0_152, %c0_153] : memref<2x2x32x16xf32, #tpu.memory_space<vmem>>, vector<1x1x32x16xf32>
    %225 = vector.shape_cast %224 : vector<1x1x32x16xf32> to vector<32x16xf32>
    %cst_154 = arith.constant dense<0.000000e+00> : vector<16x16xf32>
    %226 = tpu.matmul %215, %225, %cst_154 {dimension_numbers = #tpu.dot_dimension_numbers<[1], [0], [0], [1], [0, 0, 1, 1], [], []>, precision = #tpu.contract_precision<fp32>} : vector<16x32xf32>, vector<32x16xf32>, vector<16x16xf32> -> vector<16x16xf32>
    %c1_155 = arith.constant 1 : index
    %c0_156 = arith.constant 0 : index
    %c0_157 = arith.constant 0 : index
    %c0_158 = arith.constant 0 : index
    %227 = vector.load %arg13[%c1_155, %c0_156, %c0_157, %c0_158] : memref<2x2x1x16xf32, #tpu.memory_space<vmem>>, vector<1x1x1x16xf32>
    %228 = vector.shape_cast %227 : vector<1x1x1x16xf32> to vector<1x16xf32>
    %229 = vector.broadcast %228 : vector<1x16xf32> to vector<16x16xf32>
    %230 = arith.addf %226, %229 : vector<16x16xf32>
    %c1_159 = arith.constant 1 : index
    %c0_160 = arith.constant 0 : index
    %c0_161 = arith.constant 0 : index
    %c0_162 = arith.constant 0 : index
    %231 = vector.load %arg14[%c1_159, %c0_160, %c0_161, %c0_162] : memref<2x2x32x16xf32, #tpu.memory_space<vmem>>, vector<1x1x32x16xf32>
    %232 = vector.shape_cast %231 : vector<1x1x32x16xf32> to vector<32x16xf32>
    %cst_163 = arith.constant dense<0.000000e+00> : vector<16x16xf32>
    %233 = tpu.matmul %215, %232, %cst_163 {dimension_numbers = #tpu.dot_dimension_numbers<[1], [0], [0], [1], [0, 0, 1, 1], [], []>, precision = #tpu.contract_precision<fp32>} : vector<16x32xf32>, vector<32x16xf32>, vector<16x16xf32> -> vector<16x16xf32>
    %c1_164 = arith.constant 1 : index
    %c0_165 = arith.constant 0 : index
    %c0_166 = arith.constant 0 : index
    %c0_167 = arith.constant 0 : index
    %234 = vector.load %arg15[%c1_164, %c0_165, %c0_166, %c0_167] : memref<2x2x1x16xf32, #tpu.memory_space<vmem>>, vector<1x1x1x16xf32>
    %235 = vector.shape_cast %234 : vector<1x1x1x16xf32> to vector<1x16xf32>
    %236 = vector.broadcast %235 : vector<1x16xf32> to vector<16x16xf32>
    %237 = arith.addf %233, %236 : vector<16x16xf32>
    %cst_168 = arith.constant dense<0.000000e+00> : vector<16x16xf32>
    %238 = tpu.matmul %223, %230, %cst_168 {dimension_numbers = #tpu.dot_dimension_numbers<[1], [1], [0], [0], [0, 0, 1, 0], [], []>, precision = #tpu.contract_precision<fp32>} : vector<16x16xf32>, vector<16x16xf32>, vector<16x16xf32> -> vector<16x16xf32>
    %cst_169 = arith.constant 2.500000e-01 : f32
    %239 = vector.broadcast %cst_169 : f32 to vector<16x16xf32>
    %240 = arith.mulf %238, %239 : vector<16x16xf32>
    %241 = arith.addf %240, %49 : vector<16x16xf32>
    %cst_170 = arith.constant dense<0xFF800000> : vector<16xf32>
    %242 = vector.multi_reduction <maximumf>, %241, %cst_170 [1] : vector<16x16xf32> to vector<16xf32>
    %243 = vector.shape_cast %242 : vector<16xf32> to vector<16x1xf32>
    %244 = vector.broadcast %243 : vector<16x1xf32> to vector<16x16xf32>
    %245 = arith.subf %241, %244 : vector<16x16xf32>
    %246 = math.exp %245 : vector<16x16xf32>
    %cst_171 = arith.constant dense<0.000000e+00> : vector<16xf32>
    %247 = vector.multi_reduction <add>, %246, %cst_171 [1] : vector<16x16xf32> to vector<16xf32>
    %248 = vector.shape_cast %247 : vector<16xf32> to vector<16x1xf32>
    %249 = tpu.reciprocal %248 {approx = true} : vector<16x1xf32> -> vector<16x1xf32>
    %250 = vector.broadcast %249 : vector<16x1xf32> to vector<16x16xf32>
    %251 = arith.mulf %246, %250 : vector<16x16xf32>
    %cst_172 = arith.constant dense<0.000000e+00> : vector<16x16xf32>
    %252 = tpu.matmul %251, %237, %cst_172 {dimension_numbers = #tpu.dot_dimension_numbers<[1], [0], [0], [1], [0, 0, 1, 1], [], []>, precision = #tpu.contract_precision<fp32>} : vector<16x16xf32>, vector<16x16xf32>, vector<16x16xf32> -> vector<16x16xf32>
    %c1_173 = arith.constant 1 : index
    %c0_174 = arith.constant 0 : index
    %c0_175 = arith.constant 0 : index
    %c0_176 = arith.constant 0 : index
    %253 = vector.load %arg16[%c1_173, %c0_174, %c0_175, %c0_176] : memref<2x2x16x32xf32, #tpu.memory_space<vmem>>, vector<1x1x16x32xf32>
    %254 = vector.shape_cast %253 : vector<1x1x16x32xf32> to vector<16x32xf32>
    %cst_177 = arith.constant dense<0.000000e+00> : vector<16x32xf32>
    %255 = tpu.matmul %252, %254, %cst_177 {dimension_numbers = #tpu.dot_dimension_numbers<[1], [0], [0], [1], [0, 0, 1, 1], [], []>, precision = #tpu.contract_precision<fp32>} : vector<16x16xf32>, vector<16x32xf32>, vector<16x32xf32> -> vector<16x32xf32>
    %256 = arith.addf %216, %255 : vector<16x32xf32>
    %c1_178 = arith.constant 1 : index
    %c1_179 = arith.constant 1 : index
    %c0_180 = arith.constant 0 : index
    %c0_181 = arith.constant 0 : index
    %257 = vector.load %arg10[%c1_178, %c1_179, %c0_180, %c0_181] : memref<2x2x32x16xf32, #tpu.memory_space<vmem>>, vector<1x1x32x16xf32>
    %258 = vector.shape_cast %257 : vector<1x1x32x16xf32> to vector<32x16xf32>
    %cst_182 = arith.constant dense<0.000000e+00> : vector<16x16xf32>
    %259 = tpu.matmul %215, %258, %cst_182 {dimension_numbers = #tpu.dot_dimension_numbers<[1], [0], [0], [1], [0, 0, 1, 1], [], []>, precision = #tpu.contract_precision<fp32>} : vector<16x32xf32>, vector<32x16xf32>, vector<16x16xf32> -> vector<16x16xf32>
    %c1_183 = arith.constant 1 : index
    %c1_184 = arith.constant 1 : index
    %c0_185 = arith.constant 0 : index
    %c0_186 = arith.constant 0 : index
    %260 = vector.load %arg11[%c1_183, %c1_184, %c0_185, %c0_186] : memref<2x2x1x16xf32, #tpu.memory_space<vmem>>, vector<1x1x1x16xf32>
    %261 = vector.shape_cast %260 : vector<1x1x1x16xf32> to vector<1x16xf32>
    %262 = vector.broadcast %261 : vector<1x16xf32> to vector<16x16xf32>
    %263 = arith.addf %259, %262 : vector<16x16xf32>
    %c1_187 = arith.constant 1 : index
    %c1_188 = arith.constant 1 : index
    %c0_189 = arith.constant 0 : index
    %c0_190 = arith.constant 0 : index
    %264 = vector.load %arg12[%c1_187, %c1_188, %c0_189, %c0_190] : memref<2x2x32x16xf32, #tpu.memory_space<vmem>>, vector<1x1x32x16xf32>
    %265 = vector.shape_cast %264 : vector<1x1x32x16xf32> to vector<32x16xf32>
    %cst_191 = arith.constant dense<0.000000e+00> : vector<16x16xf32>
    %266 = tpu.matmul %215, %265, %cst_191 {dimension_numbers = #tpu.dot_dimension_numbers<[1], [0], [0], [1], [0, 0, 1, 1], [], []>, precision = #tpu.contract_precision<fp32>} : vector<16x32xf32>, vector<32x16xf32>, vector<16x16xf32> -> vector<16x16xf32>
    %c1_192 = arith.constant 1 : index
    %c1_193 = arith.constant 1 : index
    %c0_194 = arith.constant 0 : index
    %c0_195 = arith.constant 0 : index
    %267 = vector.load %arg13[%c1_192, %c1_193, %c0_194, %c0_195] : memref<2x2x1x16xf32, #tpu.memory_space<vmem>>, vector<1x1x1x16xf32>
    %268 = vector.shape_cast %267 : vector<1x1x1x16xf32> to vector<1x16xf32>
    %269 = vector.broadcast %268 : vector<1x16xf32> to vector<16x16xf32>
    %270 = arith.addf %266, %269 : vector<16x16xf32>
    %c1_196 = arith.constant 1 : index
    %c1_197 = arith.constant 1 : index
    %c0_198 = arith.constant 0 : index
    %c0_199 = arith.constant 0 : index
    %271 = vector.load %arg14[%c1_196, %c1_197, %c0_198, %c0_199] : memref<2x2x32x16xf32, #tpu.memory_space<vmem>>, vector<1x1x32x16xf32>
    %272 = vector.shape_cast %271 : vector<1x1x32x16xf32> to vector<32x16xf32>
    %cst_200 = arith.constant dense<0.000000e+00> : vector<16x16xf32>
    %273 = tpu.matmul %215, %272, %cst_200 {dimension_numbers = #tpu.dot_dimension_numbers<[1], [0], [0], [1], [0, 0, 1, 1], [], []>, precision = #tpu.contract_precision<fp32>} : vector<16x32xf32>, vector<32x16xf32>, vector<16x16xf32> -> vector<16x16xf32>
    %c1_201 = arith.constant 1 : index
    %c1_202 = arith.constant 1 : index
    %c0_203 = arith.constant 0 : index
    %c0_204 = arith.constant 0 : index
    %274 = vector.load %arg15[%c1_201, %c1_202, %c0_203, %c0_204] : memref<2x2x1x16xf32, #tpu.memory_space<vmem>>, vector<1x1x1x16xf32>
    %275 = vector.shape_cast %274 : vector<1x1x1x16xf32> to vector<1x16xf32>
    %276 = vector.broadcast %275 : vector<1x16xf32> to vector<16x16xf32>
    %277 = arith.addf %273, %276 : vector<16x16xf32>
    %cst_205 = arith.constant dense<0.000000e+00> : vector<16x16xf32>
    %278 = tpu.matmul %263, %270, %cst_205 {dimension_numbers = #tpu.dot_dimension_numbers<[1], [1], [0], [0], [0, 0, 1, 0], [], []>, precision = #tpu.contract_precision<fp32>} : vector<16x16xf32>, vector<16x16xf32>, vector<16x16xf32> -> vector<16x16xf32>
    %cst_206 = arith.constant 2.500000e-01 : f32
    %279 = vector.broadcast %cst_206 : f32 to vector<16x16xf32>
    %280 = arith.mulf %278, %279 : vector<16x16xf32>
    %281 = arith.addf %280, %49 : vector<16x16xf32>
    %cst_207 = arith.constant dense<0xFF800000> : vector<16xf32>
    %282 = vector.multi_reduction <maximumf>, %281, %cst_207 [1] : vector<16x16xf32> to vector<16xf32>
    %283 = vector.shape_cast %282 : vector<16xf32> to vector<16x1xf32>
    %284 = vector.broadcast %283 : vector<16x1xf32> to vector<16x16xf32>
    %285 = arith.subf %281, %284 : vector<16x16xf32>
    %286 = math.exp %285 : vector<16x16xf32>
    %cst_208 = arith.constant dense<0.000000e+00> : vector<16xf32>
    %287 = vector.multi_reduction <add>, %286, %cst_208 [1] : vector<16x16xf32> to vector<16xf32>
    %288 = vector.shape_cast %287 : vector<16xf32> to vector<16x1xf32>
    %289 = tpu.reciprocal %288 {approx = true} : vector<16x1xf32> -> vector<16x1xf32>
    %290 = vector.broadcast %289 : vector<16x1xf32> to vector<16x16xf32>
    %291 = arith.mulf %286, %290 : vector<16x16xf32>
    %cst_209 = arith.constant dense<0.000000e+00> : vector<16x16xf32>
    %292 = tpu.matmul %291, %277, %cst_209 {dimension_numbers = #tpu.dot_dimension_numbers<[1], [0], [0], [1], [0, 0, 1, 1], [], []>, precision = #tpu.contract_precision<fp32>} : vector<16x16xf32>, vector<16x16xf32>, vector<16x16xf32> -> vector<16x16xf32>
    %c1_210 = arith.constant 1 : index
    %c1_211 = arith.constant 1 : index
    %c0_212 = arith.constant 0 : index
    %c0_213 = arith.constant 0 : index
    %293 = vector.load %arg16[%c1_210, %c1_211, %c0_212, %c0_213] : memref<2x2x16x32xf32, #tpu.memory_space<vmem>>, vector<1x1x16x32xf32>
    %294 = vector.shape_cast %293 : vector<1x1x16x32xf32> to vector<16x32xf32>
    %cst_214 = arith.constant dense<0.000000e+00> : vector<16x32xf32>
    %295 = tpu.matmul %292, %294, %cst_214 {dimension_numbers = #tpu.dot_dimension_numbers<[1], [0], [0], [1], [0, 0, 1, 1], [], []>, precision = #tpu.contract_precision<fp32>} : vector<16x16xf32>, vector<16x32xf32>, vector<16x32xf32> -> vector<16x32xf32>
    %296 = arith.addf %256, %295 : vector<16x32xf32>
    %c1_215 = arith.constant 1 : index
    %c0_216 = arith.constant 0 : index
    %c0_217 = arith.constant 0 : index
    %297 = vector.load %arg17[%c1_215, %c0_216, %c0_217] : memref<2x1x32xf32, #tpu.memory_space<vmem>>, vector<1x1x32xf32>
    %298 = vector.shape_cast %297 : vector<1x1x32xf32> to vector<1x32xf32>
    %299 = vector.broadcast %298 : vector<1x32xf32> to vector<16x32xf32>
    %300 = arith.addf %296, %299 : vector<16x32xf32>
    %301 = arith.addf %215, %300 : vector<16x32xf32>
    %c1_218 = arith.constant 1 : index
    %c0_219 = arith.constant 0 : index
    %c0_220 = arith.constant 0 : index
    %302 = vector.load %arg18[%c1_218, %c0_219, %c0_220] : memref<2x1x32xf32, #tpu.memory_space<vmem>>, vector<1x1x32xf32>
    %303 = vector.shape_cast %302 : vector<1x1x32xf32> to vector<1x32xf32>
    %c1_221 = arith.constant 1 : index
    %c0_222 = arith.constant 0 : index
    %c0_223 = arith.constant 0 : index
    %304 = vector.load %arg19[%c1_221, %c0_222, %c0_223] : memref<2x1x32xf32, #tpu.memory_space<vmem>>, vector<1x1x32xf32>
    %305 = vector.shape_cast %304 : vector<1x1x32xf32> to vector<1x32xf32>
    %cst_224 = arith.constant dense<0.000000e+00> : vector<16xf32>
    %306 = vector.multi_reduction <add>, %301, %cst_224 [1] : vector<16x32xf32> to vector<16xf32>
    %307 = vector.shape_cast %306 : vector<16xf32> to vector<16x1xf32>
    %cst_225 = arith.constant 3.200000e+01 : f32
    %308 = vector.broadcast %cst_225 : f32 to vector<16x1xf32>
    %309 = arith.divf %307, %308 : vector<16x1xf32>
    %310 = vector.broadcast %309 : vector<16x1xf32> to vector<16x32xf32>
    %311 = arith.subf %301, %310 : vector<16x32xf32>
    %312 = arith.mulf %311, %311 : vector<16x32xf32>
    %cst_226 = arith.constant dense<0.000000e+00> : vector<16xf32>
    %313 = vector.multi_reduction <add>, %312, %cst_226 [1] : vector<16x32xf32> to vector<16xf32>
    %314 = vector.shape_cast %313 : vector<16xf32> to vector<16x1xf32>
    %cst_227 = arith.constant 3.200000e+01 : f32
    %315 = vector.broadcast %cst_227 : f32 to vector<16x1xf32>
    %316 = arith.divf %314, %315 : vector<16x1xf32>
    %317 = vector.broadcast %309 : vector<16x1xf32> to vector<16x32xf32>
    %318 = arith.subf %301, %317 : vector<16x32xf32>
    %cst_228 = arith.constant 9.99999996E-13 : f32
    %319 = vector.broadcast %cst_228 : f32 to vector<16x1xf32>
    %320 = arith.addf %316, %319 : vector<16x1xf32>
    %321 = math.rsqrt %320 : vector<16x1xf32>
    %322 = vector.broadcast %321 : vector<16x1xf32> to vector<16x32xf32>
    %323 = arith.mulf %318, %322 : vector<16x32xf32>
    %324 = vector.broadcast %303 : vector<1x32xf32> to vector<16x32xf32>
    %325 = arith.mulf %323, %324 : vector<16x32xf32>
    %326 = vector.broadcast %305 : vector<1x32xf32> to vector<16x32xf32>
    %327 = arith.addf %325, %326 : vector<16x32xf32>
    %c1_229 = arith.constant 1 : index
    %c0_230 = arith.constant 0 : index
    %c0_231 = arith.constant 0 : index
    %328 = vector.load %arg20[%c1_229, %c0_230, %c0_231] : memref<2x32x64xf32, #tpu.memory_space<vmem>>, vector<1x32x64xf32>
    %329 = vector.shape_cast %328 : vector<1x32x64xf32> to vector<32x64xf32>
    %cst_232 = arith.constant dense<0.000000e+00> : vector<16x64xf32>
    %330 = tpu.matmul %327, %329, %cst_232 {dimension_numbers = #tpu.dot_dimension_numbers<[1], [0], [0], [1], [0, 0, 1, 1], [], []>, precision = #tpu.contract_precision<fp32>} : vector<16x32xf32>, vector<32x64xf32>, vector<16x64xf32> -> vector<16x64xf32>
    %c1_233 = arith.constant 1 : index
    %c0_234 = arith.constant 0 : index
    %c0_235 = arith.constant 0 : index
    %331 = vector.load %arg21[%c1_233, %c0_234, %c0_235] : memref<2x1x64xf32, #tpu.memory_space<vmem>>, vector<1x1x64xf32>
    %332 = vector.shape_cast %331 : vector<1x1x64xf32> to vector<1x64xf32>
    %333 = vector.broadcast %332 : vector<1x64xf32> to vector<16x64xf32>
    %334 = arith.addf %330, %333 : vector<16x64xf32>
    %335 = arith.mulf %334, %334 : vector<16x64xf32>
    %336 = arith.mulf %334, %335 : vector<16x64xf32>
    %cst_236 = arith.constant 4.471500e-02 : f32
    %337 = vector.broadcast %cst_236 : f32 to vector<16x64xf32>
    %338 = arith.mulf %337, %336 : vector<16x64xf32>
    %339 = arith.addf %334, %338 : vector<16x64xf32>
    %cst_237 = arith.constant 0.797884583 : f32
    %340 = vector.broadcast %cst_237 : f32 to vector<16x64xf32>
    %341 = arith.mulf %340, %339 : vector<16x64xf32>
    %342 = math.tanh %341 : vector<16x64xf32>
    %cst_238 = arith.constant 1.000000e+00 : f32
    %343 = vector.broadcast %cst_238 : f32 to vector<16x64xf32>
    %344 = arith.addf %343, %342 : vector<16x64xf32>
    %cst_239 = arith.constant 5.000000e-01 : f32
    %345 = vector.broadcast %cst_239 : f32 to vector<16x64xf32>
    %346 = arith.mulf %345, %344 : vector<16x64xf32>
    %347 = arith.mulf %334, %346 : vector<16x64xf32>
    %c1_240 = arith.constant 1 : index
    %c0_241 = arith.constant 0 : index
    %c0_242 = arith.constant 0 : index
    %348 = vector.load %arg22[%c1_240, %c0_241, %c0_242] : memref<2x64x32xf32, #tpu.memory_space<vmem>>, vector<1x64x32xf32>
    %349 = vector.shape_cast %348 : vector<1x64x32xf32> to vector<64x32xf32>
    %cst_243 = arith.constant dense<0.000000e+00> : vector<16x32xf32>
    %350 = tpu.matmul %347, %349, %cst_243 {dimension_numbers = #tpu.dot_dimension_numbers<[1], [0], [0], [1], [0, 0, 1, 1], [], []>, precision = #tpu.contract_precision<fp32>} : vector<16x64xf32>, vector<64x32xf32>, vector<16x32xf32> -> vector<16x32xf32>
    %c1_244 = arith.constant 1 : index
    %c0_245 = arith.constant 0 : index
    %c0_246 = arith.constant 0 : index
    %351 = vector.load %arg23[%c1_244, %c0_245, %c0_246] : memref<2x1x32xf32, #tpu.memory_space<vmem>>, vector<1x1x32xf32>
    %352 = vector.shape_cast %351 : vector<1x1x32xf32> to vector<1x32xf32>
    %353 = vector.broadcast %352 : vector<1x32xf32> to vector<16x32xf32>
    %354 = arith.addf %350, %353 : vector<16x32xf32>
    %355 = arith.addf %327, %354 : vector<16x32xf32>
    %c1_247 = arith.constant 1 : index
    %c0_248 = arith.constant 0 : index
    %c0_249 = arith.constant 0 : index
    %356 = vector.load %arg24[%c1_247, %c0_248, %c0_249] : memref<2x1x32xf32, #tpu.memory_space<vmem>>, vector<1x1x32xf32>
    %357 = vector.shape_cast %356 : vector<1x1x32xf32> to vector<1x32xf32>
    %c1_250 = arith.constant 1 : index
    %c0_251 = arith.constant 0 : index
    %c0_252 = arith.constant 0 : index
    %358 = vector.load %arg25[%c1_250, %c0_251, %c0_252] : memref<2x1x32xf32, #tpu.memory_space<vmem>>, vector<1x1x32xf32>
    %359 = vector.shape_cast %358 : vector<1x1x32xf32> to vector<1x32xf32>
    %cst_253 = arith.constant dense<0.000000e+00> : vector<16xf32>
    %360 = vector.multi_reduction <add>, %355, %cst_253 [1] : vector<16x32xf32> to vector<16xf32>
    %361 = vector.shape_cast %360 : vector<16xf32> to vector<16x1xf32>
    %cst_254 = arith.constant 3.200000e+01 : f32
    %362 = vector.broadcast %cst_254 : f32 to vector<16x1xf32>
    %363 = arith.divf %361, %362 : vector<16x1xf32>
    %364 = vector.broadcast %363 : vector<16x1xf32> to vector<16x32xf32>
    %365 = arith.subf %355, %364 : vector<16x32xf32>
    %366 = arith.mulf %365, %365 : vector<16x32xf32>
    %cst_255 = arith.constant dense<0.000000e+00> : vector<16xf32>
    %367 = vector.multi_reduction <add>, %366, %cst_255 [1] : vector<16x32xf32> to vector<16xf32>
    %368 = vector.shape_cast %367 : vector<16xf32> to vector<16x1xf32>
    %cst_256 = arith.constant 3.200000e+01 : f32
    %369 = vector.broadcast %cst_256 : f32 to vector<16x1xf32>
    %370 = arith.divf %368, %369 : vector<16x1xf32>
    %371 = vector.broadcast %363 : vector<16x1xf32> to vector<16x32xf32>
    %372 = arith.subf %355, %371 : vector<16x32xf32>
    %cst_257 = arith.constant 9.99999996E-13 : f32
    %373 = vector.broadcast %cst_257 : f32 to vector<16x1xf32>
    %374 = arith.addf %370, %373 : vector<16x1xf32>
    %375 = math.rsqrt %374 : vector<16x1xf32>
    %376 = vector.broadcast %375 : vector<16x1xf32> to vector<16x32xf32>
    %377 = arith.mulf %372, %376 : vector<16x32xf32>
    %378 = vector.broadcast %357 : vector<1x32xf32> to vector<16x32xf32>
    %379 = arith.mulf %377, %378 : vector<16x32xf32>
    %380 = vector.broadcast %359 : vector<1x32xf32> to vector<16x32xf32>
    %381 = arith.addf %379, %380 : vector<16x32xf32>
    %c0_258 = arith.constant 0 : index
    %c0_259 = arith.constant 0 : index
    %382 = vector.load %arg26[%c0_258, %c0_259] : memref<16x32xf32, #tpu.memory_space<vmem>>, vector<16x32xf32>
    tpu.vector_store %arg26[%c0_258, %c0_259], %381 {strides = array<i32>} : memref<16x32xf32, #tpu.memory_space<vmem>>, vector<16x32xf32>,
    return
  }
  func.func @transform_0(%arg0: i32) -> (i32, i32) {
    %c0_i32 = arith.constant 0 : i32
    %c0_i32_0 = arith.constant 0 : i32
    %c0_i32_1 = arith.constant 0 : i32
    return %c0_i32, %c0_i32_0 : i32, i32
  }
  func.func @transform_1(%arg0: i32) -> (i32, i32) {
    %c0_i32 = arith.constant 0 : i32
    %c0_i32_0 = arith.constant 0 : i32
    %c0_i32_1 = arith.constant 0 : i32
    return %c0_i32, %c0_i32_0 : i32, i32
  }
  func.func @transform_2(%arg0: i32) -> (i32, i32) {
    %c0_i32 = arith.constant 0 : i32
    %c0_i32_0 = arith.constant 0 : i32
    %c0_i32_1 = arith.constant 0 : i32
    return %c0_i32, %c0_i32_0 : i32, i32
  }
  func.func @transform_3(%arg0: i32) -> (i32, i32) {
    %c0_i32 = arith.constant 0 : i32
    %c0_i32_0 = arith.constant 0 : i32
    %c0_i32_1 = arith.constant 0 : i32
    return %c0_i32, %c0_i32_0 : i32, i32
  }
  func.func @transform_4(%arg0: i32) -> (i32, i32) {
    %c0_i32 = arith.constant 0 : i32
    %c0_i32_0 = arith.constant 0 : i32
    %c0_i32_1 = arith.constant 0 : i32
    return %c0_i32, %c0_i32_0 : i32, i32
  }
  func.func @transform_5(%arg0: i32) -> (i32, i32) {
    %c0_i32 = arith.constant 0 : i32
    %c0_i32_0 = arith.constant 0 : i32
    %c0_i32_1 = arith.constant 0 : i32
    return %c0_i32, %c0_i32_0 : i32, i32
  }
  func.func @transform_6(%arg0: i32) -> (i32, i32) {
    %c0_i32 = arith.constant 0 : i32
    %c0_i32_0 = arith.constant 0 : i32
    %c0_i32_1 = arith.constant 0 : i32
    return %c0_i32, %c0_i32_0 : i32, i32
  }
  func.func @transform_7(%arg0: i32) -> (i32, i32) {
    %c0_i32 = arith.constant 0 : i32
    %c0_i32_0 = arith.constant 0 : i32
    %c0_i32_1 = arith.constant 0 : i32
    return %c0_i32, %c0_i32_0 : i32, i32
  }
  func.func @transform_8(%arg0: i32) -> (i32, i32) {
    %c0_i32 = arith.constant 0 : i32
    %c0_i32_0 = arith.constant 0 : i32
    %c0_i32_1 = arith.constant 0 : i32
    return %c0_i32, %c0_i32_0 : i32, i32
  }
  func.func @transform_9(%arg0: i32) -> (i32, i32, i32, i32) {
    %c0_i32 = arith.constant 0 : i32
    %c0_i32_0 = arith.constant 0 : i32
    %c0_i32_1 = arith.constant 0 : i32
    %c0_i32_2 = arith.constant 0 : i32
    %c0_i32_3 = arith.constant 0 : i32
    return %c0_i32, %c0_i32_0, %c0_i32_1, %c0_i32_2 : i32, i32, i32, i32
  }
  func.func @transform_10(%arg0: i32) -> (i32, i32, i32, i32) {
    %c0_i32 = arith.constant 0 : i32
    %c0_i32_0 = arith.constant 0 : i32
    %c0_i32_1 = arith.constant 0 : i32
    %c0_i32_2 = arith.constant 0 : i32
    %c0_i32_3 = arith.constant 0 : i32
    return %c0_i32, %c0_i32_0, %c0_i32_1, %c0_i32_2 : i32, i32, i32, i32
  }
  func.func @transform_11(%arg0: i32) -> (i32, i32, i32, i32) {
    %c0_i32 = arith.constant 0 : i32
    %c0_i32_0 = arith.constant 0 : i32
    %c0_i32_1 = arith.constant 0 : i32
    %c0_i32_2 = arith.constant 0 : i32
    %c0_i32_3 = arith.constant 0 : i32
    return %c0_i32, %c0_i32_0, %c0_i32_1, %c0_i32_2 : i32, i32, i32, i32
  }
  func.func @transform_12(%arg0: i32) -> (i32, i32, i32, i32) {
    %c0_i32 = arith.constant 0 : i32
    %c0_i32_0 = arith.constant 0 : i32
    %c0_i32_1 = arith.constant 0 : i32
    %c0_i32_2 = arith.constant 0 : i32
    %c0_i32_3 = arith.constant 0 : i32
    return %c0_i32, %c0_i32_0, %c0_i32_1, %c0_i32_2 : i32, i32, i32, i32
  }
  func.func @transform_13(%arg0: i32) -> (i32, i32, i32, i32) {
    %c0_i32 = arith.constant 0 : i32
    %c0_i32_0 = arith.constant 0 : i32
    %c0_i32_1 = arith.constant 0 : i32
    %c0_i32_2 = arith.constant 0 : i32
    %c0_i32_3 = arith.constant 0 : i32
    return %c0_i32, %c0_i32_0, %c0_i32_1, %c0_i32_2 : i32, i32, i32, i32
  }
  func.func @transform_14(%arg0: i32) -> (i32, i32, i32, i32) {
    %c0_i32 = arith.constant 0 : i32
    %c0_i32_0 = arith.constant 0 : i32
    %c0_i32_1 = arith.constant 0 : i32
    %c0_i32_2 = arith.constant 0 : i32
    %c0_i32_3 = arith.constant 0 : i32
    return %c0_i32, %c0_i32_0, %c0_i32_1, %c0_i32_2 : i32, i32, i32, i32
  }
  func.func @transform_15(%arg0: i32) -> (i32, i32, i32, i32) {
    %c0_i32 = arith.constant 0 : i32
    %c0_i32_0 = arith.constant 0 : i32
    %c0_i32_1 = arith.constant 0 : i32
    %c0_i32_2 = arith.constant 0 : i32
    %c0_i32_3 = arith.constant 0 : i32
    return %c0_i32, %c0_i32_0, %c0_i32_1, %c0_i32_2 : i32, i32, i32, i32
  }
  func.func @transform_16(%arg0: i32) -> (i32, i32, i32) {
    %c0_i32 = arith.constant 0 : i32
    %c0_i32_0 = arith.constant 0 : i32
    %c0_i32_1 = arith.constant 0 : i32
    %c0_i32_2 = arith.constant 0 : i32
    return %c0_i32, %c0_i32_0, %c0_i32_1 : i32, i32, i32
  }
  func.func @transform_17(%arg0: i32) -> (i32, i32, i32) {
    %c0_i32 = arith.constant 0 : i32
    %c0_i32_0 = arith.constant 0 : i32
    %c0_i32_1 = arith.constant 0 : i32
    %c0_i32_2 = arith.constant 0 : i32
    return %c0_i32, %c0_i32_0, %c0_i32_1 : i32, i32, i32
  }
  func.func @transform_18(%arg0: i32) -> (i32, i32, i32) {
    %c0_i32 = arith.constant 0 : i32
    %c0_i32_0 = arith.constant 0 : i32
    %c0_i32_1 = arith.constant 0 : i32
    %c0_i32_2 = arith.constant 0 : i32
    return %c0_i32, %c0_i32_0, %c0_i32_1 : i32, i32, i32
  }
  func.func @transform_19(%arg0: i32) -> (i32, i32, i32) {
    %c0_i32 = arith.constant 0 : i32
    %c0_i32_0 = arith.constant 0 : i32
    %c0_i32_1 = arith.constant 0 : i32
    %c0_i32_2 = arith.constant 0 : i32
    return %c0_i32, %c0_i32_0, %c0_i32_1 : i32, i32, i32
  }
  func.func @transform_20(%arg0: i32) -> (i32, i32, i32) {
    %c0_i32 = arith.constant 0 : i32
    %c0_i32_0 = arith.constant 0 : i32
    %c0_i32_1 = arith.constant 0 : i32
    %c0_i32_2 = arith.constant 0 : i32
    return %c0_i32, %c0_i32_0, %c0_i32_1 : i32, i32, i32
  }
  func.func @transform_21(%arg0: i32) -> (i32, i32, i32) {
    %c0_i32 = arith.constant 0 : i32
    %c0_i32_0 = arith.constant 0 : i32
    %c0_i32_1 = arith.constant 0 : i32
    %c0_i32_2 = arith.constant 0 : i32
    return %c0_i32, %c0_i32_0, %c0_i32_1 : i32, i32, i32
  }
  func.func @transform_22(%arg0: i32) -> (i32, i32, i32) {
    %c0_i32 = arith.constant 0 : i32
    %c0_i32_0 = arith.constant 0 : i32
    %c0_i32_1 = arith.constant 0 : i32
    %c0_i32_2 = arith.constant 0 : i32
    return %c0_i32, %c0_i32_0, %c0_i32_1 : i32, i32, i32
  }
  func.func @transform_23(%arg0: i32) -> (i32, i32, i32) {
    %c0_i32 = arith.constant 0 : i32
    %c0_i32_0 = arith.constant 0 : i32
    %c0_i32_1 = arith.constant 0 : i32
    %c0_i32_2 = arith.constant 0 : i32
    return %c0_i32, %c0_i32_0, %c0_i32_1 : i32, i32, i32
  }
  func.func @transform_24(%arg0: i32) -> (i32, i32, i32) {
    %c0_i32 = arith.constant 0 : i32
    %c0_i32_0 = arith.constant 0 : i32
    %c0_i32_1 = arith.constant 0 : i32
    %c0_i32_2 = arith.constant 0 : i32
    return %c0_i32, %c0_i32_0, %c0_i32_1 : i32, i32, i32
  }
  func.func @transform_25(%arg0: i32) -> (i32, i32) {
    %c0_i32 = arith.constant 0 : i32
    %c0_i32_0 = arith.constant 0 : i32
    %c0_i32_1 = arith.constant 0 : i32
    return %c0_i32, %c0_i32_0 : i32, i32
  }
}

</mosaic_0001>

<bundles_post_ra>
// kernel: eq.8
= control target key start
LH: loop header
LB: loop body
LE: loop exit
PB: predicated region body
PF: predicated region fallthrough
CT: control target
= control target key end

     0   :  { %vm7_vm0 = vcmask 64512   ;;  %vm13_vm1 = vcmask 130112   ;;  %s39_s0 = inlined_call_operand.vmem [shape: s32[2,8], index: 0, kind: input, shape index: {}]   ;;  %s40_s1 = inlined_call_operand.vmem [shape: s32[16], index: 1, kind: output, shape index: {}]  }
   0x1   :  { %v4_v0 = vld [vmem:[%s39_s0] sm:$0x3]  ;;  %s22_s0 = smov 8  }
   0x2   :  { %5 = vst [vmem:[#allocation1] sm:$0x3] %v4_v0 }
   0x9   :  { %v10_v1 = vld [vmem:[#allocation1 + $0x1] sm:$0x1]   ;;  %v6_v2 = vld [vmem:[#allocation1] sm:$0x1]  }
   0xa   :  { %11 = vrot.lane.b32.xlu0 %v10_v1, %s22_s0  ;;  %8 = vst.msk [vmem:[#allocation0] sm:$0x1] %vm7_vm0, %v6_v2  }
  0x7c   :  { %v12_v3 = vpop.permute.xlu0 %11  }
  0x7d   :  { %14 = vst.msk [vmem:[#allocation0] sm:$0x1] %vm13_vm1, %v12_v3  }
  0x84   :  { %v17_v4 = vld [vmem:[#allocation0] sm:$0x1] }
  0x85   :  { %20 = vst [vmem:[%s40_s1] sm:$0x1] %v17_v4 }

// kernel: speech_forward.1
= control target key start
LH: loop header
LB: loop body
LE: loop exit
PB: predicated region body
PF: predicated region fallthrough
CT: control target
= control target key end

     0   :  { %s9526_s0 = inlined_call_operand.vmem [shape: s32[16,1], index: 0, kind: input, shape index: {}]   ;;  %s9527_s1 = inlined_call_operand.vmem [shape: s32[16,1], index: 1, kind: input, shape index: {}]   ;;  %s9528_s2 = inlined_call_operand.vmem [shape: s32[16,1], index: 2, kind: input, shape index: {}]   ;;  %s9529_s3 = inlined_call_operand.vmem [shape: s32[16,1], index: 3, kind: input, shape index: {}]   ;;  %s9530_s4 = inlined_call_operand.vmem [shape: f32[16,16], index: 4, kind: input, shape index: {}]   ;;  %s9531_s5 = inlined_call_operand.vmem [shape: f32[96,32], index: 5, kind: input, shape index: {}]   ;;  %s9532_s6 = inlined_call_operand.vmem [shape: f32[28,32], index: 6, kind: input, shape index: {}]   ;;  %s9533_s7 = inlined_call_operand.vmem [shape: f32[1,32], index: 7, kind: input, shape index: {}]   ;;  %s9534_s8 = inlined_call_operand.vmem [shape: f32[1,32], index: 8, kind: input, shape index: {}]   ;;  %s9535_s9 = inlined_call_operand.vmem [shape: f32[2,2,32,16], index: 9, kind: input, shape index: {}]   ;;  %s9536_s10 = inlined_call_operand.vmem [shape: f32[2,2,1,16], index: 10, kind: input, shape index: {}]   ;;  %s9537_s11 = inlined_call_operand.vmem [shape: f32[2,2,32,16], index: 11, kind: input, shape index: {}]   ;;  %s9538_s12 = inlined_call_operand.vmem [shape: f32[2,2,1,16], index: 12, kind: input, shape index: {}]   ;;  %s9539_s13 = inlined_call_operand.vmem [shape: f32[2,2,32,16], index: 13, kind: input, shape index: {}]   ;;  %s9540_s14 = inlined_call_operand.vmem [shape: f32[2,2,1,16], index: 14, kind: input, shape index: {}]   ;;  %s9541_s15 = inlined_call_operand.vmem [shape: f32[2,2,16,32], index: 15, kind: input, shape index: {}]   ;;  %s9542_s16 = inlined_call_operand.vmem [shape: f32[2,1,32], index: 16, kind: input, shape index: {}]   ;;  %s9543_s17 = inlined_call_operand.vmem [shape: f32[2,1,32], index: 17, kind: input, shape index: {}]   ;;  %s9544_s18 = inlined_call_operand.vmem [shape: f32[2,1,32], index: 18, kind: input, shape index: {}]   ;;  %s9545_s19 = inlined_call_operand.vmem [shape: f32[2,32,64], index: 19, kind: input, shape index: {}]   ;;  %s9546_s20 = inlined_call_operand.vmem [shape: f32[2,1,64], index: 20, kind: input, shape index: {}]   ;;  %s9547_s21 = inlined_call_operand.vmem [shape: f32[2,64,32], index: 21, kind: input, shape index: {}]   ;;  %s9548_s22 = inlined_call_operand.vmem [shape: f32[2,1,32], index: 22, kind: input, shape index: {}]   ;;  %s9549_s23 = inlined_call_operand.vmem [shape: f32[2,1,32], index: 23, kind: input, shape index: {}]   ;;  %s9550_s24 = inlined_call_operand.vmem [shape: f32[2,1,32], index: 24, kind: input, shape index: {}]   ;;  %s9551_s25 = inlined_call_operand.hbm [shape: f32[16,32], index: 25, kind: output, shape index: {}]  }
   0x1   :  { %9561 = sst [smem:[#allocation5_spill]] %s9526_s0 }
   0x2   :  { %9562 = sst [smem:[#allocation6_spill]] %s9527_s1 }
   0x3   :  { %9563 = sst [smem:[#allocation7_spill]] %s9528_s2 }
   0x4   :  { %9564 = sst [smem:[#allocation8_spill]] %s9529_s3 }
   0x5   :  { %9565 = sst [smem:[#allocation9_spill]] %s9530_s4 }
   0x6   :  { %9566 = sst [smem:[#allocation10_spill]] %s9531_s5 }
   0x7   :  { %9567 = sst [smem:[#allocation11_spill]] %s9532_s6 }
   0x8   :  { %9568 = sst [smem:[#allocation12_spill]] %s9533_s7 }
   0x9   :  { %9569 = sst [smem:[#allocation13_spill]] %s9534_s8 }
   0xa   :  { %9570 = sst [smem:[#allocation14_spill]] %s9535_s9 }
   0xb   :  { %9571 = sst [smem:[#allocation15_spill]] %s9546_s20 }
   0xc   :  { %s9572_s6 = sld [smem:[#allocation7_spill]]  ;;  %v7538_v2 = vmov 0  }
   0xd   :  { %s9573_s20 = sld [smem:[#allocation5_spill]]  ;;  %7418 = vset.pattern.permute.xlu1 %v7538_v2  ;;  %7417 = vset.pattern.permute.xlu0 %v7538_v2 }
   0xe   :  { %s9574_s1 = sld [smem:[#allocation6_spill]]  ;;  %7419 = vset.pattern.permute.xlu2 %v7538_v2 }
   0xf   :  { %s9575_s4 = sld [smem:[#allocation10_spill]] }
  0x10   :  { %s9576_s26 = sld [smem:[#allocation8_spill]] }
  0x12   :  { %v105_v0 = vld [vmem:[%s9572_s6] sm:$0xff]  ;;  %v106_v33 = vld [vmem:[%s9572_s6 + $0x8] sm:$0xff] }
  0x13   :  { %v83_v1 = vld [vmem:[%s9573_s20] sm:$0xff]  ;;  %108 = vperm.xlu1 %7418, %v105_v0   ;;  %v84_v20 = vld [vmem:[%s9573_s20 + $0x8] sm:$0xff] }
  0x14   :  { %86 = vperm.xlu0 %7417, %v83_v1   ;;  %v94_v3 = vld [vmem:[%s9574_s1 + $0x8] sm:$0xff]  ;;  %v93_v25 = vld [vmem:[%s9574_s1] sm:$0xff] }
  0x15   :  { %v132_v4 = vld [vmem:[%s9575_s4 + $0x58] sm:$0xff]  ;;  %v131_v6 = vld [vmem:[%s9575_s4 + $0x50] sm:$0xff]  ;;  %v130_v7 = vld [vmem:[%s9575_s4 + $0x48] sm:$0xff]  ;;  %99 = vperm.xlu2 %7419, %v94_v3  }
  0x16   :  { %v7686_v5 = vand.u32 4294901760, %v132_v4  ;;  %v129_v8 = vld [vmem:[%s9575_s4 + $0x40] sm:$0xff]  ;;  %v7697_v9 = vand.u32 4294901760, %v131_v6  ;;  %v7699_v10 = vand.u32 4294901760, %v130_v7  ;;  %v128_v12 = vld [vmem:[%s9575_s4 + $0x38] sm:$0xff]  ;;  %v127_v13 = vld [vmem:[%s9575_s4 + $0x30] sm:$0xff] }
  0x17   :  { %v7701_v11 = vand.u32 4294901760, %v129_v8  ;;  %v126_v14 = vld [vmem:[%s9575_s4 + $0x28] sm:$0xff]  ;;  %v7715_v16 = vand.u32 4294901760, %v128_v12  ;;  %v7718_v17 = vand.u32 4294901760, %v127_v13  ;;  %v125_v19 = vld [vmem:[%s9575_s4 + $0x20] sm:$0xff]  ;;  %v124_v41 = vld [vmem:[%s9575_s4 + $0x18] sm:$0xff] }
  0x18   :  { %v7713_v15 = vsub.f32 %v132_v4, %v7686_v5  ;;  %145 = vmatpush.msra.mxu0 %v7686_v5  ;;  %v7720_v18 = vand.u32 4294901760, %v126_v14  ;;  %326 = vmatpush.msra.mxu3 %v7686_v5  ;;  %v7730_v21 = vsub.f32 %v131_v6, %v7697_v9  ;;  %v7733_v22 = vsub.f32 %v130_v7, %v7699_v10  ;;  %v525_v46 = vld [vmem:[%s9576_s26 + $0x8] sm:$0xff]  ;;  %v524_v47 = vld [vmem:[%s9576_s26] sm:$0xff] }
  0x19   :  { %v7736_v23 = vsub.f32 %v129_v8, %v7701_v11  ;;  %v7738_v24 = vand.u32 4294901760, %v125_v19  ;;  %v7745_v27 = vsub.f32 %v128_v12, %v7715_v16  ;;  %v7748_v28 = vsub.f32 %v127_v13, %v7718_v17 }
  0x1a   :  { %v191_v26 = vand.u32 4294901760, %v7713_v15  ;;  %276 = vmatpush.msra.mxu2 %v7713_v15  ;;  %147 = vmatpush.msra.mxu0 %v7697_v9  ;;  %v197_v29 = vand.u32 4294901760, %v7730_v21  ;;  %v203_v30 = vand.u32 4294901760, %v7733_v22  ;;  %v7756_v32 = vsub.f32 %v126_v14, %v7720_v18 }
  0x1b   :  { %v209_v31 = vand.u32 4294901760, %v7736_v23  ;;  %328 = vmatpush.msra.mxu3 %v7697_v9  ;;  %v215_v35 = vand.u32 4294901760, %v7745_v27  ;;  %v221_v36 = vand.u32 4294901760, %v7748_v28  ;;  %v7770_v37 = vsub.f32 %v125_v19, %v7738_v24  ;;  %89 = vperm.xlu1 %7418, %v84_v20  }
  0x1c   :  { %v192_v34 = vsub.f32 %v7713_v15, %v191_v26  ;;  %279 = vmatpush.msra.mxu2 %v7730_v21  ;;  %149 = vmatpush.msra.mxu0 %v7699_v10  ;;  %v198_v38 = vsub.f32 %v7730_v21, %v197_v29  ;;  %v204_v39 = vsub.f32 %v7733_v22, %v203_v30  ;;  %v227_v45 = vand.u32 4294901760, %v7756_v32 }
  0x1d   :  { %96 = vperm.xlu0 %7417, %v93_v25   ;;  %v210_v40 = vsub.f32 %v7736_v23, %v209_v31  ;;  %v216_v43 = vsub.f32 %v7745_v27, %v215_v35  ;;  %111 = vperm.xlu2 %7419, %v106_v33   ;;  %v222_v49 = vsub.f32 %v7748_v28, %v221_v36  ;;  %v233_v50 = vand.u32 4294901760, %v7770_v37 }
  0x1e   :  { %v193_v42 = vand.u32 4294901760, %v192_v34  ;;  %282 = vmatpush.msra.mxu2 %v7733_v22  ;;  %151 = vmatpush.msra.mxu0 %v7701_v11  ;;  %v199_v44 = vand.u32 4294901760, %v198_v38  ;;  %v205_v48 = vand.u32 4294901760, %v204_v39  ;;  %v7801_v51 = vand.u32 4294901760, %v124_v41 }
  0x1f   :  { %330 = vmatpush.msra.mxu3 %v7699_v10  ;;  %v211_v52 = vand.u32 4294901760, %v210_v40  ;;  %v217_v53 = vand.u32 4294901760, %v216_v43  ;;  %v223_v55 = vand.u32 4294901760, %v222_v49  ;;  %v228_v56 = vsub.f32 %v7756_v32, %v227_v45 }
  0x20   :  { %194 = vmatpush.msra.mxu1 %v193_v42  ;;  %285 = vmatpush.msra.mxu2 %v7736_v23  ;;  %v7807_v54 = vsub.f32 %v124_v41, %v7801_v51  ;;  %v234_v58 = vsub.f32 %v7770_v37, %v233_v50 }
  0x21   :  { %153 = vmatpush.msra.mxu0 %v7715_v16  ;;  %332 = vmatpush.msra.mxu3 %v7701_v11 }
  0x22   :  { %200 = vmatpush.msra.mxu1 %v199_v44  ;;  %288 = vmatpush.msra.mxu2 %v7745_v27  ;;  %v239_v57 = vand.u32 4294901760, %v7807_v54 }
  0x23   :  { %155 = vmatpush.msra.mxu0 %v7718_v17  ;;  %334 = vmatpush.msra.mxu3 %v7715_v16 }
  0x24   :  { %206 = vmatpush.msra.mxu1 %v205_v48  ;;  %291 = vmatpush.msra.mxu2 %v7748_v28 }
  0x25   :  { %530 = vperm.xlu1 %7418, %v525_v46   ;;  %527 = vperm.xlu0 %7417, %v524_v47  }
  0x26   :  { %212 = vmatpush.msra.mxu1 %v211_v52  ;;  %157 = vmatpush.msra.mxu0 %v7720_v18 }
  0x27   :  { %30 = vsyncpa [#allocation3], 0  ;;  %294 = vmatpush.msra.mxu2 %v7756_v32  ;;  %336 = vmatpush.msra.mxu3 %v7718_v17  ;;  %v229_v59 = vand.u32 4294901760, %v228_v56  ;;  %v240_v60 = vsub.f32 %v7807_v54, %v239_v57  ;;  %v235_v61 = vand.u32 4294901760, %v234_v58  ;;  %v123_v63 = vld [vmem:[%s9575_s4 + $0x10] sm:$0xff]  ;;  %v122_v1 = vld [vmem:[%s9575_s4 + $0x8] sm:$0xff]  ;;  %v81_v44 = vlaneseq }
  0x28   :  { %218 = vmatpush.msra.mxu1 %v217_v53  ;;  %159 = vmatpush.msra.mxu0 %v7738_v24  ;;  %v7836_v0 = vand.u32 4294901760, %v123_v63  ;;  %v7842_v3 = vand.u32 4294901760, %v122_v1  ;;  %v121_v4 = vld [vmem:[%s9575_s4] sm:$0xff]  ;;  %s9577_s1 = sld [smem:[#allocation11_spill]]  ;;  %vm549_vm0 = vcmask 1043456   ;;  %vm133_vm9 = vcmask 785408  }
  0x29   :  { %297 = vmatpush.msra.mxu2 %v7770_v37  ;;  %338 = vmatpush.msra.mxu3 %v7720_v18  ;;  %v241_v62 = vand.u32 4294901760, %v240_v60  ;;  %v7850_v8 = vand.u32 4294901760, %v121_v4  ;;  %v82_v46 = vand.u32 127, %v81_v44  ;;  %vm542_vm12 = vcmask 228352   ;;  %s9578_s9 = sld [smem:[#allocation14_spill]] }
  0x2a   :  { %224 = vmatpush.msra.mxu1 %v223_v55  ;;  %161 = vmatpush.msra.mxu0 %v7801_v51  ;;  %v244_v2 = vsub.f32 %v123_v63, %v7836_v0  ;;  %v250_v7 = vsub.f32 %v122_v1, %v7842_v3  ;;  %vm462_vm15 = vcmask 261120   ;;  %s9579_s0 = sld [smem:[#allocation12_spill]] }
  0x2b   :  { %300 = vmatpush.msra.mxu2 %v7807_v54  ;;  %340 = vmatpush.msra.mxu3 %v7738_v24  ;;  %v256_v14 = vsub.f32 %v121_v4, %v7850_v8  ;;  %s9580_s4 = sld [smem:[#allocation13_spill]] }
  0x2c   :  { %230 = vmatpush.msra.mxu1 %v229_v59  ;;  %163 = vmatpush.msra.mxu0 %v7836_v0  ;;  %v245_v6 = vand.u32 4294901760, %v244_v2  ;;  %v251_v13 = vand.u32 4294901760, %v250_v7  ;;  %s9582_s29 = sld [smem:[#allocation15_spill]] }
  0x2d   :  { %342 = vmatpush.msra.mxu3 %v7801_v51  ;;  %303 = vmatpush.msra.mxu2 %v244_v2  ;;  %v257_v25 = vand.u32 4294901760, %v256_v14 }
  0x2e   :  { %236 = vmatpush.msra.mxu1 %v235_v61  ;;  %165 = vmatpush.msra.mxu0 %v7842_v3  ;;  %v246_v12 = vsub.f32 %v244_v2, %v245_v6  ;;  %v252_v20 = vsub.f32 %v250_v7, %v251_v13  ;;  %v538_v23 = vld [vmem:[%s9577_s1] sm:$0xff] }
  0x2f   :  { %344 = vmatpush.msra.mxu3 %v7836_v0  ;;  %306 = vmatpush.msra.mxu2 %v250_v7  ;;  %v258_v34 = vsub.f32 %v256_v14, %v257_v25  ;;  %v7917_v27 = vand.u32 4294901760, %v538_v23 }
  0x30   :  { %242 = vmatpush.msra.mxu1 %v241_v62  ;;  %167 = vmatpush.msra.mxu0 %v7850_v8  ;;  %v247_v19 = vand.u32 4294901760, %v246_v12  ;;  %v253_v33 = vand.u32 4294901760, %v252_v20 }
  0x31   :  { %346 = vmatpush.msra.mxu3 %v7842_v3  ;;  %309 = vmatpush.msra.mxu2 %v256_v14  ;;  %v259_v38 = vand.u32 4294901760, %v258_v34  ;;  %v7929_v32 = vsub.f32 %v538_v23, %v7917_v27 }
  0x32   :  { %369 = vmatpush.msrb.mxu0 %v191_v26  ;;  %248 = vmatpush.msra.mxu1 %v247_v19 }
  0x33   :  { %348 = vmatpush.msra.mxu3 %v7850_v8  ;;  %v622_v39 = vand.u32 4294901760, %v7929_v32 }
  0x34   :  { %373 = vmatpush.msrb.mxu0 %v197_v29  ;;  %254 = vmatpush.msra.mxu1 %v253_v33 }
  0x35   :  { %v623_v41 = vsub.f32 %v7929_v32, %v622_v39 }
  0x36   :  { %377 = vmatpush.msrb.mxu0 %v203_v30  ;;  %260 = vmatpush.msra.mxu1 %v259_v38 }
  0x38   :  { %381 = vmatpush.msrb.mxu0 %v209_v31  ;;  %428 = vmatpush.msrb.mxu1 %v7686_v5  ;;  %v541_v5 = vld [vmem:[%s9577_s1 + $0x18] sm:$0xf] }
  0x3a   :  { %385 = vmatpush.msrb.mxu0 %v215_v35  ;;  %430 = vmatpush.msrb.mxu1 %v7697_v9  ;;  %v551_v9 = vsel %vm549_vm0, %v541_v5, 0 }
  0x3c   :  { %389 = vmatpush.msrb.mxu0 %v221_v36  ;;  %432 = vmatpush.msrb.mxu1 %v7699_v10  ;;  %v7885_v10 = vand.u32 4294901760, %v551_v9 }
  0x3e   :  { %393 = vmatpush.msrb.mxu0 %v227_v45  ;;  %434 = vmatpush.msrb.mxu1 %v7701_v11  ;;  %v540_v11 = vld [vmem:[%s9577_s1 + $0x10] sm:$0xff]  ;;  %v624_v45 = vand.u32 4294901760, %v623_v41 }
  0x3f   :  { %566 = vmatpush.msrb.mxu2 %v7885_v10  ;;  %v7892_v15 = vand.u32 4294901760, %v540_v11 }
  0x40   :  { %397 = vmatpush.msrb.mxu0 %v233_v50  ;;  %436 = vmatpush.msrb.mxu1 %v7715_v16  ;;  %v7895_v16 = vsub.f32 %v551_v9, %v7885_v10  ;;  %v7539_v50 = vmov 0.0  }
  0x41   :  { %568 = vmatpush.msrb.mxu2 %v7892_v15  ;;  %v7906_v22 = vsub.f32 %v540_v11, %v7892_v15 }
  0x42   :  { %401 = vmatpush.msrb.mxu0 %v239_v57  ;;  %438 = vmatpush.msrb.mxu1 %v7718_v17  ;;  %v539_v17 = vld [vmem:[%s9577_s1 + $0x8] sm:$0xff]  ;;  %s9581_s1 = sld [smem:[#allocation9_spill]] }
  0x43   :  { %v7903_v21 = vand.u32 4294901760, %v539_v17  ;;  %v610_v26 = vand.u32 4294901760, %v7906_v22 }
  0x44   :  { %405 = vmatpush.msrb.mxu0 %v245_v6  ;;  %440 = vmatpush.msrb.mxu1 %v7720_v18  ;;  %v604_v18 = vand.u32 4294901760, %v7895_v16 }
  0x45   :  { %570 = vmatpush.msrb.mxu2 %v7903_v21  ;;  %v7920_v28 = vsub.f32 %v539_v17, %v7903_v21  ;;  %v611_v30 = vsub.f32 %v7906_v22, %v610_v26 }
  0x46   :  { %409 = vmatpush.msrb.mxu0 %v251_v13  ;;  %442 = vmatpush.msrb.mxu1 %v7738_v24  ;;  %v605_v24 = vsub.f32 %v7895_v16, %v604_v18 }
  0x47   :  { %572 = vmatpush.msrb.mxu2 %v7917_v27  ;;  %v616_v31 = vand.u32 4294901760, %v7920_v28  ;;  %v612_v36 = vand.u32 4294901760, %v611_v30 }
  0x48   :  { %413 = vmatpush.msrb.mxu0 %v257_v25  ;;  %444 = vmatpush.msrb.mxu1 %v7801_v51  ;;  %v606_v29 = vand.u32 4294901760, %v605_v24 }
  0x49   :  { %v617_v37 = vsub.f32 %v7920_v28, %v616_v31 }
  0x4a   :  { %446 = vmatpush.msrb.mxu1 %v7836_v0  ;;  %607 = vmatpush.msrb.mxu3 %v606_v29 }
  0x4b   :  { %v618_v40 = vand.u32 4294901760, %v617_v37 }
  0x4c   :  { %448 = vmatpush.msrb.mxu1 %v7842_v3  ;;  %613 = vmatpush.msrb.mxu3 %v612_v36  ;;  %v7540_v36 = vmov 32.0  }
  0x4d   :  { %7448 = vrcp.f32 %v7540_v36 }
  0x4e   :  { %450 = vmatpush.msrb.mxu1 %v7850_v8  ;;  %619 = vmatpush.msrb.mxu3 %v618_v40 }
  0x50   :  { %625 = vmatpush.msrb.mxu3 %v624_v45 }
  0x53   :  { %v7449_v37 = vpop.eup %7448 }
  0x54   :  { %vm474_vm0 = vweird.f32 %v7449_v37 }
  0x6f   :  { %v100_v35 = vpop.permute.xlu2 %99 }
  0x70   :  { %vm102_vm1 = vcmp.eq.s32.totalorder %v82_v46, %v100_v35 }
  0x77   :  { %v112_v47 = vpop.permute.xlu2 %111 }
  0x78   :  { %vm114_vm7 = vcmp.eq.s32.totalorder %v82_v46, %v112_v47 }
  0x85   :  { %v109_v42 = vpop.permute.xlu1 %108 }
  0x86   :  { %v87_v43 = vpop.permute.xlu0 %86  ;;  %vm113_vm2 = vcmp.eq.s32.totalorder %v82_v46, %v109_v42 }
  0x87   :  { %vm91_vm5 = vcmp.eq.s32.totalorder %v82_v46, %v87_v43 }
  0x8d   :  { %v90_v48 = vpop.permute.xlu1 %89 }
  0x8e   :  { %vm92_vm3 = vcmp.eq.s32.totalorder %v82_v46, %v90_v48 }
  0x8f   :  { %v97_v49 = vpop.permute.xlu0 %96  ;;  %vm104_vm6 = vmor %vm92_vm3, %vm102_vm1 }
  0x90   :  { %vm101_vm4 = vcmp.eq.s32.totalorder %v82_v46, %v97_v49  ;;  %vm116_vm11 = vmor %vm104_vm6, %vm114_vm7  ;;  %vm1451_vm7 = vcmask 130048  }
  0x91   :  { %vm103_vm8 = vmor %vm91_vm5, %vm101_vm4  ;;  %v7326_v52 = vsel %vm116_vm11, 1.0, %v7539_v50 }
  0x92   :  { %vm115_vm10 = vmor %vm103_vm8, %vm113_vm2  ;;  %v138_v55 = vsel %vm133_vm9, %v7326_v52, 0 }
  0x93   :  { %v7325_v51 = vsel %vm115_vm10, 1.0, %v7539_v50  ;;  %v177_v59 = vsub.f32 %v138_v55, %v138_v55 }
  0x94   :  { %7327 = vmatmul.msk.f32.vlgmr.msra.gmra.mxu1 %vm133_vm9, %v7325_v51  ;;  %v135_v53 = vsel %vm133_vm9, %v7325_v51, 0 }
  0x95   :  { %v169_v54 = vsub.f32 %v135_v53, %v135_v53  ;;  %753 = vmatpush.msra.mxu1 %v7885_v10  ;;  %v178_v2 = vand.u32 4294901760, %v177_v59 }
  0x97   :  { %v531_v56 = vpop.permute.xlu1 %530  ;;  %v528_v57 = vpop.permute.xlu0 %527  ;;  %312 = vmatmul.f32.vlgmr.msra.gmra.mxu2 %v169_v54  ;;  %v170_v58 = vand.u32 4294901760, %v169_v54  ;;  %755 = vmatpush.msra.mxu1 %v7892_v15  ;;  %v179_v6 = vsub.f32 %v177_v59, %v178_v2 }
  0x98   :  { %vm532_vm13 = vcmp.eq.s32.totalorder %v82_v46, %v528_v57  ;;  %vm533_vm14 = vcmp.eq.s32.totalorder %v82_v46, %v531_v56  ;;  %649 = vmatpush.msra.mxu2 %v7895_v16  ;;  %v775_v56 = vld [vmem:[%s9578_s9 + $0x10] sm:$0xff] }
  0x99   :  { %v7333_v60 = vsel %vm532_vm13, 1.0, %v7539_v50  ;;  %352 = vmatmul.f32.vlgmr.msra.gmra.mxu3 %v170_v58  ;;  %v171_v62 = vsub.f32 %v169_v54, %v170_v58  ;;  %757 = vmatpush.msra.mxu1 %v7903_v21  ;;  %v7334_v0 = vsel %vm533_vm14, 1.0, %v7539_v50  ;;  %v180_v12 = vand.u32 4294901760, %v179_v6  ;;  %v776_v54 = vld [vmem:[%s9578_s9 + $0x18] sm:$0xff] }
  0x9a   :  { %v544_v61 = vsel %vm542_vm12, %v7333_v60, 0  ;;  %652 = vmatpush.msra.mxu2 %v7906_v22  ;;  %683 = vmatpush.msra.mxu3 %v7885_v10  ;;  %v547_v4 = vsel %vm542_vm12, %v7334_v0, 0  ;;  %v799_v55 = vand.u32 4294901760, %v776_v54  ;;  %v801_v58 = vand.u32 4294901760, %v775_v56 }
  0x9b   :  { %v574_v63 = vsub.f32 %v544_v61, %v544_v61  ;;  %v172_v1 = vand.u32 4294901760, %v171_v62  ;;  %759 = vmatpush.msra.mxu1 %v7917_v27  ;;  %v582_v7 = vsub.f32 %v547_v4, %v547_v4  ;;  %vm3699_vm14 = vcmask 523264  }
  0x9c   :  { %7328 = vmatmul.msk.f32.gmra.mxu1 %vm133_vm9, %v7326_v52  ;;  %655 = vmatpush.msra.mxu2 %v7920_v28  ;;  %v837_v57 = vsub.f32 %v776_v54, %v799_v55  ;;  %v843_v62 = vsub.f32 %v775_v56, %v801_v58 }
  0x9d   :  { %173 = vmatmul.f32.vlgmr.msra.gmra.mxu0 %v172_v1  ;;  %v575_v3 = vand.u32 4294901760, %v574_v63  ;;  %685 = vmatpush.msra.mxu3 %v7892_v15  ;;  %v583_v14 = vand.u32 4294901760, %v582_v7 }
  0x9e   :  { %658 = vmatpush.msra.mxu2 %v7929_v32  ;;  %718 = vmatpush.msra.mxu0 %v604_v18  ;;  %v838_v61 = vand.u32 4294901760, %v837_v57 }
  0x9f   :  { %317 = vmatmul.f32.gmra.mxu2 %v177_v59  ;;  %687 = vmatpush.msra.mxu3 %v7903_v21  ;;  %v576_v8 = vsub.f32 %v574_v63, %v575_v3  ;;  %v584_v19 = vsub.f32 %v582_v7, %v583_v14  ;;  %v774_v59 = vld [vmem:[%s9578_s9 + $0x8] sm:$0xff] }
  0xa0   :  { %722 = vmatpush.msra.mxu0 %v610_v26  ;;  %v839_v1 = vsub.f32 %v837_v57, %v838_v61 }
  0xa1   :  { %358 = vmatmul.f32.gmra.mxu3 %v178_v2  ;;  %v577_v13 = vand.u32 4294901760, %v576_v8  ;;  %v585_v20 = vand.u32 4294901760, %v584_v19  ;;  %v844_v2 = vand.u32 4294901760, %v843_v62 }
  0xa2   :  { %689 = vmatpush.msra.mxu3 %v7917_v27  ;;  %726 = vmatpush.msra.mxu0 %v616_v31 }
  0xa3   :  { %v845_v8 = vsub.f32 %v843_v62, %v844_v2 }
  0xa4   :  { %7331 = vmatmul.msk.f32.vlgmr.msrb.gmra.mxu1 %vm133_vm9, %v7325_v51  ;;  %730 = vmatpush.msra.mxu0 %v622_v39  ;;  %v470_v39 = vmul.f32 32.0, %v7449_v37 }
  0xa5   :  { %181 = vmatmul.f32.gmra.mxu0 %v180_v12  ;;  %917 = vmatpush.msrb.mxu1 %v799_v55 }
  0xa6   :  { %v471_v40 = vsub.f32 1.0, %v470_v39 }
  0xa7   :  { %578 = vmatmul.f32.vlgmr.msrb.gmra.mxu2 %v577_v13  ;;  %919 = vmatpush.msrb.mxu1 %v801_v58 }
  0xa8   :  { %v472_v41 = vmul.f32 %v7449_v37, %v471_v40  ;;  %800 = vmatpush.msrb.mxu2 %v799_v55 }
  0xa9   :  { %7335 = vmatmul.msk.f32.vlgmr.msrb.gmra.mxu3 %vm542_vm12, %v7333_v60 }
  0xaa   :  { %v473_v42 = vadd.f32 %v7449_v37, %v472_v41  ;;  %802 = vmatpush.msrb.mxu2 %v801_v58 }
  0xac   :  { %7332 = vmatmul.msk.f32.gmra.mxu1 %vm133_vm9, %v7326_v52  ;;  %v7977_v43 = vsel %vm474_vm0, %v7449_v37, %v473_v42 }
  0xad   :  { %7329 = vmatmul.msk.f32.vlgmr.msrb.gmra.mxu0 %vm133_vm9, %v7325_v51 }
  0xae   :  { %883 = vmatpush.msrb.mxu0 %v837_v57 }
  0xaf   :  { %586 = vmatmul.f32.gmra.mxu2 %v585_v20 }
  0xb0   :  { %886 = vmatpush.msrb.mxu0 %v843_v62 }
  0xb1   :  { %7336 = vmatmul.msk.f32.gmra.mxu3 %vm542_vm12, %v7334_v0 }
  0xb4   :  { %7339 = vmatmul.msk.f32.vlgmr.msra.gmra.mxu1 %vm542_vm12, %v7333_v60 }
  0xb5   :  { %7330 = vmatmul.msk.f32.gmra.mxu0 %vm133_vm9, %v7326_v52 }
  0xb7   :  { %661 = vmatmul.f32.vlgmr.msra.gmra.mxu2 %v574_v63  ;;  %v803_v63 = vand.u32 4294901760, %v774_v59 }
  0xb9   :  { %693 = vmatmul.f32.vlgmr.msra.gmra.mxu3 %v575_v3  ;;  %v849_v3 = vsub.f32 %v774_v59, %v803_v63  ;;  %921 = vmatpush.msrb.mxu1 %v803_v63 }
  0xba   :  { %804 = vmatpush.msrb.mxu2 %v803_v63 }
  0xbb   :  { %v850_v12 = vand.u32 4294901760, %v849_v3  ;;  %889 = vmatpush.msrb.mxu0 %v849_v3 }
  0xbc   :  { %7340 = vmatmul.msk.f32.gmra.mxu1 %vm542_vm12, %v7334_v0 }
  0xbd   :  { %7337 = vmatmul.msk.f32.vlgmr.msra.gmra.mxu0 %vm542_vm12, %v7333_v60  ;;  %v851_v19 = vsub.f32 %v849_v3, %v850_v12 }
  0xbf   :  { %666 = vmatmul.f32.gmra.mxu2 %v582_v7  ;;  %v840_v7 = vand.u32 4294901760, %v839_v1 }
  0xc1   :  { %699 = vmatmul.f32.gmra.mxu3 %v583_v14  ;;  %v846_v14 = vand.u32 4294901760, %v845_v8 }
  0xc2   :  { %841 = vmatpush.msrb.mxu3 %v840_v7 }
  0xc4   :  { %847 = vmatpush.msrb.mxu3 %v846_v14 }
  0xc5   :  { %7338 = vmatmul.msk.f32.gmra.mxu0 %vm542_vm12, %v7334_v0  ;;  %v773_v0 = vld [vmem:[%s9578_s9] sm:$0xff] }
  0xc6   :  { %v805_v4 = vand.u32 4294901760, %v773_v0 }
  0xc8   :  { %v855_v13 = vsub.f32 %v773_v0, %v805_v4  ;;  %923 = vmatpush.msrb.mxu1 %v805_v4  ;;  %806 = vmatpush.msrb.mxu2 %v805_v4 }
  0xca   :  { %v856_v20 = vand.u32 4294901760, %v855_v13  ;;  %892 = vmatpush.msrb.mxu0 %v855_v13  ;;  %952 = vmatpush.msra.mxu2 %v838_v61 }
  0xcc   :  { %956 = vmatpush.msra.mxu2 %v844_v2  ;;  %v7420_v2 = vld [vmem:[%s9579_s0] ss:$0 sm:$0xff] }
  0xce   :  { %960 = vmatpush.msra.mxu2 %v850_v12  ;;  %v7421_v12 = vld [vmem:[%s9580_s4] ss:$0 sm:$0xff] }
  0xd0   :  { %964 = vmatpush.msra.mxu2 %v856_v20 }
 0x111   :  { %v263_v25 = vpop.f32.mrf.mxu1 }
 0x119   :  { %v267_v34 = vpop.f32.mrf.mxu1 }
 0x11a   :  { %v174_v33 = vpop.f32.mrf.mxu0  ;;  %v313_v5 = vpop.f32.mrf.mxu2 }
 0x11b   :  { %v264_v38 = vadd.f32 %v263_v25, %v174_v33  ;;  %v852_v25 = vand.u32 4294901760, %v851_v19  ;;  %v857_v33 = vsub.f32 %v855_v13, %v856_v20 }
 0x11c   :  { %v353_v11 = vpop.f32.mrf.mxu3 }
 0x11d   :  { %v314_v10 = vadd.f32 %v313_v5, %v264_v38  ;;  %853 = vmatpush.msrb.mxu3 %v852_v25  ;;  %v858_v5 = vand.u32 4294901760, %v857_v33 }
 0x11f   :  { %v354_v15 = vadd.f32 %v353_v11, %v314_v10  ;;  %859 = vmatpush.msrb.mxu3 %v858_v5 }
 0x121   :  { %v453_v17 = vpop.f32.mrf.mxu1  ;;  %987 = vmatpush.msra.mxu3 %v799_v55 }
 0x122   :  { %v182_v9 = vpop.f32.mrf.mxu0  ;;  %v318_v22 = vpop.f32.mrf.mxu2 }
 0x123   :  { %v268_v16 = vadd.f32 %v267_v34, %v182_v9  ;;  %989 = vmatpush.msra.mxu3 %v801_v58 }
 0x124   :  { %v359_v27 = vpop.f32.mrf.mxu3 }
 0x125   :  { %v319_v23 = vadd.f32 %v318_v22, %v268_v16  ;;  %991 = vmatpush.msra.mxu3 %v803_v63 }
 0x127   :  { %v360_v28 = vadd.f32 %v359_v27, %v319_v23  ;;  %993 = vmatpush.msra.mxu3 %v805_v4 }
 0x129   :  { %v457_v31 = vpop.f32.mrf.mxu1 }
 0x12a   :  { %v416_v18 = vpop.f32.mrf.mxu0  ;;  %v8000_v60 = vpop.f32.mrf.mxu2 }
 0x12b   :  { %v417_v21 = vadd.f32 %v416_v18, %v354_v15  ;;  %v1006_v15 = vld [vmem:[%s9537_s11 + $0x18] sm:$0xff] }
 0x12c   :  { %v628_v6 = vpop.f32.mrf.mxu3  ;;  %v8011_v16 = vand.u32 4294901760, %v1006_v15 }
 0x12d   :  { %v454_v24 = vadd.f32 %v453_v17, %v417_v21  ;;  %v1005_v17 = vld [vmem:[%s9537_s11 + $0x10] sm:$0xff]  ;;  %v629_v39 = vadd.f32 %v628_v6, %v8000_v60 }
 0x12e   :  { %1024 = vmatpush.msra.mxu0 %v8011_v16  ;;  %v8018_v21 = vsub.f32 %v1006_v15, %v8011_v16  ;;  %v8020_v22 = vand.u32 4294901760, %v1005_v17 }
 0x12f   :  { %v463_v26 = vsel %vm462_vm15, %v454_v24, 0.0 }
 0x130   :  { %464 = vadd.xlane.f32.xlu2 %v463_v26  ;;  %1026 = vmatpush.msra.mxu0 %v8020_v22  ;;  %v1062_v27 = vand.u32 4294901760, %v8018_v21 }
 0x131   :  { %v762_v14 = vpop.f32.mrf.mxu1 }
 0x132   :  { %v420_v29 = vpop.f32.mrf.mxu0  ;;  %v8005_v34 = vpop.f32.mrf.mxu2  ;;  %v1063_v36 = vsub.f32 %v8018_v21, %v1062_v27 }
 0x133   :  { %v421_v30 = vadd.f32 %v420_v29, %v360_v28  ;;  %v8031_v29 = vsub.f32 %v1005_v17, %v8020_v22 }
 0x134   :  { %v632_v11 = vpop.f32.mrf.mxu3 }
 0x135   :  { %v458_v32 = vadd.f32 %v457_v31, %v421_v30  ;;  %v1068_v37 = vand.u32 4294901760, %v8031_v29  ;;  %v633_v1 = vadd.f32 %v632_v11, %v8005_v34 }
 0x137   :  { %v466_v35 = vsel %vm462_vm15, %v458_v32, 0.0 }
 0x138   :  { %467 = vadd.xlane.f32.xlu0 %v466_v35 }
 0x13a   :  { %v662_v26 = vpop.f32.mrf.mxu2  ;;  %v733_v61 = vpop.f32.mrf.mxu0 }
 0x13c   :  { %v694_v42 = vpop.f32.mrf.mxu3 }
 0x142   :  { %v667_v62 = vpop.f32.mrf.mxu2  ;;  %v737_v11 = vpop.f32.mrf.mxu0 }
 0x143   :  { %v668_v8 = vadd.f32 %v667_v62, %v633_v1 }
 0x144   :  { %v700_v19 = vpop.f32.mrf.mxu3 }
 0x1a3   :  { %v465_v44 = vpop.xlane.xlu2 %464 }
 0x1a4   :  { %v476_v45 = vmul.f32 %v7977_v43, %v465_v44 }
 0x1a6   :  { %v7980_v46 = vsub.f32 %v454_v24, %v476_v45  ;;  %v1004_v24 = vld [vmem:[%s9537_s11 + $0x8] sm:$0xff]  ;;  %v1064_v45 = vand.u32 4294901760, %v1063_v36 }
 0x1a7   :  { %v8028_v28 = vand.u32 4294901760, %v1004_v24 }
 0x1a8   :  { %v480_v47 = vmul.f32 %v7980_v46, %v7980_v46  ;;  %1065 = vmatpush.msra.mxu1 %v1064_v45 }
 0x1a9   :  { %1028 = vmatpush.msra.mxu0 %v8028_v28  ;;  %v8045_v41 = vsub.f32 %v1004_v24, %v8028_v28 }
 0x1aa   :  { %v482_v48 = vsel %vm462_vm15, %v480_v47, 0.0  ;;  %v1069_v47 = vsub.f32 %v8031_v29, %v1068_v37 }
 0x1ab   :  { %483 = vadd.xlane.f32.xlu1 %v482_v48  ;;  %v468_v49 = vpop.xlane.xlu0 %467  ;;  %v663_v48 = vadd.f32 %v662_v26, %v629_v39  ;;  %v1230_v26 = vld [vmem:[%s9539_s13 + $0x18] sm:$0xff] }
 0x1ac   :  { %v477_v50 = vmul.f32 %v7977_v43, %v468_v49  ;;  %v1074_v49 = vand.u32 4294901760, %v8045_v41 }
 0x1ad   :  { %v695_v58 = vadd.f32 %v694_v42, %v663_v48 }
 0x1ae   :  { %v7986_v51 = vsub.f32 %v458_v32, %v477_v50  ;;  %v1003_v32 = vld [vmem:[%s9537_s11] sm:$0xff]  ;;  %v1075_v54 = vsub.f32 %v8045_v41, %v1074_v49 }
 0x1af   :  { %v8042_v40 = vand.u32 4294901760, %v1003_v32  ;;  %v734_v7 = vadd.f32 %v733_v61, %v695_v58 }
 0x1b0   :  { %v481_v52 = vmul.f32 %v7986_v51, %v7986_v51  ;;  %v1076_v59 = vand.u32 4294901760, %v1075_v54 }
 0x1b1   :  { %1030 = vmatpush.msra.mxu0 %v8042_v40  ;;  %v8053_v50 = vsub.f32 %v1003_v32, %v8042_v40  ;;  %v763_v34 = vadd.f32 %v762_v14, %v734_v7  ;;  %v8084_v32 = vand.u32 4294901760, %v1230_v26 }
 0x1b2   :  { %v485_v53 = vsel %vm462_vm15, %v481_v52, 0.0 }
 0x1b3   :  { %486 = vadd.xlane.f32.xlu2 %v485_v53  ;;  %v1070_v53 = vand.u32 4294901760, %v1069_v47  ;;  %v1080_v55 = vand.u32 4294901760, %v8053_v50  ;;  %v8095_v42 = vsub.f32 %v1230_v26, %v8084_v32  ;;  %v1228_v47 = vld [vmem:[%s9539_s13 + $0x8] sm:$0xff] }
 0x1b5   :  { %1071 = vmatpush.msra.mxu1 %v1070_v53  ;;  %v1081_v60 = vsub.f32 %v8053_v50, %v1080_v55  ;;  %v8113_v53 = vand.u32 4294901760, %v1228_v47 }
 0x1b7   :  { %1077 = vmatpush.msra.mxu1 %v1076_v59  ;;  %v1082_v3 = vand.u32 4294901760, %v1081_v60 }
 0x1b9   :  { %1083 = vmatpush.msra.mxu1 %v1082_v3 }
 0x21e   :  { %v484_v38 = vpop.xlane.xlu1 %483 }
 0x21f   :  { %v488_v9 = vmul.f32 %v484_v38, %v7977_v43  ;;  %v701_v38 = vadd.f32 %v700_v19, %v668_v8  ;;  %v7422_v19 = vld [vmem:[%s9536_s10] ss:$0 sm:$0xff] }
 0x221   :  { %v490_v10 = vadd.f32 1e-12, %v488_v9  ;;  %v738_v17 = vadd.f32 %v737_v11, %v701_v38 }
 0x223   :  { %7450 = vrsqrt.f32 %v490_v10  ;;  %vm498_vm2 = vweird.f32 %v490_v10 }
 0x226   :  { %v487_v18 = vpop.xlane.xlu2 %486 }
 0x227   :  { %v489_v23 = vmul.f32 %v487_v18, %v7977_v43 }
 0x229   :  { %v7451_v30 = vpop.eup %7450  ;;  %v491_v31 = vadd.f32 1e-12, %v489_v23 }
 0x22a   :  { %v493_v35 = vmul.f32 %v7451_v30, %v490_v10  ;;  %vm499_vm1 = vweird.f32 %v7451_v30 }
 0x22b   :  { %7452 = vrsqrt.f32 %v491_v31  ;;  %vm500_vm3 = vmor %vm498_vm2, %vm499_vm1  ;;  %vm508_vm5 = vweird.f32 %v491_v31 }
 0x22c   :  { %v494_v44 = vmul.f32 %v7451_v30, %v493_v35 }
 0x22e   :  { %v495_v52 = vmul.f32 0.5, %v494_v44 }
 0x230   :  { %v496_v56 = vsub.f32 1.5, %v495_v52 }
 0x231   :  { %v7453_v57 = vpop.eup %7452 }
 0x232   :  { %v497_v63 = vmul.f32 %v7451_v30, %v496_v56  ;;  %v503_v0 = vmul.f32 %v7453_v57, %v491_v31  ;;  %vm509_vm4 = vweird.f32 %v7453_v57  ;;  %v1227_v56 = vld [vmem:[%s9539_s13] sm:$0xff] }
 0x233   :  { %vm510_vm6 = vmor %vm508_vm5, %vm509_vm4  ;;  %v1253_v60 = vand.u32 4294901760, %v1227_v56 }
 0x234   :  { %v501_v4 = vsel %vm500_vm3, %v7451_v30, %v497_v63  ;;  %v504_v6 = vmul.f32 %v7453_v57, %v503_v0  ;;  %v766_v30 = vpop.f32.mrf.mxu1 }
 0x235   :  { %v512_v13 = vmul.f32 %v501_v4, %v7980_v46  ;;  %v767_v35 = vadd.f32 %v766_v30, %v738_v17  ;;  %v1303_v62 = vsub.f32 %v1227_v56, %v1253_v60 }
 0x236   :  { %v505_v20 = vmul.f32 0.5, %v504_v6 }
 0x237   :  { %v517_v25 = vmul.f32 %v7420_v2, %v512_v13 }
 0x238   :  { %v506_v33 = vsub.f32 1.5, %v505_v20 }
 0x239   :  { %v522_v5 = vadd.f32 %v7421_v12, %v517_v25 }
 0x23a   :  { %v507_v9 = vmul.f32 %v7453_v57, %v506_v33 }
 0x23b   :  { %v8070_v10 = vadd.f32 %v763_v34, %v522_v5 }
 0x23c   :  { %v511_v15 = vsel %vm510_vm6, %v7453_v57, %v507_v9  ;;  %v7423_v9 = vld [vmem:[%s9538_s12] ss:$0 sm:$0xff] }
 0x23d   :  { %v782_v46 = vsel %vm462_vm15, %v8070_v10, 0  ;;  %v513_v18 = vmul.f32 %v511_v15, %v7986_v51  ;;  %v1229_v51 = vld [vmem:[%s9539_s13 + $0x10] sm:$0xff] }
 0x23e   :  { %v8075_v23 = vand.u32 4294901760, %v782_v46  ;;  %v8097_v44 = vand.u32 4294901760, %v1229_v51 }
 0x23f   :  { %v518_v24 = vmul.f32 %v7420_v2, %v513_v18 }
 0x240   :  { %v8081_v31 = vsub.f32 %v782_v46, %v8075_v23  ;;  %861 = vmatmul.f32.vlgmr.msrb.gmra.mxu3 %v8075_v23  ;;  %v8111_v52 = vsub.f32 %v1229_v51, %v8097_v44 }
 0x241   :  { %v523_v36 = vadd.f32 %v7421_v12, %v518_v24  ;;  %1141 = vmatpush.msrb.mxu3 %v8011_v16 }
 0x242   :  { %895 = vmatmul.f32.vlgmr.msrb.gmra.mxu0 %v8081_v31  ;;  %v8092_v39 = vand.u32 4294901760, %v8081_v31  ;;  %v1292_v59 = vand.u32 4294901760, %v8111_v52 }
 0x243   :  { %v8099_v45 = vadd.f32 %v767_v35, %v523_v36  ;;  %1143 = vmatpush.msrb.mxu3 %v8020_v22  ;;  %1176 = vmatpush.msrb.mxu0 %v1062_v27  ;;  %v1286_v27 = vand.u32 4294901760, %v8095_v42 }
 0x244   :  { %927 = vmatmul.f32.vlgmr.msrb.gmra.mxu1 %v8092_v39  ;;  %v810_v48 = vsub.f32 %v8081_v31, %v8092_v39 }
 0x245   :  { %v785_v54 = vsel %vm462_vm15, %v8099_v45, 0  ;;  %1145 = vmatpush.msrb.mxu3 %v8028_v28  ;;  %1180 = vmatpush.msrb.mxu0 %v1068_v37  ;;  %v8134_v37 = vsub.f32 %v1228_v47, %v8113_v53 }
 0x246   :  { %v8124_v57 = vand.u32 4294901760, %v785_v54  ;;  %v8126_v58 = vand.u32 4294901760, %v810_v48  ;;  %1211 = vmatpush.msrb.mxu1 %v8011_v16  ;;  %v1287_v16 = vsub.f32 %v8095_v42, %v1286_v27 }
 0x247   :  { %1147 = vmatpush.msrb.mxu3 %v8042_v40  ;;  %1184 = vmatpush.msrb.mxu0 %v1074_v49  ;;  %v1298_v49 = vand.u32 4294901760, %v8134_v37 }
 0x248   :  { %v8137_v61 = vsub.f32 %v785_v54, %v8124_v57  ;;  %812 = vmatmul.f32.vlgmr.msrb.gmra.mxu2 %v8126_v58  ;;  %865 = vmatmul.f32.gmra.mxu3 %v8124_v57  ;;  %v1288_v1 = vand.u32 4294901760, %v1287_v16 }
 0x249   :  { %1213 = vmatpush.msrb.mxu1 %v8020_v22  ;;  %1107 = vmatpush.msrb.mxu2 %v8018_v21  ;;  %v1293_v21 = vsub.f32 %v8111_v52, %v1292_v59  ;;  %v1304_v22 = vand.u32 4294901760, %v1303_v62  ;;  %v1299_v2 = vsub.f32 %v8134_v37, %v1298_v49 }
 0x24a   :  { %900 = vmatmul.f32.gmra.mxu0 %v8137_v61  ;;  %v8149_v63 = vand.u32 4294901760, %v8137_v61 }
 0x24b   :  { %1188 = vmatpush.msrb.mxu0 %v1080_v55  ;;  %1215 = vmatpush.msrb.mxu1 %v8028_v28  ;;  %v1294_v28 = vand.u32 4294901760, %v1293_v21  ;;  %v1305_v3 = vsub.f32 %v1303_v62, %v1304_v22  ;;  %v1300_v4 = vand.u32 4294901760, %v1299_v2 }
 0x24c   :  { %933 = vmatmul.f32.gmra.mxu1 %v8149_v63  ;;  %v818_v0 = vsub.f32 %v8137_v61, %v8149_v63  ;;  %1110 = vmatpush.msrb.mxu2 %v8031_v29 }
 0x24d   :  { %1217 = vmatpush.msrb.mxu1 %v8042_v40  ;;  %v1306_v29 = vand.u32 4294901760, %v1305_v3 }
 0x24e   :  { %v8163_v55 = vand.u32 4294901760, %v818_v0  ;;  %1113 = vmatpush.msrb.mxu2 %v8045_v41 }
 0x250   :  { %820 = vmatmul.f32.gmra.mxu2 %v8163_v55  ;;  %995 = vmatmul.f32.vlgmr.msra.gmra.mxu3 %v8075_v23 }
 0x251   :  { %1116 = vmatpush.msrb.mxu2 %v8053_v50  ;;  %1289 = vmatpush.msra.mxu3 %v1288_v1 }
 0x252   :  { %1036 = vmatmul.f32.vlgmr.msra.gmra.mxu0 %v8126_v58 }
 0x253   :  { %1295 = vmatpush.msra.mxu3 %v1294_v28  ;;  %1331 = vmatpush.msra.mxu0 %v8095_v42 }
 0x254   :  { %1085 = vmatmul.f32.vlgmr.msra.gmra.mxu1 %v8075_v23 }
 0x255   :  { %1301 = vmatpush.msra.mxu3 %v1300_v4  ;;  %1334 = vmatpush.msra.mxu0 %v8111_v52 }
 0x256   :  { %1365 = vmatpush.msra.mxu1 %v8084_v32 }
 0x257   :  { %1307 = vmatpush.msra.mxu3 %v1306_v29  ;;  %1337 = vmatpush.msra.mxu0 %v8134_v37 }
 0x258   :  { %966 = vmatmul.f32.vlgmr.msra.gmra.mxu2 %v8075_v23  ;;  %999 = vmatmul.f32.gmra.mxu3 %v8124_v57 }
 0x259   :  { %1367 = vmatpush.msra.mxu1 %v8097_v44  ;;  %1248 = vmatpush.msra.mxu2 %v8084_v32 }
 0x25a   :  { %1044 = vmatmul.f32.gmra.mxu0 %v8163_v55 }
 0x25b   :  { %1340 = vmatpush.msra.mxu0 %v1303_v62  ;;  %1369 = vmatpush.msra.mxu1 %v8113_v53 }
 0x25c   :  { %1089 = vmatmul.f32.gmra.mxu1 %v8124_v57  ;;  %1250 = vmatpush.msra.mxu2 %v8097_v44 }
 0x25d   :  { %1371 = vmatpush.msra.mxu1 %v1253_v60 }
 0x25e   :  { %1252 = vmatpush.msra.mxu2 %v8113_v53 }
 0x260   :  { %970 = vmatmul.f32.gmra.mxu2 %v8124_v57  ;;  %1151 = vmatmul.f32.vlgmr.msrb.gmra.mxu3 %v8092_v39 }
 0x261   :  { %1254 = vmatpush.msra.mxu2 %v1253_v60  ;;  %1435 = vmatpush.msrb.mxu3 %v8084_v32 }
 0x262   :  { %1190 = vmatmul.f32.vlgmr.msrb.gmra.mxu0 %v8075_v23 }
 0x263   :  { %1437 = vmatpush.msrb.mxu3 %v8097_v44 }
 0x264   :  { %1219 = vmatmul.f32.vlgmr.msrb.gmra.mxu1 %v8075_v23 }
 0x265   :  { %1439 = vmatpush.msrb.mxu3 %v8113_v53 }
 0x267   :  { %1441 = vmatpush.msrb.mxu3 %v1253_v60 }
 0x268   :  { %1119 = vmatmul.f32.vlgmr.msrb.gmra.mxu2 %v8081_v31  ;;  %1157 = vmatmul.f32.gmra.mxu3 %v8149_v63 }
 0x269   :  { %1400 = vmatpush.msrb.mxu2 %v1286_v27 }
 0x26a   :  { %1194 = vmatmul.f32.gmra.mxu0 %v8124_v57 }
 0x26b   :  { %1404 = vmatpush.msrb.mxu2 %v1292_v59 }
 0x26c   :  { %1223 = vmatmul.f32.gmra.mxu1 %v8124_v57 }
 0x26d   :  { %1408 = vmatpush.msrb.mxu2 %v1298_v49 }
 0x26f   :  { %1412 = vmatpush.msrb.mxu2 %v1304_v22 }
 0x270   :  { %1124 = vmatmul.f32.gmra.mxu2 %v8137_v61  ;;  %1309 = vmatmul.f32.vlgmr.msra.gmra.mxu3 %v8075_v23 }
 0x272   :  { %1343 = vmatmul.f32.vlgmr.msra.gmra.mxu0 %v8081_v31 }
 0x274   :  { %1375 = vmatmul.f32.vlgmr.msra.gmra.mxu1 %v8092_v39 }
 0x278   :  { %1260 = vmatmul.f32.vlgmr.msra.gmra.mxu2 %v8126_v58  ;;  %1313 = vmatmul.f32.gmra.mxu3 %v8124_v57 }
 0x27a   :  { %1348 = vmatmul.f32.gmra.mxu0 %v8137_v61 }
 0x27c   :  { %1381 = vmatmul.f32.gmra.mxu1 %v8149_v63 }
 0x280   :  { %1268 = vmatmul.f32.gmra.mxu2 %v8163_v55  ;;  %1443 = vmatmul.f32.vlgmr.msrb.gmra.mxu3 %v8075_v23 }
 0x288   :  { %1414 = vmatmul.f32.vlgmr.msrb.gmra.mxu2 %v8075_v23  ;;  %1447 = vmatmul.f32.gmra.mxu3 %v8124_v57 }
 0x290   :  { %1418 = vmatmul.f32.gmra.mxu2 %v8124_v57 }
 0x2bf   :  { %v896_v41 = vpop.f32.mrf.mxu0 }
 0x2c1   :  { %v928_v50 = vpop.f32.mrf.mxu1 }
 0x2c3   :  { %v862_v40 = vpop.f32.mrf.mxu3 }
 0x2c7   :  { %v901_v8 = vpop.f32.mrf.mxu0 }
 0x2c9   :  { %v934_v12 = vpop.f32.mrf.mxu1 }
 0x2cb   :  { %v813_v6 = vpop.f32.mrf.mxu2  ;;  %v866_v7 = vpop.f32.mrf.mxu3 }
 0x2cc   :  { %v814_v33 = vadd.f32 %v7422_v19, %v813_v6 }
 0x2ce   :  { %v863_v5 = vadd.f32 %v862_v40, %v814_v33 }
 0x2cf   :  { %v1037_v20 = vpop.f32.mrf.mxu0 }
 0x2d0   :  { %v897_v17 = vadd.f32 %v896_v41, %v863_v5  ;;  %v1038_v26 = vadd.f32 %v7423_v9, %v1037_v20 }
 0x2d1   :  { %v1086_v25 = vpop.f32.mrf.mxu1 }
 0x2d2   :  { %v929_v32 = vadd.f32 %v928_v50, %v897_v17  ;;  %v1087_v36 = vadd.f32 %v1086_v25, %v1038_v26 }
 0x2d3   :  { %v821_v13 = vpop.f32.mrf.mxu2  ;;  %v996_v14 = vpop.f32.mrf.mxu3 }
 0x2d4   :  { %v822_v15 = vadd.f32 %v7422_v19, %v821_v13 }
 0x2d6   :  { %v867_v30 = vadd.f32 %v866_v7, %v822_v15  ;;  %v7424_v7 = vld [vmem:[%s9540_s14] ss:$0 sm:$0xff] }
 0x2d7   :  { %v1045_v11 = vpop.f32.mrf.mxu0 }
 0x2d8   :  { %v902_v51 = vadd.f32 %v901_v8, %v867_v30  ;;  %v1046_v53 = vadd.f32 %v7423_v9, %v1045_v11 }
 0x2d9   :  { %v1090_v24 = vpop.f32.mrf.mxu1 }
 0x2da   :  { %v935_v56 = vadd.f32 %v934_v12, %v902_v51  ;;  %v1091_v16 = vadd.f32 %v1090_v24, %v1046_v53 }
 0x2db   :  { %v967_v34 = vpop.f32.mrf.mxu2  ;;  %v1000_v38 = vpop.f32.mrf.mxu3 }
 0x2dc   :  { %v968_v35 = vadd.f32 %v967_v34, %v929_v32 }
 0x2de   :  { %v997_v47 = vadd.f32 %v996_v14, %v968_v35 }
 0x2df   :  { %v1191_v48 = vpop.f32.mrf.mxu0 }
 0x2e0   :  { %v1453_v37 = vsel %vm1451_vm7, %v997_v47, 0 }
 0x2e1   :  { %v1220_v27 = vpop.f32.mrf.mxu1  ;;  %v8219_v21 = vand.u32 4294901760, %v1453_v37 }
 0x2e3   :  { %v971_v46 = vpop.f32.mrf.mxu2  ;;  %v1152_v18 = vpop.f32.mrf.mxu3  ;;  %v1483_v4 = vsub.f32 %v1453_v37, %v8219_v21 }
 0x2e4   :  { %v972_v60 = vadd.f32 %v971_v46, %v935_v56 }
 0x2e5   :  { %v1484_v14 = vand.u32 4294901760, %v1483_v4 }
 0x2e6   :  { %v1001_v0 = vadd.f32 %v1000_v38, %v972_v60 }
 0x2e7   :  { %v1195_v28 = vpop.f32.mrf.mxu0  ;;  %v1485_v34 = vsub.f32 %v1483_v4, %v1484_v14 }
 0x2e8   :  { %v1456_v40 = vsel %vm1451_vm7, %v1001_v0, 0 }
 0x2e9   :  { %v1224_v41 = vpop.f32.mrf.mxu1  ;;  %v8227_v12 = vand.u32 4294901760, %v1456_v40  ;;  %v1486_v24 = vand.u32 4294901760, %v1485_v34 }
 0x2eb   :  { %v1120_v42 = vpop.f32.mrf.mxu2  ;;  %v1158_v52 = vpop.f32.mrf.mxu3  ;;  %v1491_v38 = vsub.f32 %v1456_v40, %v8227_v12 }
 0x2ec   :  { %v1121_v44 = vadd.f32 %v1120_v42, %v1087_v36 }
 0x2ed   :  { %v1492_v26 = vand.u32 4294901760, %v1491_v38 }
 0x2ee   :  { %v1153_v54 = vadd.f32 %v1152_v18, %v1121_v44 }
 0x2ef   :  { %v1344_v17 = vpop.f32.mrf.mxu0  ;;  %v1493_v42 = vsub.f32 %v1491_v38, %v1492_v26 }
 0x2f0   :  { %v1192_v59 = vadd.f32 %v1191_v48, %v1153_v54 }
 0x2f1   :  { %v1376_v51 = vpop.f32.mrf.mxu1 }
 0x2f2   :  { %v1221_v49 = vadd.f32 %v1220_v27, %v1192_v59  ;;  %v1494_v27 = vand.u32 4294901760, %v1493_v42  ;;  %v8247_v42 = vld [vmem:[%s9581_s1 + $0x8] sm:$0xff] }
 0x2f3   :  { %v1125_v62 = vpop.f32.mrf.mxu2  ;;  %v1310_v3 = vpop.f32.mrf.mxu3 }
 0x2f4   :  { %v1126_v22 = vadd.f32 %v1125_v62, %v1091_v16  ;;  %v1459_v2 = vsel %vm1451_vm7, %v1221_v49, 0 }
 0x2f5   :  { %v1480_v50 = vand.u32 4294901760, %v1459_v2 }
 0x2f6   :  { %v1159_v1 = vadd.f32 %v1158_v52, %v1126_v22 }
 0x2f7   :  { %v1520_v20 = vsub.f32 %v1459_v2, %v1480_v50  ;;  %v1349_v56 = vpop.f32.mrf.mxu0 }
 0x2f8   :  { %v1196_v29 = vadd.f32 %v1195_v28, %v1159_v1 }
 0x2f9   :  { %v1521_v11 = vand.u32 4294901760, %v1520_v20  ;;  %v1382_v60 = vpop.f32.mrf.mxu1 }
 0x2fa   :  { %v1225_v6 = vadd.f32 %v1224_v41, %v1196_v29 }
 0x2fb   :  { %v1261_v8 = vpop.f32.mrf.mxu2  ;;  %v1314_v5 = vpop.f32.mrf.mxu3  ;;  %v1522_v32 = vsub.f32 %v1520_v20, %v1521_v11 }
 0x2fc   :  { %v1462_v13 = vsel %vm1451_vm7, %v1225_v6, 0  ;;  %v1262_v25 = vadd.f32 %v7424_v7, %v1261_v8 }
 0x2fd   :  { %v1478_v19 = vand.u32 4294901760, %v1462_v13  ;;  %v1523_v44 = vand.u32 4294901760, %v1522_v32 }
 0x2fe   :  { %v1311_v15 = vadd.f32 %v1310_v3, %v1262_v25 }
 0x2ff   :  { %1479 = vmatpush.xpose.msrb.mxu0 %v1478_v19  ;;  %1580 = vmatpush.xpose.msra.mxu3 %v1478_v19  ;;  %v1514_v33 = vsub.f32 %v1462_v13, %v1478_v19 }
 0x300   :  { %v1345_v36 = vadd.f32 %v1344_v17, %v1311_v15 }
 0x301   :  { %1550 = vmatpush.xpose.msra.mxu2 %v1514_v33  ;;  %v1515_v9 = vand.u32 4294901760, %v1514_v33 }
 0x302   :  { %v1377_v48 = vadd.f32 %v1376_v51, %v1345_v36 }
 0x303   :  { %v1269_v46 = vpop.f32.mrf.mxu2  ;;  %1481 = vmatpush.xpose.msrb.mxu0 %v1480_v50  ;;  %1582 = vmatpush.xpose.msra.mxu3 %v1480_v50  ;;  %v1516_v18 = vsub.f32 %v1514_v33, %v1515_v9  ;;  %v1444_v52 = vpop.f32.mrf.mxu3 }
 0x304   :  { %v1270_v35 = vadd.f32 %v7424_v7, %v1269_v46 }
 0x305   :  { %1553 = vmatpush.xpose.msra.mxu2 %v1520_v20  ;;  %v1517_v30 = vand.u32 4294901760, %v1516_v18 }
 0x306   :  { %1487 = vmatmul.f32.vlgmr.msrb.gmra.mxu0 %v1486_v24  ;;  %1586 = vmatmul.f32.vlgmr.msra.gmra.mxu3 %v1484_v14  ;;  %v1315_v47 = vadd.f32 %v1314_v5, %v1270_v35 }
 0x307   :  { %1613 = vmatpush.xpose.msra.mxu0 %v1515_v9  ;;  %1518 = vmatpush.xpose.msrb.mxu1 %v1517_v30 }
 0x308   :  { %1556 = vmatmul.f32.vlgmr.msra.gmra.mxu2 %v1483_v4  ;;  %v1350_v37 = vadd.f32 %v1349_v56, %v1315_v47 }
 0x30a   :  { %v1383_v49 = vadd.f32 %v1382_v60, %v1350_v37 }
 0x30b   :  { %1617 = vmatpush.xpose.msra.mxu0 %v1521_v11  ;;  %v1415_v53 = vpop.f32.mrf.mxu2  ;;  %1524 = vmatpush.xpose.msrb.mxu1 %v1523_v44  ;;  %v1448_v0 = vpop.f32.mrf.mxu3 }
 0x30c   :  { %v1416_v54 = vadd.f32 %v1415_v53, %v1377_v48 }
 0x30e   :  { %v1445_v59 = vadd.f32 %v1444_v52, %v1416_v54  ;;  %1495 = vmatmul.f32.gmra.mxu0 %v1494_v27  ;;  %1526 = vmatmul.f32.vlgmr.msrb.gmra.mxu1 %v8219_v21 }
 0x30f   :  { %1642 = vmatpush.xpose.msra.mxu1 %v1478_v19  ;;  %1592 = vmatmul.f32.gmra.mxu3 %v1492_v26 }
 0x310   :  { %1561 = vmatmul.f32.gmra.mxu2 %v1491_v38  ;;  %v1702_v16 = vand.u32 4294901760, %v1445_v59 }
 0x312   :  { %v1742_v2 = vsub.f32 %v1445_v59, %v1702_v16 }
 0x313   :  { %1644 = vmatpush.xpose.msra.mxu1 %v1480_v50  ;;  %v1419_v62 = vpop.f32.mrf.mxu2 }
 0x314   :  { %v1420_v22 = vadd.f32 %v1419_v62, %v1383_v49  ;;  %v1743_v4 = vand.u32 4294901760, %v1742_v2  ;;  %v7344_v62 = vld [vmem:[%s9578_s9 + $0x38] sm:$0xff] }
 0x316   :  { %v1449_v1 = vadd.f32 %v1448_v0, %v1420_v22  ;;  %1530 = vmatmul.f32.gmra.mxu1 %v8227_v12  ;;  %1619 = vmatmul.f32.vlgmr.msra.gmra.mxu0 %v8219_v21  ;;  %v1744_v41 = vsub.f32 %v1742_v2, %v1743_v4  ;;  %v8256_v22 = vand.u32 4294901760, %v7344_v62  ;;  %v7343_v0 = vld [vmem:[%s9578_s9 + $0x30] sm:$0xff] }
 0x318   :  { %v1700_v28 = vand.u32 4294901760, %v1449_v1  ;;  %v1745_v6 = vand.u32 4294901760, %v1744_v41 }
 0x31a   :  { %v1736_v3 = vsub.f32 %v1449_v1, %v1700_v28  ;;  %1701 = vmatpush.msrb.mxu2 %v1700_v28  ;;  %1802 = vmatpush.msrb.mxu1 %v1700_v28  ;;  %v8263_v1 = vsub.f32 %v7344_v62, %v8256_v22 }
 0x31c   :  { %1703 = vmatpush.msrb.mxu2 %v1702_v16  ;;  %1772 = vmatpush.msrb.mxu0 %v1736_v3  ;;  %v1737_v29 = vand.u32 4294901760, %v1736_v3 }
 0x31d   :  { %1804 = vmatpush.msrb.mxu1 %v1702_v16 }
 0x31e   :  { %1623 = vmatmul.f32.gmra.mxu0 %v8227_v12  ;;  %1646 = vmatmul.f32.vlgmr.msra.gmra.mxu1 %v8219_v21  ;;  %v1738_v40 = vsub.f32 %v1736_v3, %v1737_v29  ;;  %v1939_v3 = vand.u32 4294901760, %v8263_v1 }
 0x31f   :  { %1775 = vmatpush.msrb.mxu0 %v1742_v2  ;;  %1835 = vmatpush.msra.mxu2 %v1737_v29  ;;  %v8265_v2 = vand.u32 4294901760, %v7343_v0 }
 0x320   :  { %v1739_v50 = vand.u32 4294901760, %v1738_v40  ;;  %v7341_v40 = vld [vmem:[%s9578_s9 + $0x20] sm:$0xff]  ;;  %v1940_v41 = vsub.f32 %v8263_v1, %v1939_v3 }
 0x321   :  { %1839 = vmatpush.msra.mxu2 %v1743_v4  ;;  %1901 = vmatpush.msra.mxu0 %v8256_v22  ;;  %v8275_v29 = vsub.f32 %v7343_v0, %v8265_v2 }
 0x322   :  { %1740 = vmatpush.msrb.mxu3 %v1739_v50 }
 0x323   :  { %1903 = vmatpush.msra.mxu0 %v8265_v2  ;;  %v1945_v50 = vand.u32 4294901760, %v8275_v29 }
 0x324   :  { %1746 = vmatpush.msrb.mxu3 %v1745_v6  ;;  %v8283_v6 = vand.u32 4294901760, %v7341_v40 }
 0x326   :  { %1864 = vmatpush.msra.mxu3 %v1700_v28  ;;  %1650 = vmatmul.f32.gmra.mxu1 %v8227_v12  ;;  %v8240_v12 = vld [vmem:[%s9581_s1] sm:$0xff]  ;;  %v7342_v28 = vld [vmem:[%s9578_s9 + $0x28] sm:$0xff] }
 0x327   :  { %v8272_v4 = vand.u32 4294901760, %v7342_v28 }
 0x328   :  { %1866 = vmatpush.msra.mxu3 %v1702_v16 }
 0x329   :  { %1905 = vmatpush.msra.mxu0 %v8272_v4 }
 0x32b   :  { %1907 = vmatpush.msra.mxu0 %v8283_v6 }
 0x383   :  { %v1488_v7 = vpop.f32.mrf.mxu0 }
 0x389   :  { %v1587_v25 = vpop.f32.mrf.mxu3 }
 0x38b   :  { %v1496_v8 = vpop.f32.mrf.mxu0  ;;  %v1527_v13 = vpop.f32.mrf.mxu1 }
 0x38c   :  { %v1528_v14 = vadd.f32 %v1527_v13, %v1488_v7  ;;  %v1557_v19 = vpop.f32.mrf.mxu2  ;;  %v8286_v7 = vsub.f32 %v7342_v28, %v8272_v4  ;;  %v1946_v13 = vsub.f32 %v8275_v29, %v1945_v50 }
 0x38e   :  { %v1558_v21 = vadd.f32 %v1557_v19, %v1528_v14  ;;  %v1951_v14 = vand.u32 4294901760, %v8286_v7  ;;  %v8292_v19 = vsub.f32 %v7341_v40, %v8283_v6 }
 0x390   :  { %v1588_v38 = vadd.f32 %v1587_v25, %v1558_v21  ;;  %v1952_v21 = vsub.f32 %v8286_v7, %v1951_v14  ;;  %v1957_v25 = vand.u32 4294901760, %v8292_v19 }
 0x392   :  { %v1593_v18 = vpop.f32.mrf.mxu3 }
 0x393   :  { %v1531_v20 = vpop.f32.mrf.mxu1  ;;  %v1620_v33 = vpop.f32.mrf.mxu0 }
 0x394   :  { %v1532_v34 = vadd.f32 %v1531_v20, %v1496_v8  ;;  %v1621_v5 = vadd.f32 %v1620_v33, %v1588_v38  ;;  %v1562_v9 = vpop.f32.mrf.mxu2  ;;  %v1941_v8 = vand.u32 4294901760, %v1940_v41  ;;  %v1947_v20 = vand.u32 4294901760, %v1946_v13 }
 0x395   :  { %v1953_v33 = vand.u32 4294901760, %v1952_v21 }
 0x396   :  { %v1563_v15 = vadd.f32 %v1562_v9, %v1532_v34  ;;  %1942 = vmatpush.msra.mxu1 %v1941_v8  ;;  %v1958_v34 = vsub.f32 %v8292_v19, %v1957_v25 }
 0x398   :  { %v1594_v26 = vadd.f32 %v1593_v18, %v1563_v15  ;;  %1948 = vmatpush.msra.mxu1 %v1947_v20  ;;  %v1959_v38 = vand.u32 4294901760, %v1958_v34  ;;  %v7349_v18 = vld [vmem:[%s9537_s11 + $0x38] sm:$0xff] }
 0x39a   :  { %1954 = vmatpush.msra.mxu1 %v1953_v33 }
 0x39b   :  { %v1647_v11 = vpop.f32.mrf.mxu1  ;;  %v1624_v24 = vpop.f32.mrf.mxu0 }
 0x39c   :  { %v1648_v17 = vadd.f32 %v1647_v11, %v1621_v5  ;;  %v1625_v32 = vadd.f32 %v1624_v24, %v1594_v26  ;;  %1960 = vmatpush.msra.mxu1 %v1959_v38  ;;  %v8305_v26 = vand.u32 4294901760, %v7349_v18  ;;  %v7351_v38 = vld [vmem:[%s9539_s13 + $0x20] sm:$0xff] }
 0x39e   :  { %v1654_v46 = vmul.f32 0.25, %v1648_v17 }
 0x3a0   :  { %v1656_v30 = vadd.f32 %v1654_v46, %v8240_v12 }
 0x3a2   :  { %v1658_v35 = vsel %vm1451_vm7, %v1656_v30, -inf }
 0x3a3   :  { %v1651_v36 = vpop.f32.mrf.mxu1  ;;  %1659 = vmax.xlane.f32.xlu2 %v1658_v35 }
 0x3a4   :  { %v1652_v51 = vadd.f32 %v1651_v36, %v1625_v32  ;;  %v8312_v36 = vsub.f32 %v7349_v18, %v8305_v26 }
 0x3a6   :  { %v1655_v44 = vmul.f32 0.25, %v1652_v51 }
 0x3a8   :  { %v1657_v47 = vadd.f32 %v1655_v44, %v8247_v42 }
 0x3aa   :  { %v1661_v48 = vsel %vm1451_vm7, %v1657_v47, -inf }
 0x3ab   :  { %1662 = vmax.xlane.f32.xlu0 %v1661_v48 }
 0x416   :  { %v1660_v52 = vpop.xlane.xlu2 %1659 }
 0x417   :  { %v1664_v53 = vsub.f32 %v1656_v30, %v1660_v52  ;;  %v7348_v30 = vld [vmem:[%s9537_s11 + $0x30] sm:$0xff] }
 0x418   :  { %v8314_v51 = vand.u32 4294901760, %v7348_v30 }
 0x419   :  { %v1666_v54 = vmul.f32 1.442695, %v1664_v53 }
 0x41a   :  { %v8321_v52 = vsub.f32 %v7348_v30, %v8314_v51 }
 0x41b   :  { %7454 = vpow2.f32 %v1666_v54 }
 0x41e   :  { %v1663_v27 = vpop.xlane.xlu0 %1662 }
 0x41f   :  { %v1665_v56 = vsub.f32 %v1657_v47, %v1663_v27  ;;  %v7347_v47 = vld [vmem:[%s9537_s11 + $0x28] sm:$0xff]  ;;  %v2165_v27 = vand.u32 4294901760, %v8312_v36 }
 0x420   :  { %v8323_v53 = vand.u32 4294901760, %v7347_v47 }
 0x421   :  { %v7455_v59 = vpop.eup %7454  ;;  %v1668_v37 = vmul.f32 1.442695, %v1665_v56  ;;  %v7346_v56 = vld [vmem:[%s9537_s11 + $0x20] sm:$0xff] }
 0x422   :  { %v1670_v60 = vsel %vm1451_vm7, %v7455_v59, 0.0 }
 0x423   :  { %7456 = vpow2.f32 %v1668_v37  ;;  %1671 = vadd.xlane.f32.xlu1 %v1670_v60  ;;  %v2171_v60 = vand.u32 4294901760, %v8321_v52 }
 0x429   :  { %v7457_v16 = vpop.eup %7456 }
 0x42a   :  { %v1673_v49 = vsel %vm1451_vm7, %v7457_v16, 0.0 }
 0x42b   :  { %1674 = vadd.xlane.f32.xlu2 %v1673_v49  ;;  %v8339_v49 = vand.u32 4294901760, %v7346_v56 }
 0x42d   :  { %v8350_v28 = vsub.f32 %v7346_v56, %v8339_v49 }
 0x496   :  { %v1672_v5 = vpop.xlane.xlu1 %1671 }
 0x497   :  { %7458 = vrcp.f32 %v1672_v5 }
 0x49d   :  { %v7459_v9 = vpop.eup %7458 }
 0x49e   :  { %v1678_v11 = vmul.f32 %v7459_v9, %v7455_v59  ;;  %v1675_v15 = vpop.xlane.xlu2 %1674  ;;  %v8404_v9 = vand.u32 4294901760, %v7351_v38 }
 0x49f   :  { %7460 = vrcp.f32 %v1675_v15 }
 0x4a0   :  { %v1681_v17 = vsel %vm1451_vm7, %v1678_v11, 0 }
 0x4a1   :  { %v8298_v46 = vand.u32 4294901760, %v1681_v17 }
 0x4a3   :  { %1748 = vmatmul.f32.vlgmr.msrb.gmra.mxu3 %v8298_v46  ;;  %v1705_v24 = vsub.f32 %v1681_v17, %v8298_v46  ;;  %v2408_v17 = vsub.f32 %v7351_v38, %v8404_v9 }
 0x4a4   :  { %2018 = vmatpush.msrb.mxu3 %v8256_v22 }
 0x4a5   :  { %v7461_v32 = vpop.eup %7460  ;;  %1778 = vmatmul.f32.vlgmr.msrb.gmra.mxu0 %v1705_v24  ;;  %v1706_v35 = vand.u32 4294901760, %v1705_v24  ;;  %v2409_v30 = vand.u32 4294901760, %v2408_v17 }
 0x4a6   :  { %v1679_v44 = vmul.f32 %v7461_v32, %v7457_v16  ;;  %2020 = vmatpush.msrb.mxu3 %v8265_v2  ;;  %2053 = vmatpush.msrb.mxu0 %v1939_v3  ;;  %v8337_v16 = vsub.f32 %v7347_v47, %v8323_v53 }
 0x4a7   :  { %1808 = vmatmul.f32.vlgmr.msrb.gmra.mxu1 %v1706_v35  ;;  %v1707_v48 = vsub.f32 %v1705_v24, %v1706_v35 }
 0x4a8   :  { %v1684_v54 = vsel %vm1451_vm7, %v1679_v44, 0  ;;  %2022 = vmatpush.msrb.mxu3 %v8272_v4  ;;  %2057 = vmatpush.msrb.mxu0 %v1945_v50  ;;  %v2177_v0 = vand.u32 4294901760, %v8337_v16 }
 0x4a9   :  { %v1708_v59 = vand.u32 4294901760, %v1707_v48  ;;  %v8331_v37 = vand.u32 4294901760, %v1684_v54  ;;  %2088 = vmatpush.msrb.mxu1 %v8256_v22  ;;  %v2166_v22 = vsub.f32 %v8312_v36, %v2165_v27 }
 0x4aa   :  { %2024 = vmatpush.msrb.mxu3 %v8283_v6  ;;  %2061 = vmatpush.msrb.mxu0 %v1951_v14  ;;  %v2178_v50 = vsub.f32 %v8337_v16, %v2177_v0 }
 0x4ab   :  { %1709 = vmatmul.f32.vlgmr.msrb.gmra.mxu2 %v1708_v59  ;;  %1752 = vmatmul.f32.gmra.mxu3 %v8331_v37  ;;  %v1713_v62 = vsub.f32 %v1684_v54, %v8331_v37  ;;  %v2167_v41 = vand.u32 4294901760, %v2166_v22 }
 0x4ac   :  { %2090 = vmatpush.msrb.mxu1 %v8265_v2  ;;  %1984 = vmatpush.msrb.mxu2 %v8263_v1  ;;  %v2172_v2 = vsub.f32 %v8321_v52, %v2171_v60  ;;  %v2183_v1 = vand.u32 4294901760, %v8350_v28 }
 0x4ad   :  { %1783 = vmatmul.f32.gmra.mxu0 %v1713_v62  ;;  %v1714_v3 = vand.u32 4294901760, %v1713_v62 }
 0x4ae   :  { %2065 = vmatpush.msrb.mxu0 %v1957_v25  ;;  %2092 = vmatpush.msrb.mxu1 %v8272_v4  ;;  %v2173_v4 = vand.u32 4294901760, %v2172_v2  ;;  %v2184_v13 = vsub.f32 %v8350_v28, %v2183_v1  ;;  %v7352_v25 = vld [vmem:[%s9539_s13 + $0x28] sm:$0xff] }
 0x4af   :  { %1814 = vmatmul.f32.gmra.mxu1 %v1714_v3  ;;  %v1715_v40 = vsub.f32 %v1713_v62, %v1714_v3  ;;  %1987 = vmatpush.msrb.mxu2 %v8275_v29  ;;  %v2179_v29 = vand.u32 4294901760, %v2178_v50  ;;  %v8392_v33 = vand.u32 4294901760, %v7352_v25  ;;  %v7426_v50 = vld [vmem:[%s9538_s12 + $0x1] ss:$0 sm:$0xff] }
 0x4b0   :  { %2094 = vmatpush.msrb.mxu1 %v8283_v6  ;;  %v2185_v6 = vand.u32 4294901760, %v2184_v13 }
 0x4b1   :  { %v1716_v8 = vand.u32 4294901760, %v1715_v40  ;;  %1990 = vmatpush.msrb.mxu2 %v8286_v7  ;;  %v7354_v7 = vld [vmem:[%s9539_s13 + $0x38] sm:$0xff]  ;;  %v8409_v11 = vsub.f32 %v7352_v25, %v8392_v33 }
 0x4b2   :  { %v8374_v14 = vand.u32 4294901760, %v7354_v7 }
 0x4b3   :  { %1717 = vmatmul.f32.gmra.mxu2 %v1716_v8  ;;  %1868 = vmatmul.f32.vlgmr.msra.gmra.mxu3 %v8298_v46  ;;  %v2403_v18 = vand.u32 4294901760, %v8409_v11 }
 0x4b4   :  { %1993 = vmatpush.msrb.mxu2 %v8292_v19  ;;  %2168 = vmatpush.msra.mxu3 %v2167_v41  ;;  %v7353_v19 = vld [vmem:[%s9539_s13 + $0x30] sm:$0xff]  ;;  %v8382_v20 = vsub.f32 %v7354_v7, %v8374_v14 }
 0x4b5   :  { %1913 = vmatmul.f32.vlgmr.msra.gmra.mxu0 %v8126_v58  ;;  %v8384_v21 = vand.u32 4294901760, %v7353_v19  ;;  %v2404_v35 = vsub.f32 %v8409_v11, %v2403_v18 }
 0x4b6   :  { %2174 = vmatpush.msra.mxu3 %v2173_v4  ;;  %2210 = vmatpush.msra.mxu0 %v8312_v36  ;;  %v2391_v5 = vand.u32 4294901760, %v8382_v20 }
 0x4b7   :  { %1962 = vmatmul.f32.vlgmr.msra.gmra.mxu1 %v8075_v23  ;;  %v8397_v34 = vsub.f32 %v7353_v19, %v8384_v21  ;;  %v2405_v47 = vand.u32 4294901760, %v2404_v35 }
 0x4b8   :  { %2180 = vmatpush.msra.mxu3 %v2179_v29  ;;  %2213 = vmatpush.msra.mxu0 %v8321_v52 }
 0x4b9   :  { %2244 = vmatpush.msra.mxu1 %v8305_v26  ;;  %v2397_v15 = vand.u32 4294901760, %v8397_v34 }
 0x4ba   :  { %2186 = vmatpush.msra.mxu3 %v2185_v6  ;;  %2216 = vmatpush.msra.mxu0 %v8337_v16 }
 0x4bb   :  { %1841 = vmatmul.f32.vlgmr.msra.gmra.mxu2 %v8298_v46  ;;  %1872 = vmatmul.f32.gmra.mxu3 %v8331_v37  ;;  %v2392_v46 = vsub.f32 %v8382_v20, %v2391_v5  ;;  %v2398_v24 = vsub.f32 %v8397_v34, %v2397_v15 }
 0x4bc   :  { %2246 = vmatpush.msra.mxu1 %v8314_v51  ;;  %2127 = vmatpush.msra.mxu2 %v8305_v26 }
 0x4bd   :  { %1921 = vmatmul.f32.gmra.mxu0 %v8163_v55  ;;  %v2393_v32 = vand.u32 4294901760, %v2392_v46  ;;  %v2399_v44 = vand.u32 4294901760, %v2398_v24 }
 0x4be   :  { %2219 = vmatpush.msra.mxu0 %v8350_v28  ;;  %2248 = vmatpush.msra.mxu1 %v8323_v53  ;;  %v7425_v28 = vld [vmem:[%s9536_s10 + $0x1] ss:$0 sm:$0xff] }
 0x4bf   :  { %1966 = vmatmul.f32.gmra.mxu1 %v8124_v57  ;;  %2129 = vmatpush.msra.mxu2 %v8314_v51 }
 0x4c0   :  { %2250 = vmatpush.msra.mxu1 %v8339_v49 }
 0x4c1   :  { %2131 = vmatpush.msra.mxu2 %v8323_v53 }
 0x4c3   :  { %1845 = vmatmul.f32.gmra.mxu2 %v8331_v37  ;;  %2028 = vmatmul.f32.vlgmr.msrb.gmra.mxu3 %v8092_v39 }
 0x4c4   :  { %2133 = vmatpush.msra.mxu2 %v8339_v49  ;;  %2314 = vmatpush.msrb.mxu3 %v8305_v26  ;;  %v2410_v26 = vsub.f32 %v2408_v17, %v2409_v30 }
 0x4c5   :  { %2067 = vmatmul.f32.vlgmr.msrb.gmra.mxu0 %v8075_v23 }
 0x4c6   :  { %2316 = vmatpush.msrb.mxu3 %v8314_v51  ;;  %2353 = vmatpush.msrb.mxu0 %v8374_v14  ;;  %v2411_v51 = vand.u32 4294901760, %v2410_v26 }
 0x4c7   :  { %2096 = vmatmul.f32.vlgmr.msrb.gmra.mxu1 %v8075_v23 }
 0x4c8   :  { %2318 = vmatpush.msrb.mxu3 %v8323_v53  ;;  %2355 = vmatpush.msrb.mxu0 %v8384_v21 }
 0x4c9   :  { %2394 = vmatpush.msrb.mxu1 %v2393_v32 }
 0x4ca   :  { %2320 = vmatpush.msrb.mxu3 %v8339_v49  ;;  %2357 = vmatpush.msrb.mxu0 %v8392_v33 }
 0x4cb   :  { %1996 = vmatmul.f32.vlgmr.msrb.gmra.mxu2 %v8081_v31  ;;  %2034 = vmatmul.f32.gmra.mxu3 %v8149_v63 }
 0x4cc   :  { %2400 = vmatpush.msrb.mxu1 %v2399_v44  ;;  %2279 = vmatpush.msrb.mxu2 %v2165_v27 }
 0x4cd   :  { %2071 = vmatmul.f32.gmra.mxu0 %v8124_v57 }
 0x4ce   :  { %2359 = vmatpush.msrb.mxu0 %v8404_v9  ;;  %2406 = vmatpush.msrb.mxu1 %v2405_v47 }
 0x4cf   :  { %2100 = vmatmul.f32.gmra.mxu1 %v8124_v57  ;;  %2283 = vmatpush.msrb.mxu2 %v2171_v60 }
 0x4d0   :  { %2412 = vmatpush.msrb.mxu1 %v2411_v51 }
 0x4d1   :  { %2287 = vmatpush.msrb.mxu2 %v2177_v0 }
 0x4d3   :  { %2001 = vmatmul.f32.gmra.mxu2 %v8137_v61  ;;  %2188 = vmatmul.f32.vlgmr.msra.gmra.mxu3 %v8075_v23 }
 0x4d4   :  { %2291 = vmatpush.msrb.mxu2 %v2183_v1  ;;  %2470 = vmatpush.msra.mxu3 %v8374_v14 }
 0x4d5   :  { %2222 = vmatmul.f32.vlgmr.msra.gmra.mxu0 %v8081_v31 }
 0x4d6   :  { %2472 = vmatpush.msra.mxu3 %v8384_v21  ;;  %2505 = vmatpush.msra.mxu0 %v2391_v5 }
 0x4d7   :  { %2254 = vmatmul.f32.vlgmr.msra.gmra.mxu1 %v8092_v39 }
 0x4d8   :  { %2474 = vmatpush.msra.mxu3 %v8392_v33  ;;  %2509 = vmatpush.msra.mxu0 %v2397_v15 }
 0x4d9   :  { %2540 = vmatpush.msra.mxu1 %v8374_v14 }
 0x4da   :  { %2476 = vmatpush.msra.mxu3 %v8404_v9  ;;  %2513 = vmatpush.msra.mxu0 %v2403_v18 }
 0x4db   :  { %2139 = vmatmul.f32.vlgmr.msra.gmra.mxu2 %v8126_v58  ;;  %2192 = vmatmul.f32.gmra.mxu3 %v8124_v57 }
 0x4dc   :  { %2542 = vmatpush.msra.mxu1 %v8384_v21  ;;  %2436 = vmatpush.msra.mxu2 %v8382_v20 }
 0x4dd   :  { %2227 = vmatmul.f32.gmra.mxu0 %v8137_v61 }
 0x4de   :  { %2517 = vmatpush.msra.mxu0 %v2409_v30  ;;  %2544 = vmatpush.msra.mxu1 %v8392_v33 }
 0x4df   :  { %2260 = vmatmul.f32.gmra.mxu1 %v8149_v63  ;;  %2439 = vmatpush.msra.mxu2 %v8397_v34 }
 0x4e0   :  { %2546 = vmatpush.msra.mxu1 %v8404_v9 }
 0x4e1   :  { %2442 = vmatpush.msra.mxu2 %v8409_v11 }
 0x4e3   :  { %2147 = vmatmul.f32.gmra.mxu2 %v8163_v55  ;;  %2322 = vmatmul.f32.vlgmr.msrb.gmra.mxu3 %v8075_v23 }
 0x4e4   :  { %2445 = vmatpush.msra.mxu2 %v2408_v17 }
 0x4e5   :  { %2365 = vmatmul.f32.vlgmr.msrb.gmra.mxu0 %v8126_v58 }
 0x4e7   :  { %2414 = vmatmul.f32.vlgmr.msrb.gmra.mxu1 %v8075_v23 }
 0x4eb   :  { %2293 = vmatmul.f32.vlgmr.msrb.gmra.mxu2 %v8075_v23  ;;  %2326 = vmatmul.f32.gmra.mxu3 %v8124_v57 }
 0x4ed   :  { %2373 = vmatmul.f32.gmra.mxu0 %v8163_v55 }
 0x4ef   :  { %2418 = vmatmul.f32.gmra.mxu1 %v8124_v57 }
 0x4f3   :  { %2297 = vmatmul.f32.gmra.mxu2 %v8124_v57  ;;  %2480 = vmatmul.f32.vlgmr.msra.gmra.mxu3 %v8092_v39 }
 0x4f5   :  { %2519 = vmatmul.f32.vlgmr.msra.gmra.mxu0 %v8075_v23 }
 0x4f7   :  { %2548 = vmatmul.f32.vlgmr.msra.gmra.mxu1 %v8075_v23 }
 0x4fb   :  { %2448 = vmatmul.f32.vlgmr.msra.gmra.mxu2 %v8081_v31  ;;  %2486 = vmatmul.f32.gmra.mxu3 %v8149_v63 }
 0x4fd   :  { %2523 = vmatmul.f32.gmra.mxu0 %v8124_v57 }
 0x4ff   :  { %2552 = vmatmul.f32.gmra.mxu1 %v8124_v57 }
 0x503   :  { %2453 = vmatmul.f32.gmra.mxu2 %v8137_v61 }
 0x522   :  { %v8482_v58 = vpop.f32.mrf.mxu0 }
 0x524   :  { %v8484_v55 = vpop.f32.mrf.mxu1 }
 0x526   :  { %v8486_v36 = vpop.f32.mrf.mxu3 }
 0x52a   :  { %v8488_v39 = vpop.f32.mrf.mxu0 }
 0x52c   :  { %v8490_v48 = vpop.f32.mrf.mxu1 }
 0x52e   :  { %v8492_v23 = vpop.f32.mrf.mxu2  ;;  %v8494_v31 = vpop.f32.mrf.mxu3 }
 0x532   :  { %v1914_v63 = vpop.f32.mrf.mxu0 }
 0x533   :  { %v1915_v40 = vadd.f32 %v7425_v28, %v1914_v63 }
 0x534   :  { %v1963_v52 = vpop.f32.mrf.mxu1 }
 0x535   :  { %v1964_v8 = vadd.f32 %v1963_v52, %v1915_v40 }
 0x536   :  { %v8496_v53 = vpop.f32.mrf.mxu2  ;;  %v8498_v57 = vpop.f32.mrf.mxu3 }
 0x53a   :  { %v1922_v61 = vpop.f32.mrf.mxu0 }
 0x53b   :  { %v1923_v7 = vadd.f32 %v7425_v28, %v1922_v61 }
 0x53c   :  { %v1967_v54 = vpop.f32.mrf.mxu1 }
 0x53d   :  { %v1968_v25 = vadd.f32 %v1967_v54, %v1923_v7  ;;  %v7427_v54 = vld [vmem:[%s9540_s14 + $0x1] ss:$0 sm:$0xff] }
 0x53e   :  { %v8500_v27 = vpop.f32.mrf.mxu2  ;;  %v8502_v56 = vpop.f32.mrf.mxu3 }
 0x542   :  { %v2068_v59 = vpop.f32.mrf.mxu0 }
 0x544   :  { %v2097_v37 = vpop.f32.mrf.mxu1 }
 0x546   :  { %v8504_v60 = vpop.f32.mrf.mxu2  ;;  %v2029_v16 = vpop.f32.mrf.mxu3 }
 0x54a   :  { %v2072_v49 = vpop.f32.mrf.mxu0 }
 0x54c   :  { %v2101_v0 = vpop.f32.mrf.mxu1 }
 0x54e   :  { %v1997_v62 = vpop.f32.mrf.mxu2  ;;  %v2035_v22 = vpop.f32.mrf.mxu3 }
 0x54f   :  { %v1998_v13 = vadd.f32 %v1997_v62, %v1964_v8 }
 0x551   :  { %v2030_v19 = vadd.f32 %v2029_v16, %v1998_v13 }
 0x552   :  { %v2223_v1 = vpop.f32.mrf.mxu0 }
 0x553   :  { %v2069_v34 = vadd.f32 %v2068_v59, %v2030_v19 }
 0x554   :  { %v2255_v41 = vpop.f32.mrf.mxu1 }
 0x555   :  { %v2098_v15 = vadd.f32 %v2097_v37, %v2069_v34 }
 0x556   :  { %v2002_v3 = vpop.f32.mrf.mxu2  ;;  %v2189_v2 = vpop.f32.mrf.mxu3 }
 0x557   :  { %v2003_v38 = vadd.f32 %v2002_v3, %v1968_v25  ;;  %v2557_v44 = vsel %vm1451_vm7, %v2098_v15, 0 }
 0x558   :  { %v8513_v63 = vand.u32 4294901760, %v2557_v44 }
 0x559   :  { %v2036_v17 = vadd.f32 %v2035_v22, %v2003_v38 }
 0x55a   :  { %v2228_v14 = vpop.f32.mrf.mxu0  ;;  %v2587_v22 = vsub.f32 %v2557_v44, %v8513_v63 }
 0x55b   :  { %v2073_v26 = vadd.f32 %v2072_v49, %v2036_v17 }
 0x55c   :  { %v2261_v20 = vpop.f32.mrf.mxu1 }
 0x55d   :  { %v2102_v52 = vadd.f32 %v2101_v0, %v2073_v26 }
 0x55e   :  { %v2140_v4 = vpop.f32.mrf.mxu2  ;;  %v2193_v29 = vpop.f32.mrf.mxu3 }
 0x55f   :  { %v2141_v6 = vadd.f32 %v7426_v50, %v2140_v4  ;;  %v2560_v49 = vsel %vm1451_vm7, %v2102_v52, 0 }
 0x560   :  { %v8521_v0 = vand.u32 4294901760, %v2560_v49 }
 0x561   :  { %v2190_v21 = vadd.f32 %v2189_v2, %v2141_v6 }
 0x562   :  { %v2366_v46 = vpop.f32.mrf.mxu0 }
 0x563   :  { %v2224_v9 = vadd.f32 %v2223_v1, %v2190_v21  ;;  %v2367_v1 = vadd.f32 %v7427_v54, %v2366_v46 }
 0x564   :  { %v2415_v30 = vpop.f32.mrf.mxu1 }
 0x565   :  { %v2256_v24 = vadd.f32 %v2255_v41, %v2224_v9  ;;  %v2416_v13 = vadd.f32 %v2415_v30, %v2367_v1 }
 0x566   :  { %v2148_v33 = vpop.f32.mrf.mxu2  ;;  %v2323_v11 = vpop.f32.mrf.mxu3 }
 0x567   :  { %v2149_v5 = vadd.f32 %v7426_v50, %v2148_v33  ;;  %v2588_v50 = vand.u32 4294901760, %v2587_v22 }
 0x569   :  { %v2194_v18 = vadd.f32 %v2193_v29, %v2149_v5  ;;  %v2589_v19 = vsub.f32 %v2587_v22, %v2588_v50 }
 0x56a   :  { %v2374_v16 = vpop.f32.mrf.mxu0 }
 0x56b   :  { %v2229_v51 = vadd.f32 %v2228_v14, %v2194_v18  ;;  %v2375_v34 = vadd.f32 %v7427_v54, %v2374_v16  ;;  %v2590_v15 = vand.u32 4294901760, %v2589_v19 }
 0x56c   :  { %v2419_v3 = vpop.f32.mrf.mxu1 }
 0x56d   :  { %v2262_v37 = vadd.f32 %v2261_v20, %v2229_v51  ;;  %v2595_v20 = vsub.f32 %v2560_v49, %v8521_v0 }
 0x56e   :  { %v2294_v32 = vpop.f32.mrf.mxu2  ;;  %v2327_v61 = vpop.f32.mrf.mxu3 }
 0x56f   :  { %v2295_v35 = vadd.f32 %v2294_v32, %v2256_v24  ;;  %v2596_v17 = vand.u32 4294901760, %v2595_v20  ;;  %v2420_v24 = vadd.f32 %v2419_v3, %v2375_v34 }
 0x571   :  { %v2324_v47 = vadd.f32 %v2323_v11, %v2295_v35  ;;  %v2597_v44 = vsub.f32 %v2595_v20, %v2596_v17 }
 0x572   :  { %v2520_v21 = vpop.f32.mrf.mxu0 }
 0x573   :  { %v2563_v59 = vsel %vm1451_vm7, %v2324_v47, 0 }
 0x574   :  { %v2584_v2 = vand.u32 4294901760, %v2563_v59  ;;  %v2549_v5 = vpop.f32.mrf.mxu1 }
 0x576   :  { %v2298_v62 = vpop.f32.mrf.mxu2  ;;  %v2624_v4 = vsub.f32 %v2563_v59, %v2584_v2  ;;  %v2481_v6 = vpop.f32.mrf.mxu3  ;;  %v2598_v59 = vand.u32 4294901760, %v2597_v44 }
 0x577   :  { %v2299_v28 = vadd.f32 %v2298_v62, %v2262_v37 }
 0x578   :  { %v2625_v33 = vand.u32 4294901760, %v2624_v4 }
 0x579   :  { %v2328_v40 = vadd.f32 %v2327_v61, %v2299_v28 }
 0x57a   :  { %v2626_v18 = vsub.f32 %v2624_v4, %v2625_v33  ;;  %v2524_v61 = vpop.f32.mrf.mxu0 }
 0x57b   :  { %v2566_v41 = vsel %vm1451_vm7, %v2328_v40, 0 }
 0x57c   :  { %v2582_v8 = vand.u32 4294901760, %v2566_v41  ;;  %v2627_v47 = vand.u32 4294901760, %v2626_v18  ;;  %v2553_v37 = vpop.f32.mrf.mxu1 }
 0x57e   :  { %v2618_v29 = vsub.f32 %v2566_v41, %v2582_v8  ;;  %v2449_v7 = vpop.f32.mrf.mxu2  ;;  %2583 = vmatpush.xpose.msrb.mxu2 %v2582_v8  ;;  %2684 = vmatpush.xpose.msrb.mxu1 %v2582_v8  ;;  %v2487_v26 = vpop.f32.mrf.mxu3 }
 0x57f   :  { %v2450_v14 = vadd.f32 %v2449_v7, %v2416_v13 }
 0x580   :  { %2654 = vmatpush.xpose.msrb.mxu0 %v2618_v29  ;;  %v2619_v25 = vand.u32 4294901760, %v2618_v29 }
 0x581   :  { %v2482_v38 = vadd.f32 %v2481_v6, %v2450_v14 }
 0x582   :  { %2585 = vmatpush.xpose.msrb.mxu2 %v2584_v2  ;;  %2686 = vmatpush.xpose.msrb.mxu1 %v2584_v2  ;;  %v2620_v9 = vsub.f32 %v2618_v29, %v2619_v25 }
 0x583   :  { %v2521_v11 = vadd.f32 %v2520_v21, %v2482_v38 }
 0x584   :  { %2657 = vmatpush.xpose.msrb.mxu0 %v2624_v4  ;;  %v2621_v46 = vand.u32 4294901760, %v2620_v9 }
 0x585   :  { %v2550_v30 = vadd.f32 %v2549_v5, %v2521_v11  ;;  %2591 = vmatmul.f32.vlgmr.msrb.gmra.mxu2 %v2590_v15  ;;  %2690 = vmatmul.f32.vlgmr.msrb.gmra.mxu1 %v2588_v50 }
 0x586   :  { %2717 = vmatpush.xpose.msra.mxu2 %v2619_v25  ;;  %v2454_v32 = vpop.f32.mrf.mxu2  ;;  %2622 = vmatpush.xpose.msrb.mxu3 %v2621_v46 }
 0x587   :  { %v2455_v35 = vadd.f32 %v2454_v32, %v2420_v24  ;;  %2660 = vmatmul.f32.vlgmr.msrb.gmra.mxu0 %v2587_v22  ;;  %v2806_v52 = vand.u32 4294901760, %v2550_v30 }
 0x589   :  { %v2488_v51 = vadd.f32 %v2487_v26, %v2455_v35  ;;  %v2846_v62 = vsub.f32 %v2550_v30, %v2806_v52 }
 0x58a   :  { %2721 = vmatpush.xpose.msra.mxu2 %v2625_v33  ;;  %2628 = vmatpush.xpose.msrb.mxu3 %v2627_v47 }
 0x58b   :  { %v2525_v54 = vadd.f32 %v2524_v61, %v2488_v51  ;;  %v2847_v49 = vand.u32 4294901760, %v2846_v62 }
 0x58d   :  { %v2554_v16 = vadd.f32 %v2553_v37, %v2525_v54  ;;  %2599 = vmatmul.f32.gmra.mxu2 %v2598_v59  ;;  %2630 = vmatmul.f32.vlgmr.msrb.gmra.mxu3 %v8513_v63  ;;  %v2848_v40 = vsub.f32 %v2846_v62, %v2847_v49 }
 0x58e   :  { %2746 = vmatpush.xpose.msra.mxu3 %v2582_v8  ;;  %2696 = vmatmul.f32.gmra.mxu1 %v2596_v17 }
 0x58f   :  { %2665 = vmatmul.f32.gmra.mxu0 %v2595_v20  ;;  %v2804_v22 = vand.u32 4294901760, %v2554_v16 }
 0x591   :  { %2805 = vmatpush.msra.mxu0 %v2804_v22  ;;  %v2840_v28 = vsub.f32 %v2554_v16, %v2804_v22 }
 0x592   :  { %2748 = vmatpush.xpose.msra.mxu3 %v2584_v2  ;;  %v2849_v2 = vand.u32 4294901760, %v2848_v40 }
 0x593   :  { %2807 = vmatpush.msra.mxu0 %v2806_v52  ;;  %2876 = vmatpush.msrb.mxu2 %v2840_v28  ;;  %v2841_v3 = vand.u32 4294901760, %v2840_v28 }
 0x595   :  { %2634 = vmatmul.f32.gmra.mxu3 %v8521_v0  ;;  %2723 = vmatmul.f32.vlgmr.msra.gmra.mxu2 %v8513_v63  ;;  %v2842_v1 = vsub.f32 %v2840_v28, %v2841_v3 }
 0x596   :  { %2906 = vmatpush.msrb.mxu3 %v2804_v22  ;;  %2879 = vmatpush.msrb.mxu2 %v2846_v62 }
 0x597   :  { %2939 = vmatpush.msrb.mxu0 %v2841_v3  ;;  %v2843_v41 = vand.u32 4294901760, %v2842_v1 }
 0x598   :  { %2908 = vmatpush.msrb.mxu3 %v2806_v52 }
 0x599   :  { %2943 = vmatpush.msrb.mxu0 %v2847_v49  ;;  %2844 = vmatpush.msra.mxu1 %v2843_v41 }
 0x59b   :  { %2850 = vmatpush.msra.mxu1 %v2849_v2 }
 0x59d   :  { %2968 = vmatpush.msrb.mxu1 %v2804_v22  ;;  %2727 = vmatmul.f32.gmra.mxu2 %v8521_v0 }
 0x59e   :  { %2750 = vmatmul.f32.vlgmr.msra.gmra.mxu3 %v8513_v63 }
 0x59f   :  { %2970 = vmatpush.msrb.mxu1 %v2806_v52 }
 0x5a6   :  { %2754 = vmatmul.f32.gmra.mxu3 %v8521_v0 }
 0x602   :  { %v2691_v14 = vpop.f32.mrf.mxu1 }
 0x604   :  { %v2661_v29 = vpop.f32.mrf.mxu0 }
 0x608   :  { %v2592_v50 = vpop.f32.mrf.mxu2 }
 0x60b   :  { %v2697_v9 = vpop.f32.mrf.mxu1 }
 0x60c   :  { %v2666_v33 = vpop.f32.mrf.mxu0 }
 0x610   :  { %v2600_v8 = vpop.f32.mrf.mxu2  ;;  %v2631_v4 = vpop.f32.mrf.mxu3 }
 0x611   :  { %v2632_v13 = vadd.f32 %v2631_v4, %v2592_v50 }
 0x613   :  { %v2662_v7 = vadd.f32 %v2661_v29, %v2632_v13 }
 0x615   :  { %v2692_v21 = vadd.f32 %v2691_v14, %v2662_v7  ;;  %v7357_v14 = vld [vmem:[%s9541_s15 + $0x18] sm:$0xff] }
 0x618   :  { %v2635_v6 = vpop.f32.mrf.mxu3  ;;  %v2724_v19 = vpop.f32.mrf.mxu2 }
 0x619   :  { %v2636_v20 = vadd.f32 %v2635_v6, %v2600_v8  ;;  %v2725_v25 = vadd.f32 %v2724_v19, %v2692_v21  ;;  %v3003_v19 = vand.u32 4294901760, %v7357_v14 }
 0x61b   :  { %v2667_v38 = vadd.f32 %v2666_v33, %v2636_v20  ;;  %v7356_v20 = vld [vmem:[%s9541_s15 + $0x10] sm:$0xff]  ;;  %v3039_v21 = vsub.f32 %v7357_v14, %v3003_v19  ;;  %3004 = vmatpush.msra.mxu2 %v3003_v19 }
 0x61d   :  { %v2698_v0 = vadd.f32 %v2697_v9, %v2667_v38  ;;  %v3040_v33 = vand.u32 4294901760, %v3039_v21 }
 0x61f   :  { %v3041_v38 = vsub.f32 %v3039_v21, %v3040_v33 }
 0x620   :  { %v2728_v11 = vpop.f32.mrf.mxu2 }
 0x621   :  { %v2751_v34 = vpop.f32.mrf.mxu3  ;;  %v2729_v17 = vadd.f32 %v2728_v11, %v2698_v0 }
 0x622   :  { %v2752_v5 = vadd.f32 %v2751_v34, %v2725_v25  ;;  %v3005_v25 = vand.u32 4294901760, %v7356_v20 }
 0x624   :  { %v2758_v63 = vmul.f32 0.25, %v2752_v5  ;;  %v3045_v34 = vsub.f32 %v7356_v20, %v3005_v25  ;;  %3006 = vmatpush.msra.mxu2 %v3005_v25 }
 0x626   :  { %v2760_v15 = vadd.f32 %v2758_v63, %v8240_v12  ;;  %v3046_v5 = vand.u32 4294901760, %v3045_v34  ;;  %v3042_v63 = vand.u32 4294901760, %v3041_v38 }
 0x628   :  { %v2762_v46 = vsel %vm1451_vm7, %v2760_v15, -inf  ;;  %v3047_v9 = vsub.f32 %v3045_v34, %v3046_v5  ;;  %3043 = vmatpush.msra.mxu3 %v3042_v63 }
 0x629   :  { %v2755_v18 = vpop.f32.mrf.mxu3  ;;  %2763 = vmax.xlane.f32.xlu0 %v2762_v46 }
 0x62a   :  { %v2756_v24 = vadd.f32 %v2755_v18, %v2729_v17  ;;  %v3048_v11 = vand.u32 4294901760, %v3047_v9  ;;  %v1876_v18 = vld [vmem:[%s9541_s15] sm:$0xff] }
 0x62c   :  { %v2759_v30 = vmul.f32 0.25, %v2756_v24  ;;  %3049 = vmatpush.msra.mxu3 %v3048_v11 }
 0x62e   :  { %v2761_v32 = vadd.f32 %v2759_v30, %v8247_v42  ;;  %v3201_v30 = vand.u32 4294901760, %v1876_v18 }
 0x630   :  { %v2765_v35 = vsel %vm1451_vm7, %v2761_v32, -inf }
 0x631   :  { %2766 = vmax.xlane.f32.xlu1 %v2765_v35 }
 0x69c   :  { %v2764_v44 = vpop.xlane.xlu0 %2763 }
 0x69d   :  { %v2768_v26 = vsub.f32 %v2760_v15, %v2764_v44  ;;  %v1877_v15 = vld [vmem:[%s9541_s15 + $0x8] sm:$0xff]  ;;  %v8556_v44 = vsub.f32 %v1876_v18, %v3201_v30 }
 0x69e   :  { %v3199_v46 = vand.u32 4294901760, %v1877_v15 }
 0x69f   :  { %v2770_v47 = vmul.f32 1.442695, %v2768_v26 }
 0x6a0   :  { %v8551_v24 = vsub.f32 %v1877_v15, %v3199_v46 }
 0x6a1   :  { %7462 = vpow2.f32 %v2770_v47 }
 0x6a2   :  { %v3236_v35 = vand.u32 4294901760, %v8551_v24 }
 0x6a4   :  { %v2767_v51 = vpop.xlane.xlu1 %2766  ;;  %v3237_v47 = vsub.f32 %v8551_v24, %v3236_v35 }
 0x6a5   :  { %v2769_v52 = vsub.f32 %v2761_v32, %v2767_v51  ;;  %v1750_v32 = vadd.f32 %v8486_v36, %v8492_v23  ;;  %v3242_v51 = vand.u32 4294901760, %v8556_v44  ;;  %v1754_v23 = vadd.f32 %v8494_v31, %v8496_v53 }
 0x6a7   :  { %v7463_v61 = vpop.eup %7462  ;;  %v2772_v12 = vmul.f32 1.442695, %v2769_v52  ;;  %v1780_v52 = vadd.f32 %v8482_v58, %v1750_v32  ;;  %v1785_v58 = vadd.f32 %v8488_v39, %v1754_v23 }
 0x6a8   :  { %v2774_v54 = vsel %vm1451_vm7, %v7463_v61, 0.0 }
 0x6a9   :  { %7464 = vpow2.f32 %v2772_v12  ;;  %2775 = vadd.xlane.f32.xlu2 %v2774_v54 }
 0x6af   :  { %v7465_v59 = vpop.eup %7464 }
 0x6b0   :  { %v2777_v37 = vsel %vm1451_vm7, %v7465_v59, 0.0 }
 0x6b1   :  { %2778 = vadd.xlane.f32.xlu0 %v2777_v37  ;;  %v3243_v37 = vsub.f32 %v8556_v44, %v3242_v51 }
 0x6b3   :  { %v3244_v36 = vand.u32 4294901760, %v3243_v37 }
 0x71c   :  { %v2776_v42 = vpop.xlane.xlu2 %2775 }
 0x71d   :  { %7466 = vrcp.f32 %v2776_v42  ;;  %v1810_v42 = vadd.f32 %v8484_v55, %v1780_v52 }
 0x723   :  { %v7467_v16 = vpop.eup %7466 }
 0x724   :  { %v2782_v62 = vmul.f32 %v7467_v16, %v7463_v61  ;;  %v2779_v22 = vpop.xlane.xlu0 %2778 }
 0x725   :  { %7468 = vrcp.f32 %v2779_v22  ;;  %v1843_v22 = vadd.f32 %v8500_v27, %v1810_v42 }
 0x726   :  { %v2785_v28 = vsel %vm1451_vm7, %v2782_v62, 0 }
 0x727   :  { %v2808_v49 = vand.u32 4294901760, %v2785_v28 }
 0x729   :  { %v2809_v3 = vsub.f32 %v2785_v28, %v2808_v49  ;;  %2852 = vmatmul.f32.vlgmr.msra.gmra.mxu1 %v2808_v49 }
 0x72a   :  { %3105 = vmatpush.msra.mxu1 %v3003_v19 }
 0x72b   :  { %v7469_v1 = vpop.eup %7468  ;;  %2882 = vmatmul.f32.vlgmr.msrb.gmra.mxu2 %v2809_v3  ;;  %v2810_v40 = vand.u32 4294901760, %v2809_v3 }
 0x72c   :  { %v2783_v41 = vmul.f32 %v7469_v1, %v7465_v59  ;;  %3107 = vmatpush.msra.mxu1 %v3005_v25  ;;  %3138 = vmatpush.msrb.mxu2 %v3040_v33  ;;  %v3238_v59 = vand.u32 4294901760, %v3237_v47 }
 0x72d   :  { %2912 = vmatmul.f32.vlgmr.msrb.gmra.mxu3 %v2810_v40  ;;  %v2811_v2 = vsub.f32 %v2809_v3, %v2810_v40  ;;  %v1870_v40 = vadd.f32 %v8498_v57, %v1843_v22 }
 0x72e   :  { %v2788_v50 = vsel %vm1451_vm7, %v2783_v41, 0  ;;  %3142 = vmatpush.msrb.mxu2 %v3046_v5  ;;  %3167 = vmatpush.msrb.mxu3 %v3003_v19 }
 0x72f   :  { %v2812_v8 = vand.u32 4294901760, %v2811_v2  ;;  %v2816_v4 = vand.u32 4294901760, %v2788_v50  ;;  %v3180_v55 = vsel %vm1451_vm7, %v1870_v40, 0 }
 0x730   :  { %3169 = vmatpush.msrb.mxu3 %v3005_v25 }
 0x731   :  { %2813 = vmatmul.f32.vlgmr.msra.gmra.mxu0 %v2812_v8  ;;  %2856 = vmatmul.f32.gmra.mxu1 %v2816_v4  ;;  %v2817_v13 = vsub.f32 %v2788_v50, %v2816_v4  ;;  %v1816_v50 = vadd.f32 %v8490_v48, %v1785_v58 }
 0x732   :  { %3075 = vmatpush.msra.mxu0 %v3039_v21 }
 0x733   :  { %2887 = vmatmul.f32.gmra.mxu2 %v2817_v13  ;;  %v2818_v29 = vand.u32 4294901760, %v2817_v13  ;;  %v1847_v8 = vadd.f32 %v8504_v60, %v1816_v50 }
 0x734   :  { %3078 = vmatpush.msra.mxu0 %v3045_v34 }
 0x735   :  { %2918 = vmatmul.f32.gmra.mxu3 %v2818_v29  ;;  %v2819_v6 = vsub.f32 %v2817_v13, %v2818_v29  ;;  %v3203_v29 = vand.u32 4294901760, %v3180_v55  ;;  %v1874_v57 = vadd.f32 %v8502_v56, %v1847_v8 }
 0x737   :  { %v2820_v7 = vand.u32 4294901760, %v2819_v6  ;;  %v3204_v60 = vsub.f32 %v3180_v55, %v3203_v29  ;;  %v3183_v25 = vsel %vm1451_vm7, %v1874_v57, 0 }
 0x738   :  { %v3211_v5 = vand.u32 4294901760, %v3183_v25 }
 0x739   :  { %2821 = vmatmul.f32.gmra.mxu0 %v2820_v7  ;;  %2972 = vmatmul.f32.vlgmr.msrb.gmra.mxu1 %v2808_v49  ;;  %v3205_v56 = vand.u32 4294901760, %v3204_v60 }
 0x73a   :  { %3239 = vmatpush.msrb.mxu1 %v3238_v59 }
 0x73b   :  { %v3206_v11 = vsub.f32 %v3204_v60, %v3205_v56 }
 0x73c   :  { %3245 = vmatpush.msrb.mxu1 %v3244_v36 }
 0x741   :  { %2945 = vmatmul.f32.vlgmr.msrb.gmra.mxu0 %v2808_v49  ;;  %2976 = vmatmul.f32.gmra.mxu1 %v2816_v4 }
 0x742   :  { %3200 = vmatpush.msrb.mxu0 %v3199_v46 }
 0x744   :  { %3202 = vmatpush.msrb.mxu0 %v3201_v30 }
 0x749   :  { %2949 = vmatmul.f32.gmra.mxu0 %v2816_v4 }
 0x7a6   :  { %v2853_v0 = vpop.f32.mrf.mxu1 }
 0x7ae   :  { %v2814_v17 = vpop.f32.mrf.mxu0  ;;  %v2857_v26 = vpop.f32.mrf.mxu1 }
 0x7af   :  { %v2854_v61 = vadd.f32 %v2853_v0, %v2814_v17  ;;  %v2883_v12 = vpop.f32.mrf.mxu2  ;;  %v3212_v0 = vsub.f32 %v3183_v25, %v3211_v5 }
 0x7b0   :  { %v2913_v62 = vpop.f32.mrf.mxu3 }
 0x7b1   :  { %v2884_v16 = vadd.f32 %v2883_v12, %v2854_v61  ;;  %v3213_v18 = vand.u32 4294901760, %v3212_v0 }
 0x7b3   :  { %v2914_v28 = vadd.f32 %v2913_v62, %v2884_v16 }
 0x7b6   :  { %v2822_v54 = vpop.f32.mrf.mxu0  ;;  %v2973_v3 = vpop.f32.mrf.mxu1 }
 0x7b7   :  { %v2858_v49 = vadd.f32 %v2857_v26, %v2822_v54  ;;  %v2888_v2 = vpop.f32.mrf.mxu2 }
 0x7b8   :  { %v2919_v4 = vpop.f32.mrf.mxu3 }
 0x7b9   :  { %v2889_v31 = vadd.f32 %v2888_v2, %v2858_v49 }
 0x7bb   :  { %v2920_v13 = vadd.f32 %v2919_v4, %v2889_v31 }
 0x7be   :  { %v2946_v1 = vpop.f32.mrf.mxu0  ;;  %v2977_v19 = vpop.f32.mrf.mxu1 }
 0x7bf   :  { %v2947_v41 = vadd.f32 %v2946_v1, %v2914_v28 }
 0x7c1   :  { %v2974_v53 = vadd.f32 %v2973_v3, %v2947_v41 }
 0x7c3   :  { %v2984_v27 = vsel %vm1451_vm7, %v2974_v53, 0 }
 0x7c4   :  { %v3007_v39 = vand.u32 4294901760, %v2984_v27 }
 0x7c6   :  { %v3008_v6 = vsub.f32 %v2984_v27, %v3007_v39  ;;  %v2950_v7 = vpop.f32.mrf.mxu0  ;;  %3051 = vmatmul.f32.vlgmr.msra.gmra.mxu3 %v3007_v39 }
 0x7c7   :  { %v2951_v14 = vadd.f32 %v2950_v7, %v2920_v13  ;;  %3301 = vmatpush.msra.mxu3 %v3199_v46 }
 0x7c8   :  { %v3009_v48 = vand.u32 4294901760, %v3008_v6  ;;  %3081 = vmatmul.f32.vlgmr.msra.gmra.mxu0 %v3008_v6 }
 0x7c9   :  { %v2978_v20 = vadd.f32 %v2977_v19, %v2951_v14  ;;  %3303 = vmatpush.msra.mxu3 %v3201_v30  ;;  %3334 = vmatpush.msra.mxu0 %v3236_v35 }
 0x7ca   :  { %v3010_v21 = vsub.f32 %v3008_v6, %v3009_v48  ;;  %3111 = vmatmul.f32.vlgmr.msra.gmra.mxu1 %v3009_v48  ;;  %v7428_v6 = vld [vmem:[%s9542_s16] ss:$0 sm:$0xff] }
 0x7cb   :  { %v2987_v33 = vsel %vm1451_vm7, %v2978_v20, 0  ;;  %3338 = vmatpush.msra.mxu0 %v3242_v51  ;;  %3363 = vmatpush.msra.mxu1 %v3199_v46  ;;  %v3207_v46 = vand.u32 4294901760, %v3206_v11 }
 0x7cc   :  { %v3011_v34 = vand.u32 4294901760, %v3010_v21  ;;  %v3015_v38 = vand.u32 4294901760, %v2987_v33 }
 0x7cd   :  { %3365 = vmatpush.msra.mxu1 %v3201_v30  ;;  %v3214_v30 = vsub.f32 %v3212_v0, %v3213_v18 }
 0x7ce   :  { %3012 = vmatmul.f32.vlgmr.msra.gmra.mxu2 %v3011_v34  ;;  %3055 = vmatmul.f32.gmra.mxu3 %v3015_v38  ;;  %v3016_v63 = vsub.f32 %v2987_v33, %v3015_v38 }
 0x7cf   :  { %3271 = vmatpush.msra.mxu2 %v8551_v24  ;;  %v3215_v32 = vand.u32 4294901760, %v3214_v30 }
 0x7d0   :  { %3086 = vmatmul.f32.gmra.mxu0 %v3016_v63  ;;  %v3017_v9 = vand.u32 4294901760, %v3016_v63 }
 0x7d1   :  { %3274 = vmatpush.msra.mxu2 %v8556_v44 }
 0x7d2   :  { %3117 = vmatmul.f32.gmra.mxu1 %v3017_v9  ;;  %v3018_v15 = vsub.f32 %v3016_v63, %v3017_v9 }
 0x7d4   :  { %v3019_v17 = vand.u32 4294901760, %v3018_v15 }
 0x7d6   :  { %3020 = vmatmul.f32.gmra.mxu2 %v3019_v17  ;;  %3171 = vmatmul.f32.vlgmr.msrb.gmra.mxu3 %v3007_v39 }
 0x7d8   :  { %3208 = vmatmul.f32.vlgmr.msrb.gmra.mxu0 %v3207_v46 }
 0x7da   :  { %3247 = vmatmul.f32.vlgmr.msrb.gmra.mxu1 %v3203_v29 }
 0x7de   :  { %3144 = vmatmul.f32.vlgmr.msrb.gmra.mxu2 %v3007_v39  ;;  %3175 = vmatmul.f32.gmra.mxu3 %v3015_v38 }
 0x7e0   :  { %3216 = vmatmul.f32.gmra.mxu0 %v3215_v32 }
 0x7e2   :  { %3251 = vmatmul.f32.gmra.mxu1 %v3211_v5 }
 0x7e6   :  { %3148 = vmatmul.f32.gmra.mxu2 %v3015_v38  ;;  %3307 = vmatmul.f32.vlgmr.msra.gmra.mxu3 %v3205_v56 }
 0x7e8   :  { %3340 = vmatmul.f32.vlgmr.msra.gmra.mxu0 %v3203_v29 }
 0x7ea   :  { %3367 = vmatmul.f32.vlgmr.msra.gmra.mxu1 %v3203_v29 }
 0x7ee   :  { %3277 = vmatmul.f32.vlgmr.msra.gmra.mxu2 %v3204_v60  ;;  %3313 = vmatmul.f32.gmra.mxu3 %v3213_v18 }
 0x7f0   :  { %3344 = vmatmul.f32.gmra.mxu0 %v3211_v5 }
 0x7f2   :  { %3371 = vmatmul.f32.gmra.mxu1 %v3211_v5 }
 0x7f6   :  { %3282 = vmatmul.f32.gmra.mxu2 %v3212_v0 }
 0x845   :  { %v3082_v35 = vpop.f32.mrf.mxu0 }
 0x847   :  { %v3112_v44 = vpop.f32.mrf.mxu1 }
 0x849   :  { %v3052_v24 = vpop.f32.mrf.mxu3 }
 0x84d   :  { %v3087_v51 = vpop.f32.mrf.mxu0 }
 0x84f   :  { %v3118_v52 = vpop.f32.mrf.mxu1 }
 0x851   :  { %v3013_v26 = vpop.f32.mrf.mxu2  ;;  %v3056_v47 = vpop.f32.mrf.mxu3 }
 0x852   :  { %v3053_v12 = vadd.f32 %v3052_v24, %v3013_v26  ;;  %v3442_v24 = vld [vmem:[%s9545_s19 + $0x18] sm:$0xff] }
 0x854   :  { %v3083_v59 = vadd.f32 %v3082_v35, %v3053_v12  ;;  %v3465_v35 = vand.u32 4294901760, %v3442_v24 }
 0x855   :  { %v3209_v37 = vpop.f32.mrf.mxu0 }
 0x856   :  { %v3113_v16 = vadd.f32 %v3112_v44, %v3083_v59  ;;  %v3441_v44 = vld [vmem:[%s9545_s19 + $0x10] sm:$0xff]  ;;  %v3503_v26 = vsub.f32 %v3442_v24, %v3465_v35  ;;  %3583 = vmatpush.msrb.mxu1 %v3465_v35  ;;  %3466 = vmatpush.msrb.mxu2 %v3465_v35 }
 0x857   :  { %v3248_v36 = vpop.f32.mrf.mxu1 }
 0x858   :  { %3549 = vmatpush.msrb.mxu0 %v3503_v26 }
 0x859   :  { %v3021_v61 = vpop.f32.mrf.mxu2  ;;  %v3172_v54 = vpop.f32.mrf.mxu3 }
 0x85a   :  { %v3057_v42 = vadd.f32 %v3056_v47, %v3021_v61  ;;  %v3467_v47 = vand.u32 4294901760, %v3441_v44 }
 0x85c   :  { %v3088_v22 = vadd.f32 %v3087_v51, %v3057_v42  ;;  %v3440_v51 = vld [vmem:[%s9545_s19 + $0x8] sm:$0xff]  ;;  %v3509_v61 = vsub.f32 %v3441_v44, %v3467_v47  ;;  %3585 = vmatpush.msrb.mxu1 %v3467_v47  ;;  %3468 = vmatpush.msrb.mxu2 %v3467_v47 }
 0x85d   :  { %v3217_v49 = vpop.f32.mrf.mxu0  ;;  %v3469_v12 = vand.u32 4294901760, %v3440_v51 }
 0x85e   :  { %v3119_v1 = vadd.f32 %v3118_v52, %v3088_v22  ;;  %v3504_v52 = vand.u32 4294901760, %v3503_v26  ;;  %3552 = vmatpush.msrb.mxu0 %v3509_v61 }
 0x85f   :  { %v3252_v40 = vpop.f32.mrf.mxu1  ;;  %3587 = vmatpush.msrb.mxu1 %v3469_v12  ;;  %3470 = vmatpush.msrb.mxu2 %v3469_v12 }
 0x860   :  { %v3505_v59 = vsub.f32 %v3503_v26, %v3504_v52  ;;  %v3693_v26 = vld [vmem:[%s9547_s21 + $0x30] sm:$0xff] }
 0x861   :  { %v3145_v23 = vpop.f32.mrf.mxu2  ;;  %v3176_v58 = vpop.f32.mrf.mxu3 }
 0x862   :  { %v3146_v62 = vadd.f32 %v3145_v23, %v3113_v16  ;;  %v3506_v42 = vand.u32 4294901760, %v3505_v59 }
 0x864   :  { %v3173_v28 = vadd.f32 %v3172_v54, %v3146_v62  ;;  %v3439_v54 = vld [vmem:[%s9545_s19] sm:$0xff]  ;;  %3507 = vmatpush.msrb.mxu3 %v3506_v42 }
 0x865   :  { %v3341_v27 = vpop.f32.mrf.mxu0  ;;  %v3471_v23 = vand.u32 4294901760, %v3439_v54 }
 0x866   :  { %v3210_v2 = vadd.f32 %v3209_v37, %v3173_v28  ;;  %v3510_v37 = vand.u32 4294901760, %v3509_v61 }
 0x867   :  { %v3368_v13 = vpop.f32.mrf.mxu1  ;;  %v3521_v22 = vsub.f32 %v3439_v54, %v3471_v23  ;;  %3589 = vmatpush.msrb.mxu1 %v3471_v23  ;;  %3472 = vmatpush.msrb.mxu2 %v3471_v23 }
 0x868   :  { %v3249_v31 = vadd.f32 %v3248_v36, %v3210_v2  ;;  %v3515_v36 = vsub.f32 %v3440_v51, %v3469_v12  ;;  %v3511_v16 = vsub.f32 %v3509_v61, %v3510_v37  ;;  %v8637_v51 = vand.u32 4294901760, %v3693_v26 }
 0x869   :  { %v3149_v3 = vpop.f32.mrf.mxu2  ;;  %v3308_v53 = vpop.f32.mrf.mxu3  ;;  %3618 = vmatpush.msra.mxu2 %v3504_v52  ;;  %v3692_v52 = vld [vmem:[%s9547_s21 + $0x28] sm:$0xff] }
 0x86a   :  { %v3150_v41 = vadd.f32 %v3149_v3, %v3119_v1  ;;  %v3516_v62 = vand.u32 4294901760, %v3515_v36  ;;  %3555 = vmatpush.msrb.mxu0 %v3515_v36  ;;  %v8649_v54 = vand.u32 4294901760, %v3692_v52 }
 0x86b   :  { %3622 = vmatpush.msra.mxu2 %v3510_v37  ;;  %v3691_v37 = vld [vmem:[%s9547_s21 + $0x20] sm:$0xff] }
 0x86c   :  { %v3177_v50 = vadd.f32 %v3176_v58, %v3150_v41  ;;  %v3512_v58 = vand.u32 4294901760, %v3511_v16  ;;  %v3517_v28 = vsub.f32 %v3515_v36, %v3516_v62  ;;  %3558 = vmatpush.msrb.mxu0 %v3521_v22  ;;  %v8661_v42 = vsub.f32 %v3692_v52, %v8649_v54 }
 0x86d   :  { %v3345_v25 = vpop.f32.mrf.mxu0  ;;  %3626 = vmatpush.msra.mxu2 %v3516_v62  ;;  %v8664_v16 = vand.u32 4294901760, %v3691_v37  ;;  %v3690_v62 = vld [vmem:[%s9547_s21 + $0x18] sm:$0xff] }
 0x86e   :  { %v3218_v39 = vadd.f32 %v3217_v49, %v3177_v50  ;;  %v3522_v49 = vand.u32 4294901760, %v3521_v22  ;;  %3513 = vmatpush.msrb.mxu3 %v3512_v58  ;;  %v3518_v3 = vand.u32 4294901760, %v3517_v28 }
 0x86f   :  { %v3372_v38 = vpop.f32.mrf.mxu1 }
 0x870   :  { %v3253_v7 = vadd.f32 %v3252_v40, %v3218_v39  ;;  %v3523_v1 = vsub.f32 %v3521_v22, %v3522_v49  ;;  %3519 = vmatpush.msrb.mxu3 %v3518_v3  ;;  %3630 = vmatpush.msra.mxu2 %v3522_v49  ;;  %v7431_v22 = vld [vmem:[%s9582_s29] ss:$0 sm:$0xff]  ;;  %v3769_v49 = vand.u32 4294901760, %v8661_v42  ;;  %v8679_v3 = vsub.f32 %v3691_v37, %v8664_v16 }
 0x871   :  { %v3278_v55 = vpop.f32.mrf.mxu2  ;;  %v3314_v20 = vpop.f32.mrf.mxu3 }
 0x872   :  { %v3279_v8 = vadd.f32 %v3278_v55, %v3249_v31  ;;  %v3524_v40 = vand.u32 4294901760, %v3523_v1 }
 0x874   :  { %v3309_v4 = vadd.f32 %v3308_v53, %v3279_v8  ;;  %3525 = vmatpush.msrb.mxu3 %v3524_v40  ;;  %v8683_v40 = vand.u32 4294901760, %v3690_v62 }
 0x876   :  { %v3342_v29 = vadd.f32 %v3341_v27, %v3309_v4  ;;  %3653 = vmatpush.msra.mxu3 %v3465_v35  ;;  %v3694_v35 = vld [vmem:[%s9547_s21 + $0x38] sm:$0xff] }
 0x877   :  { %v8629_v44 = vand.u32 4294901760, %v3694_v35 }
 0x878   :  { %v3369_v57 = vadd.f32 %v3368_v13, %v3342_v29  ;;  %3655 = vmatpush.msra.mxu3 %v3467_v47 }
 0x879   :  { %v3283_v14 = vpop.f32.mrf.mxu2  ;;  %v8635_v47 = vsub.f32 %v3694_v35, %v8629_v44  ;;  %3715 = vmatpush.msra.mxu0 %v8629_v44 }
 0x87a   :  { %v3284_v48 = vadd.f32 %v3283_v14, %v3253_v7  ;;  %v3379_v19 = vadd.f32 %v7428_v6, %v3369_v57  ;;  %3657 = vmatpush.msra.mxu3 %v3469_v12  ;;  %v7429_v57 = vld [vmem:[%s9543_s17] ss:$0 sm:$0xff]  ;;  %v8646_v12 = vsub.f32 %v3693_v26, %v8637_v51 }
 0x87b   :  { %v3757_v61 = vand.u32 4294901760, %v8635_v47  ;;  %3717 = vmatpush.msra.mxu0 %v8637_v51 }
 0x87c   :  { %v3315_v60 = vadd.f32 %v3314_v20, %v3284_v48  ;;  %v3381_v21 = vadd.f32 %v3379_v19, %v8070_v10  ;;  %3659 = vmatpush.msra.mxu3 %v3471_v23  ;;  %v7430_v19 = vld [vmem:[%s9544_s18] ss:$0 sm:$0xff]  ;;  %v3763_v23 = vand.u32 4294901760, %v8646_v12 }
 0x87d   :  { %v3758_v36 = vsub.f32 %v8635_v47, %v3757_v61  ;;  %3719 = vmatpush.msra.mxu0 %v8649_v54 }
 0x87e   :  { %v3346_v33 = vadd.f32 %v3345_v25, %v3315_v60  ;;  %v3385_v34 = vsel %vm462_vm15, %v3381_v21, 0.0  ;;  %v3764_v28 = vsub.f32 %v8646_v12, %v3763_v23 }
 0x87f   :  { %3386 = vadd.xlane.f32.xlu1 %v3385_v34  ;;  %v3759_v58 = vand.u32 4294901760, %v3758_v36  ;;  %3721 = vmatpush.msra.mxu0 %v8664_v16 }
 0x880   :  { %v3373_v56 = vadd.f32 %v3372_v38, %v3346_v33 }
 0x881   :  { %3760 = vmatpush.msra.mxu1 %v3759_v58  ;;  %3723 = vmatpush.msra.mxu0 %v8683_v40 }
 0x882   :  { %v3380_v5 = vadd.f32 %v7428_v6, %v3373_v56 }
 0x884   :  { %v3382_v63 = vadd.f32 %v3380_v5, %v8099_v45 }
 0x886   :  { %v3388_v9 = vsel %vm462_vm15, %v3382_v63, 0.0 }
 0x887   :  { %3389 = vadd.xlane.f32.xlu2 %v3388_v9 }
 0x8f2   :  { %v3387_v11 = vpop.xlane.xlu1 %3386 }
 0x8f3   :  { %v3391_v0 = vmul.f32 %v3387_v11, %v7977_v43 }
 0x8f5   :  { %v8585_v15 = vsub.f32 %v3381_v21, %v3391_v0 }
 0x8f7   :  { %v3395_v10 = vmul.f32 %v8585_v15, %v8585_v15 }
 0x8f9   :  { %v3397_v17 = vsel %vm462_vm15, %v3395_v10, 0.0 }
 0x8fa   :  { %3398 = vadd.xlane.f32.xlu0 %v3397_v17  ;;  %v3390_v46 = vpop.xlane.xlu2 %3389 }
 0x8fb   :  { %v3392_v18 = vmul.f32 %v3390_v46, %v7977_v43 }
 0x8fd   :  { %v8591_v30 = vsub.f32 %v3382_v63, %v3392_v18 }
 0x8ff   :  { %v3396_v45 = vmul.f32 %v8591_v30, %v8591_v30 }
 0x901   :  { %v3400_v32 = vsel %vm462_vm15, %v3396_v45, 0.0 }
 0x902   :  { %3401 = vadd.xlane.f32.xlu1 %v3400_v32 }
 0x96d   :  { %v3399_v41 = vpop.xlane.xlu0 %3398 }
 0x96e   :  { %v3403_v2 = vmul.f32 %v3399_v41, %v7977_v43  ;;  %v3689_v41 = vld [vmem:[%s9547_s21 + $0x10] sm:$0xff] }
 0x970   :  { %v3405_v50 = vadd.f32 1e-12, %v3403_v2  ;;  %v3765_v2 = vand.u32 4294901760, %v3764_v28 }
 0x972   :  { %7470 = vrsqrt.f32 %v3405_v50  ;;  %vm3413_vm9 = vweird.f32 %v3405_v50  ;;  %3766 = vmatpush.msra.mxu1 %v3765_v2 }
 0x975   :  { %v3402_v31 = vpop.xlane.xlu1 %3401 }
 0x976   :  { %v3404_v53 = vmul.f32 %v3402_v31, %v7977_v43  ;;  %v3775_v31 = vand.u32 4294901760, %v8679_v3 }
 0x978   :  { %v7471_v55 = vpop.eup %7470  ;;  %v3406_v8 = vadd.f32 1e-12, %v3404_v53  ;;  %v8695_v53 = vsub.f32 %v3690_v62, %v8683_v40 }
 0x979   :  { %v3408_v27 = vmul.f32 %v7471_v55, %v3405_v50  ;;  %vm3414_vm8 = vweird.f32 %v7471_v55  ;;  %v3770_v50 = vsub.f32 %v8661_v42, %v3769_v49 }
 0x97a   :  { %7472 = vrsqrt.f32 %v3406_v8  ;;  %vm3415_vm10 = vmor %vm3413_vm9, %vm3414_vm8  ;;  %vm3423_vm12 = vweird.f32 %v3406_v8 }
 0x97b   :  { %v3409_v4 = vmul.f32 %v7471_v55, %v3408_v27 }
 0x97d   :  { %v3410_v39 = vmul.f32 0.5, %v3409_v4  ;;  %v3771_v4 = vand.u32 4294901760, %v3770_v50 }
 0x97f   :  { %v3411_v13 = vsub.f32 1.5, %v3410_v39  ;;  %v3776_v39 = vsub.f32 %v8679_v3, %v3775_v31  ;;  %3772 = vmatpush.msra.mxu1 %v3771_v4 }
 0x980   :  { %v7473_v29 = vpop.eup %7472 }
 0x981   :  { %v3412_v6 = vmul.f32 %v7471_v55, %v3411_v13  ;;  %v3418_v7 = vmul.f32 %v7473_v29, %v3406_v8  ;;  %vm3424_vm11 = vweird.f32 %v7473_v29  ;;  %v3688_v8 = vld [vmem:[%s9547_s21 + $0x8] sm:$0xff] }
 0x982   :  { %vm3425_vm13 = vmor %vm3423_vm12, %vm3424_vm11  ;;  %v8705_v13 = vand.u32 4294901760, %v3688_v8 }
 0x983   :  { %v3416_v14 = vsel %vm3415_vm10, %v7471_v55, %v3412_v6  ;;  %v3419_v48 = vmul.f32 %v7473_v29, %v3418_v7  ;;  %v8697_v55 = vand.u32 4294901760, %v3689_v41  ;;  %v3687_v7 = vld [vmem:[%s9547_s21] sm:$0xff] }
 0x984   :  { %v3427_v20 = vmul.f32 %v3416_v14, %v8585_v15  ;;  %v3792_v14 = vsub.f32 %v3688_v8, %v8705_v13 }
 0x985   :  { %v3420_v60 = vmul.f32 0.5, %v3419_v48  ;;  %v3786_v6 = vsub.f32 %v3689_v41, %v8697_v55  ;;  %v8715_v48 = vand.u32 4294901760, %v3687_v7  ;;  %3725 = vmatpush.msra.mxu0 %v8697_v55 }
 0x986   :  { %v3432_v21 = vmul.f32 %v7429_v57, %v3427_v20 }
 0x987   :  { %v3421_v25 = vsub.f32 1.5, %v3420_v60  ;;  %v3787_v60 = vand.u32 4294901760, %v3786_v6  ;;  %3727 = vmatpush.msra.mxu0 %v8705_v13 }
 0x988   :  { %v8617_v33 = vadd.f32 %v7430_v19, %v3432_v21 }
 0x989   :  { %v3422_v34 = vmul.f32 %v7473_v29, %v3421_v25  ;;  %v3793_v25 = vand.u32 4294901760, %v3792_v14  ;;  %3729 = vmatpush.msra.mxu0 %v8715_v48 }
 0x98a   :  { %v3448_v38 = vsel %vm462_vm15, %v8617_v33, 0 }
 0x98b   :  { %v3426_v56 = vsel %vm3425_vm13, %v7473_v29, %v3422_v34  ;;  %v3473_v5 = vand.u32 4294901760, %v3448_v38  ;;  %v3781_v29 = vand.u32 4294901760, %v8695_v53  ;;  %v3798_v34 = vsub.f32 %v3687_v7, %v8715_v48 }
 0x98c   :  { %v3428_v63 = vmul.f32 %v3426_v56, %v8591_v30 }
 0x98d   :  { %3527 = vmatmul.f32.vlgmr.msrb.gmra.mxu3 %v3473_v5  ;;  %v3474_v9 = vsub.f32 %v3448_v38, %v3473_v5  ;;  %v3782_v20 = vsub.f32 %v8695_v53, %v3781_v29 }
 0x98e   :  { %v3433_v11 = vmul.f32 %v7429_v57, %v3428_v63  ;;  %3864 = vmatpush.msrb.mxu3 %v8629_v44  ;;  %v3777_v57 = vand.u32 4294901760, %v3776_v39  ;;  %v3788_v63 = vsub.f32 %v3786_v6, %v3787_v60 }
 0x98f   :  { %3561 = vmatmul.f32.vlgmr.msrb.gmra.mxu0 %v3474_v9  ;;  %v3475_v0 = vand.u32 4294901760, %v3474_v9 }
 0x990   :  { %v8622_v15 = vadd.f32 %v7430_v19, %v3433_v11  ;;  %3866 = vmatpush.msrb.mxu3 %v8637_v51  ;;  %3778 = vmatpush.msra.mxu1 %v3777_v57  ;;  %v3799_v11 = vand.u32 4294901760, %v3798_v34 }
 0x991   :  { %3593 = vmatmul.f32.vlgmr.msrb.gmra.mxu1 %v3475_v0  ;;  %v3476_v10 = vsub.f32 %v3474_v9, %v3475_v0  ;;  %v3794_v9 = vsub.f32 %v3792_v14, %v3793_v25  ;;  %v3789_v0 = vand.u32 4294901760, %v3788_v63  ;;  %3903 = vmatpush.msrb.mxu0 %v3757_v61 }
 0x992   :  { %v3451_v17 = vsel %vm462_vm15, %v8622_v15, 0  ;;  %3868 = vmatpush.msrb.mxu3 %v8649_v54 }
 0x993   :  { %v3477_v46 = vand.u32 4294901760, %v3476_v10  ;;  %v3481_v18 = vand.u32 4294901760, %v3451_v17  ;;  %3907 = vmatpush.msrb.mxu0 %v3763_v23 }
 0x994   :  { %3870 = vmatpush.msrb.mxu3 %v8664_v16 }
 0x995   :  { %3478 = vmatmul.f32.vlgmr.msrb.gmra.mxu2 %v3477_v46  ;;  %3531 = vmatmul.f32.gmra.mxu3 %v3481_v18  ;;  %v3482_v45 = vsub.f32 %v3451_v17, %v3481_v18  ;;  %v3795_v46 = vand.u32 4294901760, %v3794_v9 }
 0x996   :  { %3822 = vmatpush.msrb.mxu2 %v8635_v47  ;;  %3872 = vmatpush.msrb.mxu3 %v8683_v40 }
 0x997   :  { %3566 = vmatmul.f32.gmra.mxu0 %v3482_v45  ;;  %v3483_v32 = vand.u32 4294901760, %v3482_v45 }
 0x998   :  { %3825 = vmatpush.msrb.mxu2 %v8646_v12  ;;  %3874 = vmatpush.msrb.mxu3 %v8697_v55 }
 0x999   :  { %3599 = vmatmul.f32.gmra.mxu1 %v3483_v32  ;;  %v3484_v30 = vsub.f32 %v3482_v45, %v3483_v32  ;;  %3911 = vmatpush.msrb.mxu0 %v3769_v49 }
 0x99a   :  { %3828 = vmatpush.msrb.mxu2 %v8661_v42  ;;  %3876 = vmatpush.msrb.mxu3 %v8705_v13 }
 0x99b   :  { %v3485_v24 = vand.u32 4294901760, %v3484_v30  ;;  %3915 = vmatpush.msrb.mxu0 %v3775_v31 }
 0x99c   :  { %3831 = vmatpush.msrb.mxu2 %v8679_v3  ;;  %3878 = vmatpush.msrb.mxu3 %v8715_v48 }
 0x99d   :  { %3486 = vmatmul.f32.gmra.mxu2 %v3485_v24  ;;  %3661 = vmatmul.f32.vlgmr.msra.gmra.mxu3 %v3473_v5 }
 0x99e   :  { %3834 = vmatpush.msrb.mxu2 %v8695_v53  ;;  %3919 = vmatpush.msrb.mxu0 %v3781_v29 }
 0x9a0   :  { %3837 = vmatpush.msrb.mxu2 %v3786_v6  ;;  %3923 = vmatpush.msrb.mxu0 %v3787_v60 }
 0x9a2   :  { %3840 = vmatpush.msrb.mxu2 %v3792_v14  ;;  %3927 = vmatpush.msrb.mxu0 %v3793_v25 }
 0x9a4   :  { %3843 = vmatpush.msrb.mxu2 %v3798_v34  ;;  %3931 = vmatpush.msrb.mxu0 %v3799_v11 }
 0x9a5   :  { %3632 = vmatmul.f32.vlgmr.msra.gmra.mxu2 %v3473_v5  ;;  %3665 = vmatmul.f32.gmra.mxu3 %v3481_v18  ;;  %v3783_v5 = vand.u32 4294901760, %v3782_v20 }
 0x9a7   :  { %3784 = vmatpush.msra.mxu1 %v3783_v5 }
 0x9a9   :  { %3790 = vmatpush.msra.mxu1 %v3789_v0 }
 0x9ab   :  { %3796 = vmatpush.msra.mxu1 %v3795_v46 }
 0x9ad   :  { %3636 = vmatmul.f32.gmra.mxu2 %v3481_v18  ;;  %v3800_v18 = vsub.f32 %v3798_v34, %v3799_v11 }
 0x9af   :  { %v3801_v32 = vand.u32 4294901760, %v3800_v18 }
 0x9b1   :  { %3802 = vmatpush.msra.mxu1 %v3801_v32 }
 0x9b3   :  { %3950 = vmatpush.msrb.mxu1 %v8629_v44 }
 0x9b5   :  { %3952 = vmatpush.msrb.mxu1 %v8637_v51 }
 0x9b7   :  { %3954 = vmatpush.msrb.mxu1 %v8649_v54 }
 0x9b9   :  { %3956 = vmatpush.msrb.mxu1 %v8664_v16 }
 0x9bb   :  { %3958 = vmatpush.msrb.mxu1 %v8683_v40 }
 0x9bd   :  { %3960 = vmatpush.msrb.mxu1 %v8697_v55 }
 0x9bf   :  { %3962 = vmatpush.msrb.mxu1 %v8705_v13 }
 0x9c1   :  { %3964 = vmatpush.msrb.mxu1 %v8715_v48 }
 0xa0c   :  { %v3562_v38 = vpop.f32.mrf.mxu0 }
 0xa0e   :  { %v3594_v45 = vpop.f32.mrf.mxu1 }
 0xa10   :  { %v3528_v59 = vpop.f32.mrf.mxu3 }
 0xa14   :  { %v3567_v47 = vpop.f32.mrf.mxu0 }
 0xa16   :  { %v3600_v37 = vpop.f32.mrf.mxu1 }
 0xa18   :  { %v3479_v1 = vpop.f32.mrf.mxu2  ;;  %v3532_v19 = vpop.f32.mrf.mxu3 }
 0xa19   :  { %v3480_v27 = vadd.f32 %v7431_v22, %v3479_v1 }
 0xa1b   :  { %v3529_v21 = vadd.f32 %v3528_v59, %v3480_v27 }
 0xa1d   :  { %v3563_v17 = vadd.f32 %v3562_v38, %v3529_v21  ;;  %v7432_v21 = vld [vmem:[%s9548_s22] ss:$0 sm:$0xff] }
 0xa1f   :  { %v3595_v24 = vadd.f32 %v3594_v45, %v3563_v17 }
 0xa20   :  { %v3487_v56 = vpop.f32.mrf.mxu2  ;;  %v3662_v35 = vpop.f32.mrf.mxu3 }
 0xa21   :  { %v3488_v10 = vadd.f32 %v7431_v22, %v3487_v56 }
 0xa23   :  { %v3533_v30 = vadd.f32 %v3532_v19, %v3488_v10 }
 0xa25   :  { %v3568_v59 = vadd.f32 %v3567_v47, %v3533_v30 }
 0xa27   :  { %v3601_v23 = vadd.f32 %v3600_v37, %v3568_v59 }
 0xa28   :  { %v3633_v26 = vpop.f32.mrf.mxu2  ;;  %v3666_v22 = vpop.f32.mrf.mxu3 }
 0xa29   :  { %v3634_v52 = vadd.f32 %v3633_v26, %v3595_v24 }
 0xa2b   :  { %v3663_v61 = vadd.f32 %v3662_v35, %v3634_v52 }
 0xa2d   :  { %v3669_v12 = vmul.f32 %v3663_v61, %v3663_v61 }
 0xa2f   :  { %v3671_v36 = vmul.f32 %v3669_v12, %v3663_v61 }
 0xa30   :  { %v3637_v42 = vpop.f32.mrf.mxu2 }
 0xa31   :  { %v3673_v62 = vmul.f32 0.044715, %v3671_v36  ;;  %v3638_v44 = vadd.f32 %v3637_v42, %v3601_v23 }
 0xa33   :  { %v3675_v58 = vadd.f32 %v3673_v62, %v3663_v61  ;;  %v3667_v51 = vadd.f32 %v3666_v22, %v3638_v44 }
 0xa35   :  { %v3677_v28 = vmul.f32 0.7978846, %v3675_v58  ;;  %v3670_v54 = vmul.f32 %v3667_v51, %v3667_v51 }
 0xa37   :  { %7474 = vtanh.f32 %v3677_v28  ;;  %v3672_v49 = vmul.f32 %v3670_v54, %v3667_v51 }
 0xa39   :  { %v3674_v16 = vmul.f32 0.044715, %v3672_v49  ;;  %v7361_v49 = vld [vmem:[%s9578_s9 + $0x58] sm:$0xff] }
 0xa3b   :  { %v3676_v3 = vadd.f32 %v3674_v16, %v3667_v51  ;;  %v4060_v16 = vand.u32 4294901760, %v7361_v49 }
 0xa3d   :  { %v7475_v1 = vpop.eup %7474  ;;  %v3678_v41 = vmul.f32 0.7978846, %v3676_v3  ;;  %v7360_v3 = vld [vmem:[%s9578_s9 + $0x50] sm:$0xff]  ;;  %4061 = vmatpush.msra.mxu2 %v4060_v16 }
 0xa3e   :  { %v3681_v2 = vadd.f32 1.0, %v7475_v1  ;;  %v4098_v1 = vsub.f32 %v7361_v49, %v4060_v16 }
 0xa3f   :  { %7476 = vtanh.f32 %v3678_v41  ;;  %v4062_v41 = vand.u32 4294901760, %v7360_v3 }
 0xa40   :  { %v3683_v40 = vmul.f32 0.5, %v3681_v2  ;;  %v7359_v2 = vld [vmem:[%s9578_s9 + $0x48] sm:$0xff] }
 0xa41   :  { %4063 = vmatpush.msra.mxu2 %v4062_v41 }
 0xa42   :  { %v3685_v50 = vmul.f32 %v3683_v40, %v3663_v61  ;;  %v4099_v40 = vand.u32 4294901760, %v4098_v1 }
 0xa44   :  { %v3701_v31 = vsel %vm3699_vm14, %v3685_v50, 0  ;;  %v4104_v50 = vsub.f32 %v7360_v3, %v4062_v41 }
 0xa45   :  { %v7477_v53 = vpop.eup %7476  ;;  %v3730_v55 = vand.u32 4294901760, %v3701_v31 }
 0xa46   :  { %v3682_v8 = vadd.f32 1.0, %v7477_v53  ;;  %v7358_v53 = vld [vmem:[%s9578_s9 + $0x40] sm:$0xff] }
 0xa47   :  { %3804 = vmatmul.f32.vlgmr.msra.gmra.mxu1 %v3730_v55  ;;  %v3731_v27 = vsub.f32 %v3701_v31, %v3730_v55  ;;  %v4064_v31 = vand.u32 4294901760, %v7359_v2 }
 0xa48   :  { %v3684_v4 = vmul.f32 0.5, %v3682_v8  ;;  %4178 = vmatpush.msra.mxu1 %v4060_v16  ;;  %v4105_v8 = vand.u32 4294901760, %v4104_v50 }
 0xa49   :  { %3846 = vmatmul.f32.vlgmr.msrb.gmra.mxu2 %v3731_v27  ;;  %v3732_v39 = vand.u32 4294901760, %v3731_v27 }
 0xa4a   :  { %v3686_v13 = vmul.f32 %v3684_v4, %v3667_v51  ;;  %4180 = vmatpush.msra.mxu1 %v4062_v41  ;;  %v4066_v4 = vand.u32 4294901760, %v7358_v53  ;;  %4065 = vmatpush.msra.mxu2 %v4064_v31 }
 0xa4b   :  { %3882 = vmatmul.f32.vlgmr.msrb.gmra.mxu3 %v3732_v39  ;;  %v3733_v29 = vsub.f32 %v3731_v27, %v3732_v39  ;;  %v4110_v27 = vsub.f32 %v7359_v2, %v4064_v31 }
 0xa4c   :  { %v3704_v6 = vsel %vm3699_vm14, %v3686_v13, 0  ;;  %4182 = vmatpush.msra.mxu1 %v4064_v31  ;;  %v4106_v13 = vsub.f32 %v4104_v50, %v4105_v8  ;;  %4067 = vmatpush.msra.mxu2 %v4066_v4 }
 0xa4d   :  { %v3734_v7 = vand.u32 4294901760, %v3733_v29  ;;  %v3738_v57 = vand.u32 4294901760, %v3704_v6  ;;  %v4111_v29 = vand.u32 4294901760, %v4110_v27 }
 0xa4e   :  { %4184 = vmatpush.msra.mxu1 %v4066_v4  ;;  %4213 = vmatpush.msrb.mxu2 %v4099_v40 }
 0xa4f   :  { %3735 = vmatmul.f32.vlgmr.msra.gmra.mxu0 %v3734_v7  ;;  %3808 = vmatmul.f32.gmra.mxu1 %v3738_v57  ;;  %v3739_v14 = vsub.f32 %v3704_v6, %v3738_v57  ;;  %v4116_v6 = vsub.f32 %v7358_v53, %v4066_v4  ;;  %v4107_v7 = vand.u32 4294901760, %v4106_v13 }
 0xa50   :  { %4144 = vmatpush.msra.mxu0 %v4098_v1  ;;  %4217 = vmatpush.msrb.mxu2 %v4105_v8 }
 0xa51   :  { %3851 = vmatmul.f32.gmra.mxu2 %v3739_v14  ;;  %v3740_v48 = vand.u32 4294901760, %v3739_v14 }
 0xa52   :  { %4147 = vmatpush.msra.mxu0 %v4104_v50  ;;  %4221 = vmatpush.msrb.mxu2 %v4111_v29 }
 0xa53   :  { %3888 = vmatmul.f32.gmra.mxu3 %v3740_v48  ;;  %v3741_v19 = vsub.f32 %v3739_v14, %v3740_v48  ;;  %v4117_v14 = vand.u32 4294901760, %v4116_v6 }
 0xa54   :  { %4150 = vmatpush.msra.mxu0 %v4110_v27 }
 0xa55   :  { %v3742_v20 = vand.u32 4294901760, %v3741_v19  ;;  %v4118_v19 = vsub.f32 %v4116_v6, %v4117_v14  ;;  %4225 = vmatpush.msrb.mxu2 %v4117_v14 }
 0xa56   :  { %4153 = vmatpush.msra.mxu0 %v4116_v6 }
 0xa57   :  { %3743 = vmatmul.f32.gmra.mxu0 %v3742_v20  ;;  %3966 = vmatmul.f32.vlgmr.msrb.gmra.mxu1 %v3730_v55  ;;  %v4119_v20 = vand.u32 4294901760, %v4118_v19  ;;  %v7369_v19 = vld [vmem:[%s9539_s13 + $0x48] sm:$0xff] }
 0xa5f   :  { %3933 = vmatmul.f32.vlgmr.msrb.gmra.mxu0 %v3730_v55  ;;  %3970 = vmatmul.f32.gmra.mxu1 %v3738_v57  ;;  %v4100_v55 = vsub.f32 %v4098_v1, %v4099_v40 }
 0xa61   :  { %v4101_v39 = vand.u32 4294901760, %v4100_v55 }
 0xa63   :  { %4102 = vmatpush.msra.mxu3 %v4101_v39 }
 0xa65   :  { %4108 = vmatpush.msra.mxu3 %v4107_v7  ;;  %v7370_v7 = vld [vmem:[%s9539_s13 + $0x50] sm:$0xff] }
 0xa66   :  { %v8859_v14 = vand.u32 4294901760, %v7370_v7 }
 0xa67   :  { %3937 = vmatmul.f32.gmra.mxu0 %v3738_v57  ;;  %v4112_v57 = vsub.f32 %v4110_v27, %v4111_v29 }
 0xa69   :  { %v4113_v48 = vand.u32 4294901760, %v4112_v57 }
 0xa6b   :  { %4114 = vmatpush.msra.mxu3 %v4113_v48 }
 0xa6d   :  { %4120 = vmatpush.msra.mxu3 %v4119_v20 }
 0xa6f   :  { %4248 = vmatpush.msrb.mxu3 %v4060_v16  ;;  %v7433_v16 = vld [vmem:[%s9549_s23] ss:$0 sm:$0xff] }
 0xa71   :  { %4250 = vmatpush.msrb.mxu3 %v4062_v41  ;;  %v7434_v41 = vld [vmem:[%s9550_s24] ss:$0 sm:$0xff] }
 0xa73   :  { %4252 = vmatpush.msrb.mxu3 %v4064_v31 }
 0xa75   :  { %4254 = vmatpush.msrb.mxu3 %v4066_v4 }
 0xac4   :  { %v3805_v60 = vpop.f32.mrf.mxu1 }
 0xacc   :  { %v3736_v25 = vpop.f32.mrf.mxu0  ;;  %v3809_v38 = vpop.f32.mrf.mxu1 }
 0xacd   :  { %v3737_v34 = vadd.f32 %v7432_v21, %v3736_v25  ;;  %v3847_v5 = vpop.f32.mrf.mxu2 }
 0xace   :  { %v3883_v0 = vpop.f32.mrf.mxu3 }
 0xacf   :  { %v3806_v56 = vadd.f32 %v3805_v60, %v3737_v34  ;;  %v7366_v34 = vld [vmem:[%s9537_s11 + $0x58] sm:$0xff] }
 0xad1   :  { %v3848_v9 = vadd.f32 %v3847_v5, %v3806_v56  ;;  %v7365_v56 = vld [vmem:[%s9537_s11 + $0x50] sm:$0xff] }
 0xad3   :  { %v3884_v10 = vadd.f32 %v3883_v0, %v3848_v9  ;;  %v7364_v9 = vld [vmem:[%s9537_s11 + $0x48] sm:$0xff] }
 0xad4   :  { %v3744_v63 = vpop.f32.mrf.mxu0  ;;  %v3967_v46 = vpop.f32.mrf.mxu1 }
 0xad5   :  { %v3745_v11 = vadd.f32 %v7432_v21, %v3744_v63  ;;  %v3852_v32 = vpop.f32.mrf.mxu2  ;;  %v8784_v63 = vand.u32 4294901760, %v7365_v56 }
 0xad6   :  { %v3889_v26 = vpop.f32.mrf.mxu3 }
 0xad7   :  { %v3810_v17 = vadd.f32 %v3809_v38, %v3745_v11  ;;  %v8775_v38 = vand.u32 4294901760, %v7366_v34 }
 0xad9   :  { %v3853_v30 = vadd.f32 %v3852_v32, %v3810_v17  ;;  %4287 = vmatpush.msrb.mxu0 %v8775_v38  ;;  %v8782_v5 = vsub.f32 %v7366_v34, %v8775_v38  ;;  %v8794_v17 = vsub.f32 %v7365_v56, %v8784_v63  ;;  %v7368_v56 = vld [vmem:[%s9539_s13 + $0x40] sm:$0xff] }
 0xadb   :  { %v3890_v52 = vadd.f32 %v3889_v26, %v3853_v30  ;;  %4289 = vmatpush.msrb.mxu0 %v8784_v63  ;;  %v4325_v0 = vand.u32 4294901760, %v8782_v5  ;;  %v4331_v32 = vand.u32 4294901760, %v8794_v17 }
 0xadc   :  { %v3934_v18 = vpop.f32.mrf.mxu0  ;;  %v3971_v12 = vpop.f32.mrf.mxu1 }
 0xadd   :  { %v3935_v45 = vadd.f32 %v3934_v18, %v3884_v10  ;;  %v8791_v10 = vand.u32 4294901760, %v7364_v9  ;;  %v7363_v18 = vld [vmem:[%s9537_s11 + $0x40] sm:$0xff] }
 0xade   :  { %v8805_v30 = vand.u32 4294901760, %v7363_v18 }
 0xadf   :  { %v3968_v24 = vadd.f32 %v3967_v46, %v3935_v45  ;;  %v4326_v45 = vsub.f32 %v8782_v5, %v4325_v0  ;;  %4291 = vmatpush.msrb.mxu0 %v8791_v10 }
 0xae1   :  { %v3974_v35 = vadd.f32 %v3968_v24, %v8617_v33  ;;  %v8808_v24 = vsub.f32 %v7364_v9, %v8791_v10  ;;  %4293 = vmatpush.msrb.mxu0 %v8805_v30 }
 0xae3   :  { %v3978_v47 = vsel %vm462_vm15, %v3974_v35, 0.0 }
 0xae4   :  { %v3938_v61 = vpop.f32.mrf.mxu0  ;;  %3979 = vadd.xlane.f32.xlu2 %v3978_v47  ;;  %v4327_v47 = vand.u32 4294901760, %v4326_v45 }
 0xae5   :  { %v3939_v59 = vadd.f32 %v3938_v61, %v3890_v52  ;;  %v4332_v61 = vsub.f32 %v8794_v17, %v4331_v32 }
 0xae6   :  { %4328 = vmatpush.msrb.mxu1 %v4327_v47 }
 0xae7   :  { %v3972_v37 = vadd.f32 %v3971_v12, %v3939_v59  ;;  %v4337_v59 = vand.u32 4294901760, %v8808_v24  ;;  %v8816_v12 = vsub.f32 %v7363_v18, %v8805_v30  ;;  %v4518_v18 = vand.u32 4294901760, %v7368_v56 }
 0xae9   :  { %v3975_v36 = vadd.f32 %v3972_v37, %v8622_v15 }
 0xaeb   :  { %v3981_v23 = vsel %vm462_vm15, %v3975_v36, 0.0 }
 0xaec   :  { %3982 = vadd.xlane.f32.xlu0 %v3981_v23  ;;  %v4338_v23 = vsub.f32 %v8808_v24, %v4337_v59 }
 0xb57   :  { %v3980_v42 = vpop.xlane.xlu2 %3979 }
 0xb58   :  { %v3984_v62 = vmul.f32 %v3980_v42, %v7977_v43  ;;  %v4343_v42 = vand.u32 4294901760, %v8816_v12 }
 0xb5a   :  { %v8748_v44 = vsub.f32 %v3974_v35, %v3984_v62 }
 0xb5c   :  { %v3988_v33 = vmul.f32 %v8748_v44, %v8748_v44 }
 0xb5e   :  { %v3990_v22 = vsel %vm462_vm15, %v3988_v33, 0.0  ;;  %v4339_v33 = vand.u32 4294901760, %v4338_v23 }
 0xb5f   :  { %3991 = vadd.xlane.f32.xlu1 %v3990_v22  ;;  %v3983_v58 = vpop.xlane.xlu0 %3982  ;;  %v4344_v22 = vsub.f32 %v8816_v12, %v4343_v42 }
 0xb60   :  { %v3985_v51 = vmul.f32 %v3983_v58, %v7977_v43 }
 0xb62   :  { %v8754_v28 = vsub.f32 %v3975_v36, %v3985_v51  ;;  %v4333_v36 = vand.u32 4294901760, %v4332_v61 }
 0xb64   :  { %v3989_v15 = vmul.f32 %v8754_v28, %v8754_v28  ;;  %4334 = vmatpush.msrb.mxu1 %v4333_v36 }
 0xb66   :  { %v3993_v54 = vsel %vm462_vm15, %v3989_v15, 0.0  ;;  %4340 = vmatpush.msrb.mxu1 %v4339_v33  ;;  %v4345_v15 = vand.u32 4294901760, %v4344_v22 }
 0xb67   :  { %3994 = vadd.xlane.f32.xlu2 %v3993_v54 }
 0xb68   :  { %4346 = vmatpush.msrb.mxu1 %v4345_v15 }
 0xbd2   :  { %v3992_v60 = vpop.xlane.xlu1 %3991 }
 0xbd3   :  { %v3996_v21 = vmul.f32 %v3992_v60, %v7977_v43  ;;  %v8873_v60 = vsub.f32 %v7370_v7, %v8859_v14 }
 0xbd5   :  { %v3998_v25 = vadd.f32 1e-12, %v3996_v21  ;;  %v8875_v21 = vand.u32 4294901760, %v7369_v19 }
 0xbd7   :  { %7478 = vrsqrt.f32 %v3998_v25  ;;  %vm4006_vm1 = vweird.f32 %v3998_v25 }
 0xbda   :  { %v3995_v11 = vpop.xlane.xlu2 %3994 }
 0xbdb   :  { %v3997_v46 = vmul.f32 %v3995_v11, %v7977_v43 }
 0xbdd   :  { %v7479_v35 = vpop.eup %7478  ;;  %v3999_v26 = vadd.f32 1e-12, %v3997_v46  ;;  %v8896_v46 = vsub.f32 %v7369_v19, %v8875_v21 }
 0xbde   :  { %v4001_v52 = vmul.f32 %v7479_v35, %v3998_v25  ;;  %vm4007_vm0 = vweird.f32 %v7479_v35 }
 0xbdf   :  { %7480 = vrsqrt.f32 %v3999_v26  ;;  %vm4008_vm2 = vmor %vm4006_vm1, %vm4007_vm0  ;;  %vm4016_vm4 = vweird.f32 %v3999_v26 }
 0xbe0   :  { %v4002_v37 = vmul.f32 %v7479_v35, %v4001_v52 }
 0xbe2   :  { %v4003_v62 = vmul.f32 0.5, %v4002_v37 }
 0xbe4   :  { %v4004_v58 = vsub.f32 1.5, %v4003_v62 }
 0xbe5   :  { %v7481_v51 = vpop.eup %7480 }
 0xbe6   :  { %v4005_v54 = vmul.f32 %v7479_v35, %v4004_v58  ;;  %v4011_v49 = vmul.f32 %v7481_v51, %v3999_v26  ;;  %vm4017_vm3 = vweird.f32 %v7481_v51 }
 0xbe7   :  { %vm4018_vm5 = vmor %vm4016_vm4, %vm4017_vm3 }
 0xbe8   :  { %v4009_v3 = vsel %vm4008_vm2, %v7479_v35, %v4005_v54  ;;  %v4012_v1 = vmul.f32 %v7481_v51, %v4011_v49  ;;  %v4568_v35 = vsub.f32 %v7368_v56, %v4518_v18 }
 0xbe9   :  { %v4020_v2 = vmul.f32 %v4009_v3, %v8748_v44  ;;  %v7371_v44 = vld [vmem:[%s9539_s13 + $0x58] sm:$0xff] }
 0xbea   :  { %v4013_v40 = vmul.f32 0.5, %v4012_v1  ;;  %v8846_v29 = vand.u32 4294901760, %v7371_v44 }
 0xbeb   :  { %v4025_v50 = vmul.f32 %v7433_v16, %v4020_v2 }
 0xbec   :  { %v4014_v31 = vsub.f32 1.5, %v4013_v40  ;;  %v8857_v57 = vsub.f32 %v7371_v44, %v8846_v29 }
 0xbed   :  { %v8832_v53 = vadd.f32 %v7434_v41, %v4025_v50 }
 0xbee   :  { %v4015_v55 = vmul.f32 %v7481_v51, %v4014_v31  ;;  %v4551_v34 = vand.u32 4294901760, %v8857_v57 }
 0xbef   :  { %v4043_v8 = vsel %vm462_vm15, %v8832_v53, 0 }
 0xbf0   :  { %v8836_v27 = vand.u32 4294901760, %v4043_v8  ;;  %v4019_v4 = vsel %vm4018_vm5, %v7481_v51, %v4015_v55  ;;  %v7435_v51 = vld [vmem:[%s9536_s10 + $0x2] ss:$0 sm:$0xff] }
 0xbf1   :  { %v4021_v39 = vmul.f32 %v4019_v4, %v8754_v28 }
 0xbf2   :  { %v8843_v13 = vsub.f32 %v4043_v8, %v8836_v27  ;;  %4122 = vmatmul.f32.vlgmr.msra.gmra.mxu3 %v8836_v27 }
 0xbf3   :  { %v4026_v6 = vmul.f32 %v7433_v16, %v4021_v39  ;;  %4404 = vmatpush.msra.mxu3 %v8775_v38 }
 0xbf4   :  { %4156 = vmatmul.f32.vlgmr.msra.gmra.mxu0 %v8843_v13  ;;  %v8854_v28 = vand.u32 4294901760, %v8843_v13 }
 0xbf5   :  { %v8861_v48 = vadd.f32 %v7434_v41, %v4026_v6  ;;  %4406 = vmatpush.msra.mxu3 %v8784_v63  ;;  %4439 = vmatpush.msra.mxu0 %v4325_v0  ;;  %v4557_v0 = vand.u32 4294901760, %v8873_v60  ;;  %v7436_v41 = vld [vmem:[%s9538_s12 + $0x2] ss:$0 sm:$0xff] }
 0xbf6   :  { %4188 = vmatmul.f32.vlgmr.msra.gmra.mxu1 %v8854_v28  ;;  %v4071_v20 = vsub.f32 %v8843_v13, %v8854_v28 }
 0xbf7   :  { %v4046_v25 = vsel %vm462_vm15, %v8861_v48, 0  ;;  %4408 = vmatpush.msra.mxu3 %v8791_v10  ;;  %4443 = vmatpush.msra.mxu0 %v4331_v32  ;;  %v4563_v32 = vand.u32 4294901760, %v8896_v46 }
 0xbf8   :  { %v8886_v9 = vand.u32 4294901760, %v4046_v25  ;;  %v8888_v11 = vand.u32 4294901760, %v4071_v20  ;;  %4474 = vmatpush.msra.mxu1 %v8775_v38  ;;  %v4552_v38 = vsub.f32 %v8857_v57, %v4551_v34 }
 0xbf9   :  { %4410 = vmatpush.msra.mxu3 %v8805_v30  ;;  %4447 = vmatpush.msra.mxu0 %v4337_v59  ;;  %v4564_v61 = vsub.f32 %v8896_v46, %v4563_v32 }
 0xbfa   :  { %v8899_v45 = vsub.f32 %v4046_v25, %v8886_v9  ;;  %4073 = vmatmul.f32.vlgmr.msra.gmra.mxu2 %v8888_v11  ;;  %4126 = vmatmul.f32.gmra.mxu3 %v8886_v9  ;;  %v4553_v47 = vand.u32 4294901760, %v4552_v38 }
 0xbfb   :  { %4476 = vmatpush.msra.mxu1 %v8784_v63  ;;  %4370 = vmatpush.msra.mxu2 %v8782_v5  ;;  %v4558_v5 = vsub.f32 %v8873_v60, %v4557_v0  ;;  %v4569_v63 = vand.u32 4294901760, %v4568_v35  ;;  %v4565_v36 = vand.u32 4294901760, %v4564_v61 }
 0xbfc   :  { %4161 = vmatmul.f32.gmra.mxu0 %v8899_v45  ;;  %v8911_v26 = vand.u32 4294901760, %v8899_v45 }
 0xbfd   :  { %4451 = vmatpush.msra.mxu0 %v4343_v42  ;;  %4478 = vmatpush.msra.mxu1 %v8791_v10  ;;  %v4559_v10 = vand.u32 4294901760, %v4558_v5  ;;  %v4570_v37 = vsub.f32 %v4568_v35, %v4569_v63 }
 0xbfe   :  { %4194 = vmatmul.f32.gmra.mxu1 %v8911_v26  ;;  %v4079_v52 = vsub.f32 %v8899_v45, %v8911_v26  ;;  %4373 = vmatpush.msra.mxu2 %v8794_v17 }
 0xbff   :  { %4480 = vmatpush.msra.mxu1 %v8805_v30  ;;  %v4571_v17 = vand.u32 4294901760, %v4570_v37 }
 0xc00   :  { %v8925_v59 = vand.u32 4294901760, %v4079_v52  ;;  %4376 = vmatpush.msra.mxu2 %v8808_v24 }
 0xc02   :  { %4081 = vmatmul.f32.gmra.mxu2 %v8925_v59  ;;  %4256 = vmatmul.f32.vlgmr.msrb.gmra.mxu3 %v8836_v27 }
 0xc03   :  { %4379 = vmatpush.msra.mxu2 %v8816_v12  ;;  %4554 = vmatpush.msrb.mxu3 %v4553_v47 }
 0xc04   :  { %4299 = vmatmul.f32.vlgmr.msrb.gmra.mxu0 %v8888_v11 }
 0xc05   :  { %4560 = vmatpush.msrb.mxu3 %v4559_v10  ;;  %4596 = vmatpush.msrb.mxu0 %v8857_v57 }
 0xc06   :  { %4348 = vmatmul.f32.vlgmr.msrb.gmra.mxu1 %v8836_v27 }
 0xc07   :  { %4566 = vmatpush.msrb.mxu3 %v4565_v36  ;;  %4599 = vmatpush.msrb.mxu0 %v8873_v60 }
 0xc08   :  { %4630 = vmatpush.msrb.mxu1 %v8846_v29 }
 0xc09   :  { %4572 = vmatpush.msrb.mxu3 %v4571_v17  ;;  %4602 = vmatpush.msrb.mxu0 %v8896_v46 }
 0xc0a   :  { %4227 = vmatmul.f32.vlgmr.msrb.gmra.mxu2 %v8836_v27  ;;  %4260 = vmatmul.f32.gmra.mxu3 %v8886_v9 }
 0xc0b   :  { %4632 = vmatpush.msrb.mxu1 %v8859_v14  ;;  %4513 = vmatpush.msrb.mxu2 %v8846_v29 }
 0xc0c   :  { %4307 = vmatmul.f32.gmra.mxu0 %v8925_v59 }
 0xc0d   :  { %4605 = vmatpush.msrb.mxu0 %v4568_v35  ;;  %4634 = vmatpush.msrb.mxu1 %v8875_v21 }
 0xc0e   :  { %4352 = vmatmul.f32.gmra.mxu1 %v8886_v9  ;;  %4515 = vmatpush.msrb.mxu2 %v8859_v14 }
 0xc0f   :  { %4636 = vmatpush.msrb.mxu1 %v4518_v18 }
 0xc10   :  { %4517 = vmatpush.msrb.mxu2 %v8875_v21 }
 0xc12   :  { %4231 = vmatmul.f32.gmra.mxu2 %v8886_v9  ;;  %4414 = vmatmul.f32.vlgmr.msra.gmra.mxu3 %v8854_v28 }
 0xc13   :  { %4519 = vmatpush.msrb.mxu2 %v4518_v18  ;;  %4700 = vmatpush.msra.mxu3 %v8846_v29 }
 0xc14   :  { %4453 = vmatmul.f32.vlgmr.msra.gmra.mxu0 %v8836_v27 }
 0xc15   :  { %4702 = vmatpush.msra.mxu3 %v8859_v14 }
 0xc16   :  { %4482 = vmatmul.f32.vlgmr.msra.gmra.mxu1 %v8836_v27 }
 0xc17   :  { %4704 = vmatpush.msra.mxu3 %v8875_v21 }
 0xc19   :  { %4706 = vmatpush.msra.mxu3 %v4518_v18 }
 0xc1a   :  { %4382 = vmatmul.f32.vlgmr.msra.gmra.mxu2 %v8843_v13  ;;  %4420 = vmatmul.f32.gmra.mxu3 %v8911_v26 }
 0xc1b   :  { %4665 = vmatpush.msra.mxu2 %v4551_v34 }
 0xc1c   :  { %4457 = vmatmul.f32.gmra.mxu0 %v8886_v9 }
 0xc1d   :  { %4669 = vmatpush.msra.mxu2 %v4557_v0 }
 0xc1e   :  { %4486 = vmatmul.f32.gmra.mxu1 %v8886_v9 }
 0xc1f   :  { %4673 = vmatpush.msra.mxu2 %v4563_v32 }
 0xc21   :  { %4677 = vmatpush.msra.mxu2 %v4569_v63 }
 0xc22   :  { %4387 = vmatmul.f32.gmra.mxu2 %v8899_v45  ;;  %4574 = vmatmul.f32.vlgmr.msrb.gmra.mxu3 %v8836_v27 }
 0xc24   :  { %4608 = vmatmul.f32.vlgmr.msrb.gmra.mxu0 %v8843_v13 }
 0xc26   :  { %4640 = vmatmul.f32.vlgmr.msrb.gmra.mxu1 %v8854_v28 }
 0xc2a   :  { %4525 = vmatmul.f32.vlgmr.msrb.gmra.mxu2 %v8888_v11  ;;  %4578 = vmatmul.f32.gmra.mxu3 %v8886_v9 }
 0xc2c   :  { %4613 = vmatmul.f32.gmra.mxu0 %v8899_v45 }
 0xc2e   :  { %4646 = vmatmul.f32.gmra.mxu1 %v8911_v26 }
 0xc32   :  { %4533 = vmatmul.f32.gmra.mxu2 %v8925_v59  ;;  %4708 = vmatmul.f32.vlgmr.msra.gmra.mxu3 %v8836_v27 }
 0xc3a   :  { %4679 = vmatmul.f32.vlgmr.msra.gmra.mxu2 %v8836_v27  ;;  %4712 = vmatmul.f32.gmra.mxu3 %v8886_v9 }
 0xc42   :  { %4683 = vmatmul.f32.gmra.mxu2 %v8886_v9 }
 0xc71   :  { %v4157_v24 = vpop.f32.mrf.mxu0 }
 0xc73   :  { %v4189_v12 = vpop.f32.mrf.mxu1 }
 0xc75   :  { %v4123_v30 = vpop.f32.mrf.mxu3 }
 0xc79   :  { %v4162_v62 = vpop.f32.mrf.mxu0 }
 0xc7b   :  { %v4195_v33 = vpop.f32.mrf.mxu1 }
 0xc7d   :  { %v4074_v23 = vpop.f32.mrf.mxu2  ;;  %v4127_v42 = vpop.f32.mrf.mxu3 }
 0xc7e   :  { %v4075_v49 = vadd.f32 %v7435_v51, %v4074_v23 }
 0xc80   :  { %v4124_v1 = vadd.f32 %v4123_v30, %v4075_v49 }
 0xc81   :  { %v4300_v15 = vpop.f32.mrf.mxu0 }
 0xc82   :  { %v4158_v50 = vadd.f32 %v4157_v24, %v4124_v1  ;;  %v4301_v4 = vadd.f32 %v7436_v41, %v4300_v15 }
 0xc83   :  { %v4349_v54 = vpop.f32.mrf.mxu1 }
 0xc84   :  { %v4190_v44 = vadd.f32 %v4189_v12, %v4158_v50  ;;  %v4350_v6 = vadd.f32 %v4349_v54, %v4301_v4 }
 0xc85   :  { %v4082_v22 = vpop.f32.mrf.mxu2  ;;  %v4257_v58 = vpop.f32.mrf.mxu3 }
 0xc86   :  { %v4083_v40 = vadd.f32 %v7435_v51, %v4082_v22 }
 0xc88   :  { %v4128_v39 = vadd.f32 %v4127_v42, %v4083_v40  ;;  %v7437_v42 = vld [vmem:[%s9540_s14 + $0x2] ss:$0 sm:$0xff] }
 0xc89   :  { %v4308_v2 = vpop.f32.mrf.mxu0 }
 0xc8a   :  { %v4163_v7 = vadd.f32 %v4162_v62, %v4128_v39  ;;  %v4309_v21 = vadd.f32 %v7436_v41, %v4308_v2 }
 0xc8b   :  { %v4353_v8 = vpop.f32.mrf.mxu1 }
 0xc8c   :  { %v4196_v56 = vadd.f32 %v4195_v33, %v4163_v7  ;;  %v4354_v38 = vadd.f32 %v4353_v8, %v4309_v21 }
 0xc8d   :  { %v4228_v16 = vpop.f32.mrf.mxu2  ;;  %v4261_v3 = vpop.f32.mrf.mxu3 }
 0xc8e   :  { %v4229_v29 = vadd.f32 %v4228_v16, %v4190_v44 }
 0xc90   :  { %v4258_v19 = vadd.f32 %v4257_v58, %v4229_v29 }
 0xc91   :  { %v4454_v20 = vpop.f32.mrf.mxu0 }
 0xc92   :  { %v4717_v46 = vsel %vm1451_vm7, %v4258_v19, 0 }
 0xc93   :  { %v4483_v34 = vpop.f32.mrf.mxu1  ;;  %v8981_v5 = vand.u32 4294901760, %v4717_v46 }
 0xc95   :  { %v4232_v31 = vpop.f32.mrf.mxu2  ;;  %v4415_v55 = vpop.f32.mrf.mxu3  ;;  %v4747_v36 = vsub.f32 %v4717_v46, %v8981_v5 }
 0xc96   :  { %v4233_v18 = vadd.f32 %v4232_v31, %v4196_v56 }
 0xc97   :  { %v4748_v33 = vand.u32 4294901760, %v4747_v36 }
 0xc98   :  { %v4262_v52 = vadd.f32 %v4261_v3, %v4233_v18 }
 0xc99   :  { %v4458_v10 = vpop.f32.mrf.mxu0  ;;  %v4749_v16 = vsub.f32 %v4747_v36, %v4748_v33 }
 0xc9a   :  { %v4720_v30 = vsel %vm1451_vm7, %v4262_v52, 0 }
 0xc9b   :  { %v4487_v24 = vpop.f32.mrf.mxu1  ;;  %v8989_v22 = vand.u32 4294901760, %v4720_v30  ;;  %v4750_v8 = vand.u32 4294901760, %v4749_v16 }
 0xc9d   :  { %v4383_v57 = vpop.f32.mrf.mxu2  ;;  %v4421_v60 = vpop.f32.mrf.mxu3  ;;  %v4755_v3 = vsub.f32 %v4720_v30, %v8989_v22 }
 0xc9e   :  { %v4384_v14 = vadd.f32 %v4383_v57, %v4350_v6 }
 0xc9f   :  { %v4756_v4 = vand.u32 4294901760, %v4755_v3 }
 0xca0   :  { %v4416_v25 = vadd.f32 %v4415_v55, %v4384_v14 }
 0xca1   :  { %v4609_v50 = vpop.f32.mrf.mxu0  ;;  %v4757_v57 = vsub.f32 %v4755_v3, %v4756_v4 }
 0xca2   :  { %v4455_v0 = vadd.f32 %v4454_v20, %v4416_v25 }
 0xca3   :  { %v4641_v7 = vpop.f32.mrf.mxu1 }
 0xca4   :  { %v4484_v32 = vadd.f32 %v4483_v34, %v4455_v0  ;;  %v4758_v34 = vand.u32 4294901760, %v4757_v57 }
 0xca5   :  { %v4388_v35 = vpop.f32.mrf.mxu2  ;;  %v4575_v37 = vpop.f32.mrf.mxu3 }
 0xca6   :  { %v4389_v63 = vadd.f32 %v4388_v35, %v4354_v38  ;;  %v4723_v61 = vsel %vm1451_vm7, %v4484_v32, 0 }
 0xca7   :  { %v4744_v12 = vand.u32 4294901760, %v4723_v61 }
 0xca8   :  { %v4422_v47 = vadd.f32 %v4421_v60, %v4389_v63 }
 0xca9   :  { %v4784_v15 = vsub.f32 %v4723_v61, %v4744_v12  ;;  %v4614_v56 = vpop.f32.mrf.mxu0 }
 0xcaa   :  { %v4459_v17 = vadd.f32 %v4458_v10, %v4422_v47 }
 0xcab   :  { %v4785_v2 = vand.u32 4294901760, %v4784_v15  ;;  %v4647_v18 = vpop.f32.mrf.mxu1 }
 0xcac   :  { %v4488_v23 = vadd.f32 %v4487_v24, %v4459_v17 }
 0xcad   :  { %v4526_v62 = vpop.f32.mrf.mxu2  ;;  %v4579_v1 = vpop.f32.mrf.mxu3  ;;  %v4786_v44 = vsub.f32 %v4784_v15, %v4785_v2 }
 0xcae   :  { %v4726_v58 = vsel %vm1451_vm7, %v4488_v23, 0  ;;  %v4527_v54 = vadd.f32 %v7437_v42, %v4526_v62 }
 0xcaf   :  { %v4742_v51 = vand.u32 4294901760, %v4726_v58  ;;  %v4787_v14 = vand.u32 4294901760, %v4786_v44 }
 0xcb0   :  { %v4576_v40 = vadd.f32 %v4575_v37, %v4527_v54 }
 0xcb1   :  { %4743 = vmatpush.xpose.msra.mxu0 %v4742_v51  ;;  %4844 = vmatpush.xpose.msrb.mxu3 %v4742_v51  ;;  %v4778_v49 = vsub.f32 %v4726_v58, %v4742_v51 }
 0xcb2   :  { %v4610_v6 = vadd.f32 %v4609_v50, %v4576_v40 }
 0xcb3   :  { %4814 = vmatpush.xpose.msrb.mxu2 %v4778_v49  ;;  %v4779_v41 = vand.u32 4294901760, %v4778_v49 }
 0xcb4   :  { %v4642_v20 = vadd.f32 %v4641_v7, %v4610_v6 }
 0xcb5   :  { %v4534_v31 = vpop.f32.mrf.mxu2  ;;  %4745 = vmatpush.xpose.msra.mxu0 %v4744_v12  ;;  %4846 = vmatpush.xpose.msrb.mxu3 %v4744_v12  ;;  %v4780_v55 = vsub.f32 %v4778_v49, %v4779_v41  ;;  %v4709_v60 = vpop.f32.mrf.mxu3 }
 0xcb6   :  { %v4535_v29 = vadd.f32 %v7437_v42, %v4534_v31 }
 0xcb7   :  { %4817 = vmatpush.xpose.msrb.mxu2 %v4784_v15  ;;  %v4781_v39 = vand.u32 4294901760, %v4780_v55 }
 0xcb8   :  { %4751 = vmatmul.f32.vlgmr.msra.gmra.mxu0 %v4750_v8  ;;  %4850 = vmatmul.f32.vlgmr.msrb.gmra.mxu3 %v4748_v33  ;;  %v4580_v19 = vadd.f32 %v4579_v1, %v4535_v29 }
 0xcb9   :  { %4877 = vmatpush.xpose.msrb.mxu0 %v4779_v41  ;;  %4782 = vmatpush.xpose.msra.mxu1 %v4781_v39 }
 0xcba   :  { %4820 = vmatmul.f32.vlgmr.msrb.gmra.mxu2 %v4747_v36  ;;  %v4615_v46 = vadd.f32 %v4614_v56, %v4580_v19 }
 0xcbc   :  { %v4648_v32 = vadd.f32 %v4647_v18, %v4615_v46 }
 0xcbd   :  { %4881 = vmatpush.xpose.msrb.mxu0 %v4785_v2  ;;  %v4680_v21 = vpop.f32.mrf.mxu2  ;;  %4788 = vmatpush.xpose.msra.mxu1 %v4787_v14  ;;  %v4713_v52 = vpop.f32.mrf.mxu3  ;;  %v9009_v14 = vld [vmem:[%s9581_s1 + $0x8] sm:$0xff] }
 0xcbe   :  { %v4681_v25 = vadd.f32 %v4680_v21, %v4642_v20 }
 0xcc0   :  { %v4710_v0 = vadd.f32 %v4709_v60, %v4681_v25  ;;  %4759 = vmatmul.f32.gmra.mxu0 %v4758_v34  ;;  %4790 = vmatmul.f32.vlgmr.msra.gmra.mxu1 %v8981_v5 }
 0xcc1   :  { %4906 = vmatpush.xpose.msrb.mxu1 %v4742_v51  ;;  %4856 = vmatmul.f32.gmra.mxu3 %v4756_v4  ;;  %v9002_v4 = vld [vmem:[%s9581_s1] sm:$0xff] }
 0xcc2   :  { %4825 = vmatmul.f32.gmra.mxu2 %v4755_v3  ;;  %v4966_v38 = vand.u32 4294901760, %v4710_v0 }
 0xcc4   :  { %v5006_v61 = vsub.f32 %v4710_v0, %v4966_v38 }
 0xcc5   :  { %4908 = vmatpush.xpose.msrb.mxu1 %v4744_v12  ;;  %v4684_v35 = vpop.f32.mrf.mxu2 }
 0xcc6   :  { %v4685_v63 = vadd.f32 %v4684_v35, %v4648_v32  ;;  %v5007_v36 = vand.u32 4294901760, %v5006_v61  ;;  %v7378_v35 = vld [vmem:[%s9578_s9 + $0x78] sm:$0xff] }
 0xcc8   :  { %v4714_v47 = vadd.f32 %v4713_v52, %v4685_v63  ;;  %4794 = vmatmul.f32.gmra.mxu1 %v8989_v22  ;;  %4883 = vmatmul.f32.vlgmr.msrb.gmra.mxu0 %v8981_v5  ;;  %v5008_v24 = vsub.f32 %v5006_v61, %v5007_v36  ;;  %v9018_v63 = vand.u32 4294901760, %v7378_v35  ;;  %v7377_v52 = vld [vmem:[%s9578_s9 + $0x70] sm:$0xff] }
 0xcca   :  { %v4964_v10 = vand.u32 4294901760, %v4714_v47  ;;  %v5009_v23 = vand.u32 4294901760, %v5008_v24 }
 0xccc   :  { %v5000_v37 = vsub.f32 %v4714_v47, %v4964_v10  ;;  %4965 = vmatpush.msra.mxu2 %v4964_v10  ;;  %5066 = vmatpush.msra.mxu1 %v4964_v10  ;;  %v9025_v47 = vsub.f32 %v7378_v35, %v9018_v63 }
 0xcce   :  { %4967 = vmatpush.msra.mxu2 %v4966_v38  ;;  %5036 = vmatpush.msra.mxu0 %v5000_v37  ;;  %v5001_v17 = vand.u32 4294901760, %v5000_v37 }
 0xccf   :  { %5068 = vmatpush.msra.mxu1 %v4966_v38 }
 0xcd0   :  { %4887 = vmatmul.f32.gmra.mxu0 %v8989_v22  ;;  %4910 = vmatmul.f32.vlgmr.msrb.gmra.mxu1 %v8981_v5  ;;  %v5002_v30 = vsub.f32 %v5000_v37, %v5001_v17  ;;  %v5204_v37 = vand.u32 4294901760, %v9025_v47 }
 0xcd1   :  { %5039 = vmatpush.msra.mxu0 %v5006_v61  ;;  %5099 = vmatpush.msrb.mxu2 %v5001_v17  ;;  %v9027_v61 = vand.u32 4294901760, %v7377_v52 }
 0xcd2   :  { %v5003_v12 = vand.u32 4294901760, %v5002_v30  ;;  %v7375_v30 = vld [vmem:[%s9578_s9 + $0x60] sm:$0xff]  ;;  %v5205_v24 = vsub.f32 %v9025_v47, %v5204_v37 }
 0xcd3   :  { %5103 = vmatpush.msrb.mxu2 %v5007_v36  ;;  %5166 = vmatpush.msrb.mxu0 %v9018_v63  ;;  %v9037_v17 = vsub.f32 %v7377_v52, %v9027_v61 }
 0xcd4   :  { %5004 = vmatpush.msra.mxu3 %v5003_v12 }
 0xcd5   :  { %5168 = vmatpush.msrb.mxu0 %v9027_v61  ;;  %v5210_v12 = vand.u32 4294901760, %v9037_v17 }
 0xcd6   :  { %5010 = vmatpush.msra.mxu3 %v5009_v23  ;;  %v9045_v23 = vand.u32 4294901760, %v7375_v30 }
 0xcd8   :  { %5128 = vmatpush.msrb.mxu3 %v4964_v10  ;;  %4914 = vmatmul.f32.gmra.mxu1 %v8989_v22  ;;  %v7376_v10 = vld [vmem:[%s9578_s9 + $0x68] sm:$0xff] }
 0xcd9   :  { %v9034_v36 = vand.u32 4294901760, %v7376_v10 }
 0xcda   :  { %5130 = vmatpush.msrb.mxu3 %v4966_v38 }
 0xcdb   :  { %5170 = vmatpush.msrb.mxu0 %v9034_v36 }
 0xcdd   :  { %5172 = vmatpush.msrb.mxu0 %v9045_v23 }
 0xd35   :  { %v4752_v42 = vpop.f32.mrf.mxu0 }
 0xd3b   :  { %v4851_v54 = vpop.f32.mrf.mxu3 }
 0xd3d   :  { %v4760_v62 = vpop.f32.mrf.mxu0  ;;  %v4791_v33 = vpop.f32.mrf.mxu1 }
 0xd3e   :  { %v4792_v58 = vadd.f32 %v4791_v33, %v4752_v42  ;;  %v4821_v51 = vpop.f32.mrf.mxu2  ;;  %v9048_v42 = vsub.f32 %v7376_v10, %v9034_v36  ;;  %v5211_v33 = vsub.f32 %v9037_v17, %v5210_v12 }
 0xd40   :  { %v4822_v5 = vadd.f32 %v4821_v51, %v4792_v58  ;;  %v5216_v58 = vand.u32 4294901760, %v9048_v42  ;;  %v9054_v51 = vsub.f32 %v7375_v30, %v9045_v23 }
 0xd42   :  { %v4852_v3 = vadd.f32 %v4851_v54, %v4822_v5  ;;  %v5217_v5 = vsub.f32 %v9048_v42, %v5216_v58  ;;  %v5222_v54 = vand.u32 4294901760, %v9054_v51 }
 0xd44   :  { %v4857_v55 = vpop.f32.mrf.mxu3 }
 0xd45   :  { %v4795_v15 = vpop.f32.mrf.mxu1  ;;  %v4884_v49 = vpop.f32.mrf.mxu0 }
 0xd46   :  { %v4796_v16 = vadd.f32 %v4795_v15, %v4760_v62  ;;  %v4885_v1 = vadd.f32 %v4884_v49, %v4852_v3  ;;  %v4826_v41 = vpop.f32.mrf.mxu2  ;;  %v5206_v62 = vand.u32 4294901760, %v5205_v24  ;;  %v5212_v15 = vand.u32 4294901760, %v5211_v33 }
 0xd47   :  { %v5218_v49 = vand.u32 4294901760, %v5217_v5 }
 0xd48   :  { %v4827_v40 = vadd.f32 %v4826_v41, %v4796_v16  ;;  %5207 = vmatpush.msrb.mxu1 %v5206_v62  ;;  %v5223_v16 = vsub.f32 %v9054_v51, %v5222_v54 }
 0xd4a   :  { %v4858_v8 = vadd.f32 %v4857_v55, %v4827_v40  ;;  %5213 = vmatpush.msrb.mxu1 %v5212_v15  ;;  %v5224_v3 = vand.u32 4294901760, %v5223_v16  ;;  %v7383_v55 = vld [vmem:[%s9537_s11 + $0x78] sm:$0xff] }
 0xd4c   :  { %5219 = vmatpush.msrb.mxu1 %v5218_v49 }
 0xd4d   :  { %v4911_v2 = vpop.f32.mrf.mxu1  ;;  %v4888_v22 = vpop.f32.mrf.mxu0 }
 0xd4e   :  { %v4912_v50 = vadd.f32 %v4911_v2, %v4885_v1  ;;  %v4889_v44 = vadd.f32 %v4888_v22, %v4858_v8  ;;  %5225 = vmatpush.msrb.mxu1 %v5224_v3  ;;  %v9067_v8 = vand.u32 4294901760, %v7383_v55  ;;  %v7385_v3 = vld [vmem:[%s9539_s13 + $0x60] sm:$0xff] }
 0xd50   :  { %v4918_v31 = vmul.f32 0.25, %v4912_v50 }
 0xd52   :  { %v4920_v39 = vadd.f32 %v9002_v4, %v4918_v31 }
 0xd54   :  { %v4922_v29 = vsel %vm1451_vm7, %v4920_v39, -inf }
 0xd55   :  { %v4915_v6 = vpop.f32.mrf.mxu1  ;;  %4923 = vmax.xlane.f32.xlu0 %v4922_v29 }
 0xd56   :  { %v4916_v7 = vadd.f32 %v4915_v6, %v4889_v44  ;;  %v9074_v6 = vsub.f32 %v7383_v55, %v9067_v8 }
 0xd58   :  { %v4919_v57 = vmul.f32 0.25, %v4916_v7 }
 0xd5a   :  { %v4921_v19 = vadd.f32 %v9009_v14, %v4919_v57 }
 0xd5c   :  { %v4925_v20 = vsel %vm1451_vm7, %v4921_v19, -inf }
 0xd5d   :  { %4926 = vmax.xlane.f32.xlu1 %v4925_v20 }
 0xdc8   :  { %v4924_v60 = vpop.xlane.xlu0 %4923 }
 0xdc9   :  { %v4928_v21 = vsub.f32 %v4920_v39, %v4924_v60  ;;  %v7382_v39 = vld [vmem:[%s9537_s11 + $0x70] sm:$0xff] }
 0xdca   :  { %v9076_v7 = vand.u32 4294901760, %v7382_v39 }
 0xdcb   :  { %v4930_v25 = vmul.f32 1.442695, %v4928_v21 }
 0xdcc   :  { %v9083_v60 = vsub.f32 %v7382_v39, %v9076_v7 }
 0xdcd   :  { %7482 = vpow2.f32 %v4930_v25 }
 0xdd0   :  { %v4927_v34 = vpop.xlane.xlu1 %4926 }
 0xdd1   :  { %v4929_v56 = vsub.f32 %v4921_v19, %v4927_v34  ;;  %v7381_v19 = vld [vmem:[%s9537_s11 + $0x68] sm:$0xff]  ;;  %v5430_v34 = vand.u32 4294901760, %v9074_v6 }
 0xdd2   :  { %v9085_v21 = vand.u32 4294901760, %v7381_v19 }
 0xdd3   :  { %v7483_v0 = vpop.eup %7482  ;;  %v4932_v46 = vmul.f32 1.442695, %v4929_v56  ;;  %v7380_v56 = vld [vmem:[%s9537_s11 + $0x60] sm:$0xff] }
 0xdd4   :  { %v4934_v18 = vsel %vm1451_vm7, %v7483_v0, 0.0 }
 0xdd5   :  { %7484 = vpow2.f32 %v4932_v46  ;;  %4935 = vadd.xlane.f32.xlu2 %v4934_v18  ;;  %v5436_v18 = vand.u32 4294901760, %v9083_v60 }
 0xddb   :  { %v7485_v38 = vpop.eup %7484 }
 0xddc   :  { %v4937_v32 = vsel %vm1451_vm7, %v7485_v38, 0.0 }
 0xddd   :  { %4938 = vadd.xlane.f32.xlu0 %v4937_v32  ;;  %v9101_v32 = vand.u32 4294901760, %v7380_v56 }
 0xddf   :  { %v9112_v10 = vsub.f32 %v7380_v56, %v9101_v32 }
 0xe48   :  { %v4936_v1 = vpop.xlane.xlu2 %4935 }
 0xe49   :  { %7486 = vrcp.f32 %v4936_v1 }
 0xe4f   :  { %v7487_v41 = vpop.eup %7486 }
 0xe50   :  { %v4942_v2 = vmul.f32 %v7487_v41, %v7483_v0  ;;  %v4939_v40 = vpop.xlane.xlu0 %4938  ;;  %v9166_v41 = vand.u32 4294901760, %v7385_v3 }
 0xe51   :  { %7488 = vrcp.f32 %v4939_v40 }
 0xe52   :  { %v4945_v50 = vsel %vm1451_vm7, %v4942_v2, 0 }
 0xe53   :  { %v9060_v31 = vand.u32 4294901760, %v4945_v50 }
 0xe55   :  { %v4969_v22 = vsub.f32 %v4945_v50, %v9060_v31  ;;  %5012 = vmatmul.f32.vlgmr.msra.gmra.mxu3 %v9060_v31  ;;  %v5673_v50 = vsub.f32 %v7385_v3, %v9166_v41 }
 0xe56   :  { %5283 = vmatpush.msra.mxu3 %v9018_v63 }
 0xe57   :  { %v7489_v44 = vpop.eup %7488  ;;  %5042 = vmatmul.f32.vlgmr.msra.gmra.mxu0 %v4969_v22  ;;  %v4970_v29 = vand.u32 4294901760, %v4969_v22  ;;  %v5674_v39 = vand.u32 4294901760, %v5673_v50 }
 0xe58   :  { %v4943_v57 = vmul.f32 %v7489_v44, %v7485_v38  ;;  %5285 = vmatpush.msra.mxu3 %v9027_v61  ;;  %5318 = vmatpush.msra.mxu0 %v5204_v37  ;;  %v9099_v38 = vsub.f32 %v7381_v19, %v9085_v21 }
 0xe59   :  { %5072 = vmatmul.f32.vlgmr.msra.gmra.mxu1 %v4970_v29  ;;  %v4971_v20 = vsub.f32 %v4969_v22, %v4970_v29 }
 0xe5a   :  { %v4948_v25 = vsel %vm1451_vm7, %v4943_v57, 0  ;;  %5287 = vmatpush.msra.mxu3 %v9034_v36  ;;  %5322 = vmatpush.msra.mxu0 %v5210_v12  ;;  %v5442_v52 = vand.u32 4294901760, %v9099_v38 }
 0xe5b   :  { %v4972_v0 = vand.u32 4294901760, %v4971_v20  ;;  %v9093_v46 = vand.u32 4294901760, %v4948_v25  ;;  %5353 = vmatpush.msra.mxu1 %v9018_v63  ;;  %v5431_v63 = vsub.f32 %v9074_v6, %v5430_v34 }
 0xe5c   :  { %5289 = vmatpush.msra.mxu3 %v9045_v23  ;;  %5326 = vmatpush.msra.mxu0 %v5216_v58  ;;  %v5443_v12 = vsub.f32 %v9099_v38, %v5442_v52 }
 0xe5d   :  { %4973 = vmatmul.f32.vlgmr.msra.gmra.mxu2 %v4972_v0  ;;  %5016 = vmatmul.f32.gmra.mxu3 %v9093_v46  ;;  %v4977_v35 = vsub.f32 %v4948_v25, %v9093_v46  ;;  %v5432_v24 = vand.u32 4294901760, %v5431_v63 }
 0xe5e   :  { %5355 = vmatpush.msra.mxu1 %v9027_v61  ;;  %5249 = vmatpush.msra.mxu2 %v9025_v47  ;;  %v5437_v61 = vsub.f32 %v9083_v60, %v5436_v18  ;;  %v5448_v47 = vand.u32 4294901760, %v9112_v10 }
 0xe5f   :  { %5047 = vmatmul.f32.gmra.mxu0 %v4977_v35  ;;  %v4978_v37 = vand.u32 4294901760, %v4977_v35 }
 0xe60   :  { %5330 = vmatpush.msra.mxu0 %v5222_v54  ;;  %5357 = vmatpush.msra.mxu1 %v9034_v36  ;;  %v5438_v36 = vand.u32 4294901760, %v5437_v61  ;;  %v5449_v33 = vsub.f32 %v9112_v10, %v5448_v47  ;;  %v7386_v54 = vld [vmem:[%s9539_s13 + $0x68] sm:$0xff] }
 0xe61   :  { %5078 = vmatmul.f32.gmra.mxu1 %v4978_v37  ;;  %v4979_v30 = vsub.f32 %v4977_v35, %v4978_v37  ;;  %5252 = vmatpush.msra.mxu2 %v9037_v17  ;;  %v5444_v17 = vand.u32 4294901760, %v5443_v12  ;;  %v9154_v49 = vand.u32 4294901760, %v7386_v54  ;;  %v7439_v12 = vld [vmem:[%s9538_s12 + $0x3] ss:$0 sm:$0xff] }
 0xe62   :  { %5359 = vmatpush.msra.mxu1 %v9045_v23  ;;  %v5450_v23 = vand.u32 4294901760, %v5449_v33 }
 0xe63   :  { %v4980_v62 = vand.u32 4294901760, %v4979_v30  ;;  %5255 = vmatpush.msra.mxu2 %v9048_v42  ;;  %v7388_v42 = vld [vmem:[%s9539_s13 + $0x78] sm:$0xff]  ;;  %v9171_v2 = vsub.f32 %v7386_v54, %v9154_v49 }
 0xe64   :  { %v9136_v58 = vand.u32 4294901760, %v7388_v42 }
 0xe65   :  { %4981 = vmatmul.f32.gmra.mxu2 %v4980_v62  ;;  %5132 = vmatmul.f32.vlgmr.msrb.gmra.mxu3 %v9060_v31  ;;  %v5668_v55 = vand.u32 4294901760, %v9171_v2 }
 0xe66   :  { %5258 = vmatpush.msra.mxu2 %v9054_v51  ;;  %5433 = vmatpush.msrb.mxu3 %v5432_v24  ;;  %v7387_v51 = vld [vmem:[%s9539_s13 + $0x70] sm:$0xff]  ;;  %v9144_v15 = vsub.f32 %v7388_v42, %v9136_v58 }
 0xe67   :  { %5178 = vmatmul.f32.vlgmr.msrb.gmra.mxu0 %v8888_v11  ;;  %v9146_v5 = vand.u32 4294901760, %v7387_v51  ;;  %v5669_v29 = vsub.f32 %v9171_v2, %v5668_v55 }
 0xe68   :  { %5439 = vmatpush.msrb.mxu3 %v5438_v36  ;;  %5475 = vmatpush.msrb.mxu0 %v9074_v6  ;;  %v5656_v1 = vand.u32 4294901760, %v9144_v15 }
 0xe69   :  { %5227 = vmatmul.f32.vlgmr.msrb.gmra.mxu1 %v8836_v27  ;;  %v9159_v16 = vsub.f32 %v7387_v51, %v9146_v5  ;;  %v5670_v19 = vand.u32 4294901760, %v5669_v29 }
 0xe6a   :  { %5445 = vmatpush.msrb.mxu3 %v5444_v17  ;;  %5478 = vmatpush.msrb.mxu0 %v9083_v60 }
 0xe6b   :  { %5509 = vmatpush.msrb.mxu1 %v9067_v8  ;;  %v5662_v40 = vand.u32 4294901760, %v9159_v16 }
 0xe6c   :  { %5451 = vmatpush.msrb.mxu3 %v5450_v23  ;;  %5481 = vmatpush.msrb.mxu0 %v9099_v38 }
 0xe6d   :  { %5105 = vmatmul.f32.vlgmr.msrb.gmra.mxu2 %v9060_v31  ;;  %5136 = vmatmul.f32.gmra.mxu3 %v9093_v46  ;;  %v5657_v31 = vsub.f32 %v9144_v15, %v5656_v1  ;;  %v5663_v22 = vsub.f32 %v9159_v16, %v5662_v40 }
 0xe6e   :  { %5511 = vmatpush.msrb.mxu1 %v9076_v7  ;;  %5392 = vmatpush.msrb.mxu2 %v9067_v8 }
 0xe6f   :  { %5186 = vmatmul.f32.gmra.mxu0 %v8925_v59  ;;  %v5658_v44 = vand.u32 4294901760, %v5657_v31  ;;  %v5664_v57 = vand.u32 4294901760, %v5663_v22 }
 0xe70   :  { %5484 = vmatpush.msrb.mxu0 %v9112_v10  ;;  %5513 = vmatpush.msrb.mxu1 %v9085_v21  ;;  %v7438_v10 = vld [vmem:[%s9536_s10 + $0x3] ss:$0 sm:$0xff]  ;;  %s7313_s10 = sshll.u32 %s9551_s25, 4  ;;  %s7314_s10 = int_to_ptr.hbm [resolvable:$true] %s7313_s10 }
 0xe71   :  { %5231 = vmatmul.f32.gmra.mxu1 %v8886_v9  ;;  %5394 = vmatpush.msrb.mxu2 %v9076_v7 }
 0xe72   :  { %5515 = vmatpush.msrb.mxu1 %v9101_v32 }
 0xe73   :  { %5396 = vmatpush.msrb.mxu2 %v9085_v21 }
 0xe75   :  { %5109 = vmatmul.f32.gmra.mxu2 %v9093_v46  ;;  %5293 = vmatmul.f32.vlgmr.msra.gmra.mxu3 %v8854_v28 }
 0xe76   :  { %5398 = vmatpush.msrb.mxu2 %v9101_v32  ;;  %5579 = vmatpush.msra.mxu3 %v9067_v8  ;;  %v5675_v8 = vsub.f32 %v5673_v50, %v5674_v39 }
 0xe77   :  { %5332 = vmatmul.f32.vlgmr.msra.gmra.mxu0 %v8836_v27 }
 0xe78   :  { %5581 = vmatpush.msra.mxu3 %v9076_v7  ;;  %5618 = vmatpush.msra.mxu0 %v9136_v58  ;;  %v5676_v7 = vand.u32 4294901760, %v5675_v8 }
 0xe79   :  { %5361 = vmatmul.f32.vlgmr.msra.gmra.mxu1 %v8836_v27 }
 0xe7a   :  { %5583 = vmatpush.msra.mxu3 %v9085_v21  ;;  %5620 = vmatpush.msra.mxu0 %v9146_v5 }
 0xe7b   :  { %5659 = vmatpush.msra.mxu1 %v5658_v44 }
 0xe7c   :  { %5585 = vmatpush.msra.mxu3 %v9101_v32  ;;  %5622 = vmatpush.msra.mxu0 %v9154_v49 }
 0xe7d   :  { %5261 = vmatmul.f32.vlgmr.msra.gmra.mxu2 %v8843_v13  ;;  %5299 = vmatmul.f32.gmra.mxu3 %v8911_v26 }
 0xe7e   :  { %5665 = vmatpush.msra.mxu1 %v5664_v57  ;;  %5544 = vmatpush.msra.mxu2 %v5430_v34 }
 0xe7f   :  { %5336 = vmatmul.f32.gmra.mxu0 %v8886_v9 }
 0xe80   :  { %5624 = vmatpush.msra.mxu0 %v9166_v41  ;;  %5671 = vmatpush.msra.mxu1 %v5670_v19 }
 0xe81   :  { %5365 = vmatmul.f32.gmra.mxu1 %v8886_v9  ;;  %5548 = vmatpush.msra.mxu2 %v5436_v18 }
 0xe82   :  { %5677 = vmatpush.msra.mxu1 %v5676_v7 }
 0xe83   :  { %5552 = vmatpush.msra.mxu2 %v5442_v52 }
 0xe85   :  { %5266 = vmatmul.f32.gmra.mxu2 %v8899_v45  ;;  %5453 = vmatmul.f32.vlgmr.msrb.gmra.mxu3 %v8836_v27 }
 0xe86   :  { %5556 = vmatpush.msra.mxu2 %v5448_v47  ;;  %5735 = vmatpush.msrb.mxu3 %v9136_v58 }
 0xe87   :  { %5487 = vmatmul.f32.vlgmr.msrb.gmra.mxu0 %v8843_v13 }
 0xe88   :  { %5737 = vmatpush.msrb.mxu3 %v9146_v5  ;;  %5770 = vmatpush.msrb.mxu0 %v5656_v1 }
 0xe89   :  { %5519 = vmatmul.f32.vlgmr.msrb.gmra.mxu1 %v8854_v28 }
 0xe8a   :  { %5739 = vmatpush.msrb.mxu3 %v9154_v49  ;;  %5774 = vmatpush.msrb.mxu0 %v5662_v40 }
 0xe8b   :  { %5805 = vmatpush.msrb.mxu1 %v9136_v58 }
 0xe8c   :  { %5741 = vmatpush.msrb.mxu3 %v9166_v41  ;;  %5778 = vmatpush.msrb.mxu0 %v5668_v55 }
 0xe8d   :  { %5404 = vmatmul.f32.vlgmr.msrb.gmra.mxu2 %v8888_v11  ;;  %5457 = vmatmul.f32.gmra.mxu3 %v8886_v9 }
 0xe8e   :  { %5807 = vmatpush.msrb.mxu1 %v9146_v5  ;;  %5701 = vmatpush.msrb.mxu2 %v9144_v15 }
 0xe8f   :  { %5492 = vmatmul.f32.gmra.mxu0 %v8899_v45 }
 0xe90   :  { %5782 = vmatpush.msrb.mxu0 %v5674_v39  ;;  %5809 = vmatpush.msrb.mxu1 %v9154_v49 }
 0xe91   :  { %5525 = vmatmul.f32.gmra.mxu1 %v8911_v26  ;;  %5704 = vmatpush.msrb.mxu2 %v9159_v16 }
 0xe92   :  { %5811 = vmatpush.msrb.mxu1 %v9166_v41 }
 0xe93   :  { %5707 = vmatpush.msrb.mxu2 %v9171_v2 }
 0xe95   :  { %5412 = vmatmul.f32.gmra.mxu2 %v8925_v59  ;;  %5587 = vmatmul.f32.vlgmr.msra.gmra.mxu3 %v8836_v27 }
 0xe96   :  { %5710 = vmatpush.msrb.mxu2 %v5673_v50 }
 0xe97   :  { %5630 = vmatmul.f32.vlgmr.msra.gmra.mxu0 %v8888_v11 }
 0xe99   :  { %5679 = vmatmul.f32.vlgmr.msra.gmra.mxu1 %v8836_v27 }
 0xe9d   :  { %5558 = vmatmul.f32.vlgmr.msra.gmra.mxu2 %v8836_v27  ;;  %5591 = vmatmul.f32.gmra.mxu3 %v8886_v9 }
 0xe9f   :  { %5638 = vmatmul.f32.gmra.mxu0 %v8925_v59 }
 0xea1   :  { %5683 = vmatmul.f32.gmra.mxu1 %v8886_v9 }
 0xea5   :  { %5562 = vmatmul.f32.gmra.mxu2 %v8886_v9  ;;  %5745 = vmatmul.f32.vlgmr.msrb.gmra.mxu3 %v8854_v28 }
 0xea7   :  { %5784 = vmatmul.f32.vlgmr.msrb.gmra.mxu0 %v8836_v27 }
 0xea9   :  { %5813 = vmatmul.f32.vlgmr.msrb.gmra.mxu1 %v8836_v27 }
 0xead   :  { %5713 = vmatmul.f32.vlgmr.msrb.gmra.mxu2 %v8843_v13  ;;  %5751 = vmatmul.f32.gmra.mxu3 %v8911_v26 }
 0xeaf   :  { %5788 = vmatmul.f32.gmra.mxu0 %v8886_v9 }
 0xeb1   :  { %5817 = vmatmul.f32.gmra.mxu1 %v8886_v9 }
 0xeb5   :  { %5718 = vmatmul.f32.gmra.mxu2 %v8899_v45 }
 0xed4   :  { %v9244_v11 = vpop.f32.mrf.mxu0 }
 0xed6   :  { %v9246_v59 = vpop.f32.mrf.mxu1 }
 0xed8   :  { %v9248_v6 = vpop.f32.mrf.mxu3 }
 0xedc   :  { %v9250_v28 = vpop.f32.mrf.mxu0 }
 0xede   :  { %v9252_v20 = vpop.f32.mrf.mxu1 }
 0xee0   :  { %v9254_v27 = vpop.f32.mrf.mxu2  ;;  %v9256_v13 = vpop.f32.mrf.mxu3 }
 0xee4   :  { %v5179_v26 = vpop.f32.mrf.mxu0 }
 0xee5   :  { %v5180_v30 = vadd.f32 %v7438_v10, %v5179_v26 }
 0xee6   :  { %v5228_v60 = vpop.f32.mrf.mxu1 }
 0xee7   :  { %v5229_v62 = vadd.f32 %v5228_v60, %v5180_v30 }
 0xee8   :  { %v9258_v21 = vpop.f32.mrf.mxu2  ;;  %v9260_v9 = vpop.f32.mrf.mxu3 }
 0xeec   :  { %v5187_v45 = vpop.f32.mrf.mxu0 }
 0xeed   :  { %v5188_v42 = vadd.f32 %v7438_v10, %v5187_v45 }
 0xeee   :  { %v5232_v25 = vpop.f32.mrf.mxu1 }
 0xeef   :  { %v5233_v54 = vadd.f32 %v5232_v25, %v5188_v42  ;;  %v7440_v25 = vld [vmem:[%s9540_s14 + $0x3] ss:$0 sm:$0xff] }
 0xef0   :  { %v9262_v34 = vpop.f32.mrf.mxu2  ;;  %v9264_v56 = vpop.f32.mrf.mxu3 }
 0xef4   :  { %v5333_v0 = vpop.f32.mrf.mxu0 }
 0xef6   :  { %v5362_v46 = vpop.f32.mrf.mxu1 }
 0xef8   :  { %v9266_v18 = vpop.f32.mrf.mxu2  ;;  %v5294_v38 = vpop.f32.mrf.mxu3 }
 0xefc   :  { %v5337_v32 = vpop.f32.mrf.mxu0 }
 0xefe   :  { %v5366_v52 = vpop.f32.mrf.mxu1 }
 0xf00   :  { %v5262_v35 = vpop.f32.mrf.mxu2  ;;  %v5300_v63 = vpop.f32.mrf.mxu3 }
 0xf01   :  { %v5263_v33 = vadd.f32 %v5262_v35, %v5229_v62 }
 0xf03   :  { %v5295_v51 = vadd.f32 %v5294_v38, %v5263_v33 }
 0xf04   :  { %v5488_v47 = vpop.f32.mrf.mxu0 }
 0xf05   :  { %v5334_v16 = vadd.f32 %v5333_v0, %v5295_v51 }
 0xf06   :  { %v5520_v24 = vpop.f32.mrf.mxu1 }
 0xf07   :  { %v5363_v40 = vadd.f32 %v5362_v46, %v5334_v16 }
 0xf08   :  { %v5267_v37 = vpop.f32.mrf.mxu2  ;;  %v5454_v61 = vpop.f32.mrf.mxu3 }
 0xf09   :  { %v5268_v3 = vadd.f32 %v5267_v37, %v5233_v54  ;;  %v5822_v57 = vsel %vm1451_vm7, %v5363_v40, 0 }
 0xf0a   :  { %v9275_v26 = vand.u32 4294901760, %v5822_v57 }
 0xf0b   :  { %v5301_v50 = vadd.f32 %v5300_v63, %v5268_v3 }
 0xf0c   :  { %v5493_v58 = vpop.f32.mrf.mxu0  ;;  %v5852_v63 = vsub.f32 %v5822_v57, %v9275_v26 }
 0xf0d   :  { %v5338_v8 = vadd.f32 %v5337_v32, %v5301_v50 }
 0xf0e   :  { %v5526_v15 = vpop.f32.mrf.mxu1 }
 0xf0f   :  { %v5367_v60 = vadd.f32 %v5366_v52, %v5338_v8 }
 0xf10   :  { %v5405_v36 = vpop.f32.mrf.mxu2  ;;  %v5458_v17 = vpop.f32.mrf.mxu3 }
 0xf11   :  { %v5406_v23 = vadd.f32 %v7439_v12, %v5405_v36  ;;  %v5825_v32 = vsel %vm1451_vm7, %v5367_v60, 0 }
 0xf12   :  { %v9283_v52 = vand.u32 4294901760, %v5825_v32 }
 0xf13   :  { %v5455_v5 = vadd.f32 %v5454_v61, %v5406_v23 }
 0xf14   :  { %v5631_v31 = vpop.f32.mrf.mxu0 }
 0xf15   :  { %v5489_v41 = vadd.f32 %v5488_v47, %v5455_v5  ;;  %v5632_v47 = vadd.f32 %v7440_v25, %v5631_v31 }
 0xf16   :  { %v5680_v39 = vpop.f32.mrf.mxu1 }
 0xf17   :  { %v5521_v22 = vadd.f32 %v5520_v24, %v5489_v41  ;;  %v5681_v33 = vadd.f32 %v5680_v39, %v5632_v47 }
 0xf18   :  { %v5413_v49 = vpop.f32.mrf.mxu2  ;;  %v5588_v2 = vpop.f32.mrf.mxu3 }
 0xf19   :  { %v5414_v1 = vadd.f32 %v7439_v12, %v5413_v49  ;;  %v5853_v12 = vand.u32 4294901760, %v5852_v63 }
 0xf1b   :  { %v5459_v55 = vadd.f32 %v5458_v17, %v5414_v1  ;;  %v5854_v51 = vsub.f32 %v5852_v63, %v5853_v12 }
 0xf1c   :  { %v5639_v38 = vpop.f32.mrf.mxu0 }
 0xf1d   :  { %v5494_v7 = vadd.f32 %v5493_v58, %v5459_v55  ;;  %v5640_v16 = vadd.f32 %v7440_v25, %v5639_v38  ;;  %v5855_v40 = vand.u32 4294901760, %v5854_v51 }
 0xf1e   :  { %v5684_v37 = vpop.f32.mrf.mxu1 }
 0xf1f   :  { %v5527_v46 = vadd.f32 %v5526_v15, %v5494_v7  ;;  %v5860_v15 = vsub.f32 %v5825_v32, %v9283_v52 }
 0xf20   :  { %v5559_v44 = vpop.f32.mrf.mxu2  ;;  %v5592_v45 = vpop.f32.mrf.mxu3 }
 0xf21   :  { %v5560_v29 = vadd.f32 %v5559_v44, %v5521_v22  ;;  %v5861_v50 = vand.u32 4294901760, %v5860_v15  ;;  %v5685_v22 = vadd.f32 %v5684_v37, %v5640_v16 }
 0xf23   :  { %v5589_v19 = vadd.f32 %v5588_v2, %v5560_v29  ;;  %v5862_v57 = vsub.f32 %v5860_v15, %v5861_v50 }
 0xf24   :  { %v5785_v5 = vpop.f32.mrf.mxu0 }
 0xf25   :  { %v5828_v0 = vsel %vm1451_vm7, %v5589_v19, 0 }
 0xf26   :  { %v5849_v61 = vand.u32 4294901760, %v5828_v0  ;;  %v5814_v1 = vpop.f32.mrf.mxu1 }
 0xf28   :  { %v5563_v35 = vpop.f32.mrf.mxu2  ;;  %v5889_v36 = vsub.f32 %v5828_v0, %v5849_v61  ;;  %v5746_v23 = vpop.f32.mrf.mxu3  ;;  %v5863_v0 = vand.u32 4294901760, %v5862_v57 }
 0xf29   :  { %v5564_v10 = vadd.f32 %v5563_v35, %v5527_v46 }
 0xf2a   :  { %v5890_v49 = vand.u32 4294901760, %v5889_v36 }
 0xf2b   :  { %v5593_v30 = vadd.f32 %v5592_v45, %v5564_v10 }
 0xf2c   :  { %v5891_v55 = vsub.f32 %v5889_v36, %v5890_v49  ;;  %v5789_v45 = vpop.f32.mrf.mxu0 }
 0xf2d   :  { %v5831_v24 = vsel %vm1451_vm7, %v5593_v30, 0 }
 0xf2e   :  { %v5847_v62 = vand.u32 4294901760, %v5831_v24  ;;  %v5892_v19 = vand.u32 4294901760, %v5891_v55  ;;  %v5818_v46 = vpop.f32.mrf.mxu1 }
 0xf30   :  { %v5883_v17 = vsub.f32 %v5831_v24, %v5847_v62  ;;  %v5714_v42 = vpop.f32.mrf.mxu2  ;;  %5848 = vmatpush.xpose.msra.mxu2 %v5847_v62  ;;  %5949 = vmatpush.xpose.msra.mxu1 %v5847_v62  ;;  %v5752_v8 = vpop.f32.mrf.mxu3 }
 0xf31   :  { %v5715_v58 = vadd.f32 %v5714_v42, %v5681_v33 }
 0xf32   :  { %5919 = vmatpush.xpose.msra.mxu0 %v5883_v17  ;;  %v5884_v54 = vand.u32 4294901760, %v5883_v17 }
 0xf33   :  { %v5747_v3 = vadd.f32 %v5746_v23, %v5715_v58 }
 0xf34   :  { %5850 = vmatpush.xpose.msra.mxu2 %v5849_v61  ;;  %5951 = vmatpush.xpose.msra.mxu1 %v5849_v61  ;;  %v5885_v41 = vsub.f32 %v5883_v17, %v5884_v54 }
 0xf35   :  { %v5786_v2 = vadd.f32 %v5785_v5, %v5747_v3 }
 0xf36   :  { %5922 = vmatpush.xpose.msra.mxu0 %v5889_v36  ;;  %v5886_v31 = vand.u32 4294901760, %v5885_v41 }
 0xf37   :  { %v5815_v39 = vadd.f32 %v5814_v1, %v5786_v2  ;;  %5856 = vmatmul.f32.vlgmr.msra.gmra.mxu2 %v5855_v40  ;;  %5955 = vmatmul.f32.vlgmr.msra.gmra.mxu1 %v5853_v12 }
 0xf38   :  { %5982 = vmatpush.xpose.msrb.mxu2 %v5884_v54  ;;  %v5719_v44 = vpop.f32.mrf.mxu2  ;;  %5887 = vmatpush.xpose.msra.mxu3 %v5886_v31 }
 0xf39   :  { %v5720_v29 = vadd.f32 %v5719_v44, %v5685_v22  ;;  %5925 = vmatmul.f32.vlgmr.msra.gmra.mxu0 %v5852_v63  ;;  %v6071_v60 = vand.u32 4294901760, %v5815_v39 }
 0xf3b   :  { %v5753_v7 = vadd.f32 %v5752_v8, %v5720_v29  ;;  %v6111_v35 = vsub.f32 %v5815_v39, %v6071_v60 }
 0xf3c   :  { %5986 = vmatpush.xpose.msrb.mxu2 %v5890_v49  ;;  %5893 = vmatpush.xpose.msra.mxu3 %v5892_v19 }
 0xf3d   :  { %v5790_v25 = vadd.f32 %v5789_v45, %v5753_v7  ;;  %v6112_v32 = vand.u32 4294901760, %v6111_v35 }
 0xf3f   :  { %v5819_v38 = vadd.f32 %v5818_v46, %v5790_v25  ;;  %5864 = vmatmul.f32.gmra.mxu2 %v5863_v0  ;;  %5895 = vmatmul.f32.vlgmr.msra.gmra.mxu3 %v9275_v26  ;;  %v6113_v30 = vsub.f32 %v6111_v35, %v6112_v32 }
 0xf40   :  { %6011 = vmatpush.xpose.msrb.mxu3 %v5847_v62  ;;  %5961 = vmatmul.f32.gmra.mxu1 %v5861_v50 }
 0xf41   :  { %5930 = vmatmul.f32.gmra.mxu0 %v5860_v15  ;;  %v6069_v63 = vand.u32 4294901760, %v5819_v38 }
 0xf43   :  { %6070 = vmatpush.msrb.mxu0 %v6069_v63  ;;  %v6105_v10 = vsub.f32 %v5819_v38, %v6069_v63 }
 0xf44   :  { %6013 = vmatpush.xpose.msrb.mxu3 %v5849_v61  ;;  %v6114_v61 = vand.u32 4294901760, %v6113_v30 }
 0xf45   :  { %6072 = vmatpush.msrb.mxu0 %v6071_v60  ;;  %6141 = vmatpush.msra.mxu2 %v6105_v10  ;;  %v6106_v37 = vand.u32 4294901760, %v6105_v10 }
 0xf47   :  { %5899 = vmatmul.f32.gmra.mxu3 %v9283_v52  ;;  %5988 = vmatmul.f32.vlgmr.msrb.gmra.mxu2 %v9275_v26  ;;  %v6107_v47 = vsub.f32 %v6105_v10, %v6106_v37 }
 0xf48   :  { %6171 = vmatpush.msra.mxu3 %v6069_v63  ;;  %6144 = vmatpush.msra.mxu2 %v6111_v35 }
 0xf49   :  { %6204 = vmatpush.msra.mxu0 %v6106_v37  ;;  %v6108_v24 = vand.u32 4294901760, %v6107_v47 }
 0xf4a   :  { %6173 = vmatpush.msra.mxu3 %v6071_v60 }
 0xf4b   :  { %6208 = vmatpush.msra.mxu0 %v6112_v32  ;;  %6109 = vmatpush.msrb.mxu1 %v6108_v24 }
 0xf4d   :  { %6115 = vmatpush.msrb.mxu1 %v6114_v61 }
 0xf4f   :  { %6233 = vmatpush.msra.mxu1 %v6069_v63  ;;  %5992 = vmatmul.f32.gmra.mxu2 %v9283_v52 }
 0xf50   :  { %6015 = vmatmul.f32.vlgmr.msrb.gmra.mxu3 %v9275_v26 }
 0xf51   :  { %6235 = vmatpush.msra.mxu1 %v6071_v60 }
 0xf58   :  { %6019 = vmatmul.f32.gmra.mxu3 %v9283_v52 }
 0xfb4   :  { %v5956_v58 = vpop.f32.mrf.mxu1 }
 0xfb6   :  { %v5926_v17 = vpop.f32.mrf.mxu0 }
 0xfba   :  { %v5857_v12 = vpop.f32.mrf.mxu2 }
 0xfbd   :  { %v5962_v41 = vpop.f32.mrf.mxu1 }
 0xfbe   :  { %v5931_v49 = vpop.f32.mrf.mxu0 }
 0xfc2   :  { %v5865_v62 = vpop.f32.mrf.mxu2  ;;  %v5896_v36 = vpop.f32.mrf.mxu3 }
 0xfc3   :  { %v5897_v33 = vadd.f32 %v5896_v36, %v5857_v12 }
 0xfc5   :  { %v5927_v42 = vadd.f32 %v5926_v17, %v5897_v33 }
 0xfc7   :  { %v5957_v5 = vadd.f32 %v5956_v58, %v5927_v42  ;;  %v7391_v58 = vld [vmem:[%s9541_s15 + $0x38] sm:$0xff] }
 0xfca   :  { %v5900_v23 = vpop.f32.mrf.mxu3  ;;  %v5989_v51 = vpop.f32.mrf.mxu2 }
 0xfcb   :  { %v5901_v15 = vadd.f32 %v5900_v23, %v5865_v62  ;;  %v5990_v54 = vadd.f32 %v5989_v51, %v5957_v5  ;;  %v6268_v51 = vand.u32 4294901760, %v7391_v58 }
 0xfcd   :  { %v5932_v3 = vadd.f32 %v5931_v49, %v5901_v15  ;;  %v7390_v15 = vld [vmem:[%s9541_s15 + $0x30] sm:$0xff]  ;;  %v6304_v5 = vsub.f32 %v7391_v58, %v6268_v51  ;;  %6269 = vmatpush.msrb.mxu2 %v6268_v51 }
 0xfcf   :  { %v5963_v52 = vadd.f32 %v5962_v41, %v5932_v3  ;;  %v6305_v49 = vand.u32 4294901760, %v6304_v5 }
 0xfd1   :  { %v6306_v3 = vsub.f32 %v6304_v5, %v6305_v49 }
 0xfd2   :  { %v5993_v2 = vpop.f32.mrf.mxu2 }
 0xfd3   :  { %v6016_v16 = vpop.f32.mrf.mxu3  ;;  %v5994_v50 = vadd.f32 %v5993_v2, %v5963_v52 }
 0xfd4   :  { %v6017_v1 = vadd.f32 %v6016_v16, %v5990_v54  ;;  %v6270_v54 = vand.u32 4294901760, %v7390_v15 }
 0xfd6   :  { %v6023_v26 = vmul.f32 0.25, %v6017_v1  ;;  %v6310_v16 = vsub.f32 %v7390_v15, %v6270_v54  ;;  %6271 = vmatpush.msrb.mxu2 %v6270_v54 }
 0xfd8   :  { %v6025_v40 = vadd.f32 %v9002_v4, %v6023_v26  ;;  %v6311_v1 = vand.u32 4294901760, %v6310_v16  ;;  %v6307_v26 = vand.u32 4294901760, %v6306_v3 }
 0xfda   :  { %v6027_v31 = vsel %vm1451_vm7, %v6025_v40, -inf  ;;  %v6312_v41 = vsub.f32 %v6310_v16, %v6311_v1  ;;  %6308 = vmatpush.msrb.mxu3 %v6307_v26 }
 0xfdb   :  { %v6020_v55 = vpop.f32.mrf.mxu3  ;;  %6028 = vmax.xlane.f32.xlu1 %v6027_v31 }
 0xfdc   :  { %v6021_v22 = vadd.f32 %v6020_v55, %v5994_v50  ;;  %v6313_v2 = vand.u32 4294901760, %v6312_v41  ;;  %v7373_v55 = vld [vmem:[%s9541_s15 + $0x20] sm:$0xff] }
 0xfde   :  { %v6024_v39 = vmul.f32 0.25, %v6021_v22  ;;  %6314 = vmatpush.msrb.mxu3 %v6313_v2 }
 0xfe0   :  { %v6026_v44 = vadd.f32 %v9009_v14, %v6024_v39  ;;  %v6466_v39 = vand.u32 4294901760, %v7373_v55 }
 0xfe2   :  { %v6030_v29 = vsel %vm1451_vm7, %v6026_v44, -inf }
 0xfe3   :  { %6031 = vmax.xlane.f32.xlu2 %v6030_v29 }
0x104e   :  { %v6029_v57 = vpop.xlane.xlu1 %6028 }
0x104f   :  { %v6033_v8 = vsub.f32 %v6025_v40, %v6029_v57  ;;  %v7374_v40 = vld [vmem:[%s9541_s15 + $0x28] sm:$0xff]  ;;  %v9318_v57 = vsub.f32 %v7373_v55, %v6466_v39 }
0x1050   :  { %v6464_v31 = vand.u32 4294901760, %v7374_v40 }
0x1051   :  { %v6035_v19 = vmul.f32 1.442695, %v6033_v8 }
0x1052   :  { %v9313_v22 = vsub.f32 %v7374_v40, %v6464_v31 }
0x1053   :  { %7490 = vpow2.f32 %v6035_v19 }
0x1054   :  { %v6501_v29 = vand.u32 4294901760, %v9313_v22 }
0x1056   :  { %v6032_v7 = vpop.xlane.xlu2 %6031  ;;  %v6502_v19 = vsub.f32 %v9313_v22, %v6501_v29 }
0x1057   :  { %v6034_v60 = vsub.f32 %v6026_v44, %v6032_v7  ;;  %v5014_v44 = vadd.f32 %v9248_v6, %v9254_v27  ;;  %v6507_v7 = vand.u32 4294901760, %v9318_v57  ;;  %v5018_v27 = vadd.f32 %v9256_v13, %v9258_v21 }
0x1059   :  { %v7491_v45 = vpop.eup %7490  ;;  %v6037_v4 = vmul.f32 1.442695, %v6034_v60  ;;  %v5044_v60 = vadd.f32 %v9244_v11, %v5014_v44  ;;  %v5049_v11 = vadd.f32 %v9250_v28, %v5018_v27 }
0x105a   :  { %v6039_v25 = vsel %vm1451_vm7, %v7491_v45, 0.0 }
0x105b   :  { %7492 = vpow2.f32 %v6037_v4  ;;  %6040 = vadd.xlane.f32.xlu0 %v6039_v25 }
0x1061   :  { %v7493_v0 = vpop.eup %7492 }
0x1062   :  { %v6042_v46 = vsel %vm1451_vm7, %v7493_v0, 0.0 }
0x1063   :  { %6043 = vadd.xlane.f32.xlu1 %v6042_v46  ;;  %v6508_v46 = vsub.f32 %v9318_v57, %v6507_v7 }
0x1065   :  { %v6509_v6 = vand.u32 4294901760, %v6508_v46 }
0x10ce   :  { %v6041_v14 = vpop.xlane.xlu0 %6040 }
0x10cf   :  { %7494 = vrcp.f32 %v6041_v14  ;;  %v5074_v14 = vadd.f32 %v9246_v59, %v5044_v60 }
0x10d5   :  { %v7495_v38 = vpop.eup %7494 }
0x10d6   :  { %v6047_v35 = vmul.f32 %v7495_v38, %v7491_v45  ;;  %v6044_v63 = vpop.xlane.xlu1 %6043 }
0x10d7   :  { %7496 = vrcp.f32 %v6044_v63  ;;  %v5107_v63 = vadd.f32 %v9262_v34, %v5074_v14 }
0x10d8   :  { %v6050_v10 = vsel %vm1451_vm7, %v6047_v35, 0 }
0x10d9   :  { %v6073_v32 = vand.u32 4294901760, %v6050_v10 }
0x10db   :  { %v6074_v37 = vsub.f32 %v6050_v10, %v6073_v32  ;;  %6117 = vmatmul.f32.vlgmr.msrb.gmra.mxu1 %v6073_v32 }
0x10dc   :  { %6370 = vmatpush.msrb.mxu1 %v6268_v51 }
0x10dd   :  { %v7497_v47 = vpop.eup %7496  ;;  %6147 = vmatmul.f32.vlgmr.msra.gmra.mxu2 %v6074_v37  ;;  %v6075_v30 = vand.u32 4294901760, %v6074_v37 }
0x10de   :  { %v6048_v24 = vmul.f32 %v7497_v47, %v7493_v0  ;;  %6372 = vmatpush.msrb.mxu1 %v6270_v54  ;;  %6403 = vmatpush.msra.mxu2 %v6305_v49  ;;  %v6503_v0 = vand.u32 4294901760, %v6502_v19 }
0x10df   :  { %6177 = vmatmul.f32.vlgmr.msra.gmra.mxu3 %v6075_v30  ;;  %v6076_v61 = vsub.f32 %v6074_v37, %v6075_v30  ;;  %v5134_v30 = vadd.f32 %v9260_v9, %v5107_v63 }
0x10e0   :  { %v6053_v12 = vsel %vm1451_vm7, %v6048_v24, 0  ;;  %6407 = vmatpush.msra.mxu2 %v6311_v1  ;;  %6432 = vmatpush.msra.mxu3 %v6268_v51 }
0x10e1   :  { %v6077_v62 = vand.u32 4294901760, %v6076_v61  ;;  %v6081_v36 = vand.u32 4294901760, %v6053_v12  ;;  %v6445_v59 = vsel %vm1451_vm7, %v5134_v30, 0 }
0x10e2   :  { %6434 = vmatpush.msra.mxu3 %v6270_v54 }
0x10e3   :  { %6078 = vmatmul.f32.vlgmr.msrb.gmra.mxu0 %v6077_v62  ;;  %6121 = vmatmul.f32.gmra.mxu1 %v6081_v36  ;;  %v6082_v33 = vsub.f32 %v6053_v12, %v6081_v36  ;;  %v5080_v12 = vadd.f32 %v9252_v20, %v5049_v11 }
0x10e4   :  { %6340 = vmatpush.msrb.mxu0 %v6304_v5 }
0x10e5   :  { %6152 = vmatmul.f32.gmra.mxu2 %v6082_v33  ;;  %v6083_v17 = vand.u32 4294901760, %v6082_v33  ;;  %v5111_v62 = vadd.f32 %v9266_v18, %v5080_v12 }
0x10e6   :  { %6343 = vmatpush.msrb.mxu0 %v6310_v16 }
0x10e7   :  { %6183 = vmatmul.f32.gmra.mxu3 %v6083_v17  ;;  %v6084_v23 = vsub.f32 %v6082_v33, %v6083_v17  ;;  %v6468_v17 = vand.u32 4294901760, %v6445_v59  ;;  %v5138_v9 = vadd.f32 %v9264_v56, %v5111_v62 }
0x10e9   :  { %v6085_v42 = vand.u32 4294901760, %v6084_v23  ;;  %v6469_v18 = vsub.f32 %v6445_v59, %v6468_v17  ;;  %v6448_v54 = vsel %vm1451_vm7, %v5138_v9, 0 }
0x10ea   :  { %v6476_v1 = vand.u32 4294901760, %v6448_v54 }
0x10eb   :  { %6086 = vmatmul.f32.gmra.mxu0 %v6085_v42  ;;  %6237 = vmatmul.f32.vlgmr.msra.gmra.mxu1 %v6073_v32  ;;  %v6470_v56 = vand.u32 4294901760, %v6469_v18 }
0x10ec   :  { %6504 = vmatpush.msra.mxu1 %v6503_v0 }
0x10ed   :  { %v6471_v2 = vsub.f32 %v6469_v18, %v6470_v56 }
0x10ee   :  { %6510 = vmatpush.msra.mxu1 %v6509_v6 }
0x10f3   :  { %6210 = vmatmul.f32.vlgmr.msra.gmra.mxu0 %v6073_v32  ;;  %6241 = vmatmul.f32.gmra.mxu1 %v6081_v36 }
0x10f4   :  { %6465 = vmatpush.msra.mxu0 %v6464_v31 }
0x10f6   :  { %6467 = vmatpush.msra.mxu0 %v6466_v39 }
0x10fb   :  { %6214 = vmatmul.f32.gmra.mxu0 %v6081_v36 }
0x1158   :  { %v6118_v52 = vpop.f32.mrf.mxu1 }
0x1160   :  { %v6079_v50 = vpop.f32.mrf.mxu0  ;;  %v6122_v8 = vpop.f32.mrf.mxu1 }
0x1161   :  { %v6119_v45 = vadd.f32 %v6118_v52, %v6079_v50  ;;  %v6148_v4 = vpop.f32.mrf.mxu2  ;;  %v6477_v52 = vsub.f32 %v6448_v54, %v6476_v1 }
0x1162   :  { %v6178_v35 = vpop.f32.mrf.mxu3 }
0x1163   :  { %v6149_v38 = vadd.f32 %v6148_v4, %v6119_v45  ;;  %v6478_v55 = vand.u32 4294901760, %v6477_v52 }
0x1165   :  { %v6179_v10 = vadd.f32 %v6178_v35, %v6149_v38 }
0x1168   :  { %v6087_v25 = vpop.f32.mrf.mxu0  ;;  %v6238_v37 = vpop.f32.mrf.mxu1 }
0x1169   :  { %v6123_v32 = vadd.f32 %v6122_v8, %v6087_v25  ;;  %v6153_v61 = vpop.f32.mrf.mxu2 }
0x116a   :  { %v6184_v36 = vpop.f32.mrf.mxu3 }
0x116b   :  { %v6154_v13 = vadd.f32 %v6153_v61, %v6123_v32 }
0x116d   :  { %v6185_v33 = vadd.f32 %v6184_v36, %v6154_v13 }
0x1170   :  { %v6211_v47 = vpop.f32.mrf.mxu0  ;;  %v6242_v51 = vpop.f32.mrf.mxu1 }
0x1171   :  { %v6212_v24 = vadd.f32 %v6211_v47, %v6179_v10 }
0x1173   :  { %v6239_v21 = vadd.f32 %v6238_v37, %v6212_v24 }
0x1175   :  { %v6249_v34 = vsel %vm1451_vm7, %v6239_v21, 0 }
0x1176   :  { %v6272_v28 = vand.u32 4294901760, %v6249_v34 }
0x1178   :  { %v6273_v23 = vsub.f32 %v6249_v34, %v6272_v28  ;;  %v6215_v42 = vpop.f32.mrf.mxu0  ;;  %6316 = vmatmul.f32.vlgmr.msrb.gmra.mxu3 %v6272_v28 }
0x1179   :  { %v6216_v58 = vadd.f32 %v6215_v42, %v6185_v33  ;;  %6566 = vmatpush.msrb.mxu3 %v6464_v31 }
0x117a   :  { %v6274_v20 = vand.u32 4294901760, %v6273_v23  ;;  %6346 = vmatmul.f32.vlgmr.msrb.gmra.mxu0 %v6273_v23 }
0x117b   :  { %v6243_v15 = vadd.f32 %v6242_v51, %v6216_v58  ;;  %6568 = vmatpush.msrb.mxu3 %v6466_v39  ;;  %6599 = vmatpush.msrb.mxu0 %v6501_v29 }
0x117c   :  { %v6275_v5 = vsub.f32 %v6273_v23, %v6274_v20  ;;  %6376 = vmatmul.f32.vlgmr.msrb.gmra.mxu1 %v6274_v20  ;;  %v7441_v23 = vld [vmem:[%s9542_s16 + $0x1] ss:$0 sm:$0xff] }
0x117d   :  { %v6252_v49 = vsel %vm1451_vm7, %v6243_v15, 0  ;;  %6603 = vmatpush.msrb.mxu0 %v6507_v7  ;;  %6628 = vmatpush.msrb.mxu1 %v6464_v31  ;;  %v6472_v31 = vand.u32 4294901760, %v6471_v2 }
0x117e   :  { %v6276_v16 = vand.u32 4294901760, %v6275_v5  ;;  %v6280_v3 = vand.u32 4294901760, %v6252_v49 }
0x117f   :  { %6630 = vmatpush.msrb.mxu1 %v6466_v39  ;;  %v6479_v39 = vsub.f32 %v6477_v52, %v6478_v55 }
0x1180   :  { %6277 = vmatmul.f32.vlgmr.msrb.gmra.mxu2 %v6276_v16  ;;  %6320 = vmatmul.f32.gmra.mxu3 %v6280_v3  ;;  %v6281_v26 = vsub.f32 %v6252_v49, %v6280_v3 }
0x1181   :  { %6536 = vmatpush.msrb.mxu2 %v9313_v22  ;;  %v6480_v44 = vand.u32 4294901760, %v6479_v39 }
0x1182   :  { %6351 = vmatmul.f32.gmra.mxu0 %v6281_v26  ;;  %v6282_v41 = vand.u32 4294901760, %v6281_v26 }
0x1183   :  { %6539 = vmatpush.msrb.mxu2 %v9318_v57 }
0x1184   :  { %6382 = vmatmul.f32.gmra.mxu1 %v6282_v41  ;;  %v6283_v40 = vsub.f32 %v6281_v26, %v6282_v41 }
0x1186   :  { %v6284_v50 = vand.u32 4294901760, %v6283_v40 }
0x1188   :  { %6285 = vmatmul.f32.gmra.mxu2 %v6284_v50  ;;  %6436 = vmatmul.f32.vlgmr.msra.gmra.mxu3 %v6272_v28 }
0x118a   :  { %6473 = vmatmul.f32.vlgmr.msra.gmra.mxu0 %v6472_v31 }
0x118c   :  { %6512 = vmatmul.f32.vlgmr.msra.gmra.mxu1 %v6468_v17 }
0x1190   :  { %6409 = vmatmul.f32.vlgmr.msra.gmra.mxu2 %v6272_v28  ;;  %6440 = vmatmul.f32.gmra.mxu3 %v6280_v3 }
0x1192   :  { %6481 = vmatmul.f32.gmra.mxu0 %v6480_v44 }
0x1194   :  { %6516 = vmatmul.f32.gmra.mxu1 %v6476_v1 }
0x1198   :  { %6413 = vmatmul.f32.gmra.mxu2 %v6280_v3  ;;  %6572 = vmatmul.f32.vlgmr.msrb.gmra.mxu3 %v6470_v56 }
0x119a   :  { %6605 = vmatmul.f32.vlgmr.msrb.gmra.mxu0 %v6468_v17 }
0x119c   :  { %6632 = vmatmul.f32.vlgmr.msrb.gmra.mxu1 %v6468_v17 }
0x11a0   :  { %6542 = vmatmul.f32.vlgmr.msrb.gmra.mxu2 %v6469_v18  ;;  %6578 = vmatmul.f32.gmra.mxu3 %v6478_v55 }
0x11a2   :  { %6609 = vmatmul.f32.gmra.mxu0 %v6476_v1 }
0x11a4   :  { %6636 = vmatmul.f32.gmra.mxu1 %v6476_v1 }
0x11a8   :  { %6547 = vmatmul.f32.gmra.mxu2 %v6477_v52 }
0x11f7   :  { %v6347_v29 = vpop.f32.mrf.mxu0 }
0x11f9   :  { %v6377_v57 = vpop.f32.mrf.mxu1 }
0x11fb   :  { %v6317_v22 = vpop.f32.mrf.mxu3 }
0x11ff   :  { %v6352_v7 = vpop.f32.mrf.mxu0 }
0x1201   :  { %v6383_v60 = vpop.f32.mrf.mxu1 }
0x1203   :  { %v6278_v8 = vpop.f32.mrf.mxu2  ;;  %v6321_v19 = vpop.f32.mrf.mxu3 }
0x1204   :  { %v6318_v4 = vadd.f32 %v6317_v22, %v6278_v8  ;;  %v7398_v22 = vld [vmem:[%s9545_s19 + $0x38] sm:$0xff] }
0x1206   :  { %v6348_v0 = vadd.f32 %v6347_v29, %v6318_v4  ;;  %v6735_v29 = vand.u32 4294901760, %v7398_v22 }
0x1207   :  { %v6474_v46 = vpop.f32.mrf.mxu0 }
0x1208   :  { %v6378_v38 = vadd.f32 %v6377_v57, %v6348_v0  ;;  %v7397_v57 = vld [vmem:[%s9545_s19 + $0x30] sm:$0xff]  ;;  %v6773_v8 = vsub.f32 %v7398_v22, %v6735_v29  ;;  %6853 = vmatpush.msra.mxu1 %v6735_v29  ;;  %6736 = vmatpush.msra.mxu2 %v6735_v29 }
0x1209   :  { %v6513_v6 = vpop.f32.mrf.mxu1 }
0x120a   :  { %6819 = vmatpush.msra.mxu0 %v6773_v8 }
0x120b   :  { %v6286_v45 = vpop.f32.mrf.mxu2  ;;  %v6437_v25 = vpop.f32.mrf.mxu3 }
0x120c   :  { %v6322_v14 = vadd.f32 %v6321_v19, %v6286_v45  ;;  %v6737_v19 = vand.u32 4294901760, %v7397_v57 }
0x120e   :  { %v6353_v63 = vadd.f32 %v6352_v7, %v6322_v14  ;;  %v7396_v7 = vld [vmem:[%s9545_s19 + $0x28] sm:$0xff]  ;;  %v6779_v45 = vsub.f32 %v7397_v57, %v6737_v19  ;;  %6855 = vmatpush.msra.mxu1 %v6737_v19  ;;  %6738 = vmatpush.msra.mxu2 %v6737_v19 }
0x120f   :  { %v6482_v32 = vpop.f32.mrf.mxu0  ;;  %v6739_v4 = vand.u32 4294901760, %v7396_v7 }
0x1210   :  { %v6384_v47 = vadd.f32 %v6383_v60, %v6353_v63  ;;  %v6774_v60 = vand.u32 4294901760, %v6773_v8  ;;  %6822 = vmatpush.msra.mxu0 %v6779_v45 }
0x1211   :  { %v6517_v30 = vpop.f32.mrf.mxu1  ;;  %6857 = vmatpush.msra.mxu1 %v6739_v4  ;;  %6740 = vmatpush.msra.mxu2 %v6739_v4 }
0x1212   :  { %v6775_v0 = vsub.f32 %v6773_v8, %v6774_v60  ;;  %v7406_v8 = vld [vmem:[%s9547_s21 + $0x70] sm:$0xff] }
0x1213   :  { %v6410_v27 = vpop.f32.mrf.mxu2  ;;  %v6441_v11 = vpop.f32.mrf.mxu3 }
0x1214   :  { %v6411_v35 = vadd.f32 %v6410_v27, %v6378_v38  ;;  %v6776_v14 = vand.u32 4294901760, %v6775_v0 }
0x1216   :  { %v6438_v10 = vadd.f32 %v6437_v25, %v6411_v35  ;;  %v7395_v25 = vld [vmem:[%s9545_s19 + $0x20] sm:$0xff]  ;;  %6777 = vmatpush.msra.mxu3 %v6776_v14 }
0x1217   :  { %v6606_v34 = vpop.f32.mrf.mxu0  ;;  %v6741_v27 = vand.u32 4294901760, %v7395_v25 }
0x1218   :  { %v6475_v61 = vadd.f32 %v6474_v46, %v6438_v10  ;;  %v6780_v46 = vand.u32 4294901760, %v6779_v45 }
0x1219   :  { %v6633_v33 = vpop.f32.mrf.mxu1  ;;  %v6791_v63 = vsub.f32 %v7395_v25, %v6741_v27  ;;  %6859 = vmatpush.msra.mxu1 %v6741_v27  ;;  %6742 = vmatpush.msra.mxu2 %v6741_v27 }
0x121a   :  { %v6514_v13 = vadd.f32 %v6513_v6, %v6475_v61  ;;  %v6785_v6 = vsub.f32 %v7396_v7, %v6739_v4  ;;  %v6781_v38 = vsub.f32 %v6779_v45, %v6780_v46  ;;  %v9399_v7 = vand.u32 4294901760, %v7406_v8 }
0x121b   :  { %v6414_v37 = vpop.f32.mrf.mxu2  ;;  %v6573_v21 = vpop.f32.mrf.mxu3  ;;  %6888 = vmatpush.msrb.mxu2 %v6774_v60  ;;  %v7405_v60 = vld [vmem:[%s9547_s21 + $0x68] sm:$0xff] }
0x121c   :  { %v6415_v24 = vadd.f32 %v6414_v37, %v6384_v47  ;;  %v6786_v35 = vand.u32 4294901760, %v6785_v6  ;;  %6825 = vmatpush.msra.mxu0 %v6785_v6  ;;  %v9411_v25 = vand.u32 4294901760, %v7405_v60 }
0x121d   :  { %6892 = vmatpush.msrb.mxu2 %v6780_v46  ;;  %v7404_v46 = vld [vmem:[%s9547_s21 + $0x60] sm:$0xff] }
0x121e   :  { %v6442_v12 = vadd.f32 %v6441_v11, %v6415_v24  ;;  %v6782_v11 = vand.u32 4294901760, %v6781_v38  ;;  %v6787_v10 = vsub.f32 %v6785_v6, %v6786_v35  ;;  %6828 = vmatpush.msra.mxu0 %v6791_v63  ;;  %v9423_v14 = vsub.f32 %v7405_v60, %v9411_v25 }
0x121f   :  { %v6610_v54 = vpop.f32.mrf.mxu0  ;;  %6896 = vmatpush.msrb.mxu2 %v6786_v35  ;;  %v9426_v38 = vand.u32 4294901760, %v7404_v46  ;;  %v7403_v35 = vld [vmem:[%s9547_s21 + $0x58] sm:$0xff] }
0x1220   :  { %v6483_v28 = vadd.f32 %v6482_v32, %v6442_v12  ;;  %v6792_v32 = vand.u32 4294901760, %v6791_v63  ;;  %6783 = vmatpush.msra.mxu3 %v6782_v11  ;;  %v6788_v37 = vand.u32 4294901760, %v6787_v10 }
0x1221   :  { %v6637_v3 = vpop.f32.mrf.mxu1 }
0x1222   :  { %v6518_v42 = vadd.f32 %v6517_v30, %v6483_v28  ;;  %v6793_v47 = vsub.f32 %v6791_v63, %v6792_v32  ;;  %6789 = vmatpush.msra.mxu3 %v6788_v37  ;;  %6900 = vmatpush.msrb.mxu2 %v6792_v32  ;;  %v7444_v63 = vld [vmem:[%s9582_s29 + $0x1] ss:$0 sm:$0xff]  ;;  %v7040_v32 = vand.u32 4294901760, %v9423_v14  ;;  %v9441_v37 = vsub.f32 %v7404_v46, %v9426_v38 }
0x1223   :  { %v6543_v59 = vpop.f32.mrf.mxu2  ;;  %v6579_v15 = vpop.f32.mrf.mxu3 }
0x1224   :  { %v6544_v62 = vadd.f32 %v6543_v59, %v6514_v13  ;;  %v6794_v30 = vand.u32 4294901760, %v6793_v47 }
0x1226   :  { %v6574_v36 = vadd.f32 %v6573_v21, %v6544_v62  ;;  %6795 = vmatpush.msra.mxu3 %v6794_v30  ;;  %v9445_v30 = vand.u32 4294901760, %v7403_v35 }
0x1228   :  { %v6607_v17 = vadd.f32 %v6606_v34, %v6574_v36  ;;  %6923 = vmatpush.msrb.mxu3 %v6735_v29  ;;  %v7407_v29 = vld [vmem:[%s9547_s21 + $0x78] sm:$0xff] }
0x1229   :  { %v9391_v57 = vand.u32 4294901760, %v7407_v29 }
0x122a   :  { %v6634_v9 = vadd.f32 %v6633_v33, %v6607_v17  ;;  %6925 = vmatpush.msrb.mxu3 %v6737_v19 }
0x122b   :  { %v6548_v58 = vpop.f32.mrf.mxu2  ;;  %v9397_v19 = vsub.f32 %v7407_v29, %v9391_v57  ;;  %6986 = vmatpush.msrb.mxu0 %v9391_v57 }
0x122c   :  { %v6549_v20 = vadd.f32 %v6548_v58, %v6518_v42  ;;  %v6645_v51 = vadd.f32 %v7441_v23, %v6634_v9  ;;  %6927 = vmatpush.msrb.mxu3 %v6739_v4  ;;  %v7442_v9 = vld [vmem:[%s9543_s17 + $0x1] ss:$0 sm:$0xff]  ;;  %v9408_v4 = vsub.f32 %v7406_v8, %v9399_v7  ;;  %s7543_s17 = smov 8  }
0x122d   :  { %v7028_v45 = vand.u32 4294901760, %v9397_v19  ;;  %6988 = vmatpush.msrb.mxu0 %v9399_v7 }
0x122e   :  { %v6580_v18 = vadd.f32 %v6579_v15, %v6549_v20  ;;  %v6647_v5 = vadd.f32 %v6645_v51, %v8832_v53  ;;  %6929 = vmatpush.msrb.mxu3 %v6741_v27  ;;  %v7443_v51 = vld [vmem:[%s9544_s18 + $0x1] ss:$0 sm:$0xff]  ;;  %v7034_v27 = vand.u32 4294901760, %v9408_v4 }
0x122f   :  { %v7029_v6 = vsub.f32 %v9397_v19, %v7028_v45  ;;  %6990 = vmatpush.msrb.mxu0 %v9411_v25 }
0x1230   :  { %v6611_v49 = vadd.f32 %v6610_v54, %v6580_v18  ;;  %v6653_v16 = vsel %vm462_vm15, %v6647_v5, 0.0  ;;  %v7035_v10 = vsub.f32 %v9408_v4, %v7034_v27 }
0x1231   :  { %6654 = vadd.xlane.f32.xlu2 %v6653_v16  ;;  %v7030_v11 = vand.u32 4294901760, %v7029_v6  ;;  %6992 = vmatpush.msrb.mxu0 %v9426_v38 }
0x1232   :  { %v6638_v56 = vadd.f32 %v6637_v3, %v6611_v49 }
0x1233   :  { %7031 = vmatpush.msrb.mxu1 %v7030_v11  ;;  %6994 = vmatpush.msrb.mxu0 %v9445_v30 }
0x1234   :  { %v6646_v1 = vadd.f32 %v7441_v23, %v6638_v56 }
0x1236   :  { %v6648_v26 = vadd.f32 %v6646_v1, %v8861_v48 }
0x1238   :  { %v6656_v41 = vsel %vm462_vm15, %v6648_v26, 0.0 }
0x1239   :  { %6657 = vadd.xlane.f32.xlu0 %v6656_v41 }
0x12a4   :  { %v6655_v2 = vpop.xlane.xlu2 %6654 }
0x12a5   :  { %v6659_v52 = vmul.f32 %v6655_v2, %v7977_v43 }
0x12a7   :  { %v9347_v40 = vsub.f32 %v6647_v5, %v6659_v52 }
0x12a9   :  { %v6663_v53 = vmul.f32 %v9347_v40, %v9347_v40 }
0x12ab   :  { %v6665_v50 = vsel %vm462_vm15, %v6663_v53, 0.0 }
0x12ac   :  { %6666 = vadd.xlane.f32.xlu1 %v6665_v50  ;;  %v6658_v31 = vpop.xlane.xlu0 %6657 }
0x12ad   :  { %v6660_v55 = vmul.f32 %v6658_v31, %v7977_v43 }
0x12af   :  { %v9353_v39 = vsub.f32 %v6648_v26, %v6660_v55 }
0x12b1   :  { %v6664_v48 = vmul.f32 %v9353_v39, %v9353_v39 }
0x12b3   :  { %v6668_v44 = vsel %vm462_vm15, %v6664_v48, 0.0 }
0x12b4   :  { %6669 = vadd.xlane.f32.xlu2 %v6668_v44 }
0x131f   :  { %v6667_v24 = vpop.xlane.xlu1 %6666 }
0x1320   :  { %v6671_v61 = vmul.f32 %v6667_v24, %v7977_v43  ;;  %v7402_v24 = vld [vmem:[%s9547_s21 + $0x50] sm:$0xff] }
0x1322   :  { %v6673_v12 = vadd.f32 1e-12, %v6671_v61  ;;  %v7036_v61 = vand.u32 4294901760, %v7035_v10 }
0x1324   :  { %7498 = vrsqrt.f32 %v6673_v12  ;;  %vm6681_vm7 = vweird.f32 %v6673_v12  ;;  %7037 = vmatpush.msrb.mxu1 %v7036_v61 }
0x1327   :  { %v6670_v13 = vpop.xlane.xlu2 %6669 }
0x1328   :  { %v6672_v21 = vmul.f32 %v6670_v13, %v7977_v43  ;;  %v7046_v13 = vand.u32 4294901760, %v9441_v37 }
0x132a   :  { %v7499_v59 = vpop.eup %7498  ;;  %v6674_v62 = vadd.f32 1e-12, %v6672_v21  ;;  %v9457_v21 = vsub.f32 %v7403_v35, %v9445_v30 }
0x132b   :  { %v6676_v34 = vmul.f32 %v7499_v59, %v6673_v12  ;;  %vm6682_vm6 = vweird.f32 %v7499_v59  ;;  %v7041_v12 = vsub.f32 %v9423_v14, %v7040_v32 }
0x132c   :  { %7500 = vrsqrt.f32 %v6674_v62  ;;  %vm6683_vm8 = vmor %vm6681_vm7, %vm6682_vm6  ;;  %vm6691_vm10 = vweird.f32 %v6674_v62 }
0x132d   :  { %v6677_v36 = vmul.f32 %v7499_v59, %v6676_v34 }
0x132f   :  { %v6678_v28 = vmul.f32 0.5, %v6677_v36  ;;  %v7042_v36 = vand.u32 4294901760, %v7041_v12 }
0x1331   :  { %v6679_v33 = vsub.f32 1.5, %v6678_v28  ;;  %v7047_v28 = vsub.f32 %v9441_v37, %v7046_v13  ;;  %7043 = vmatpush.msrb.mxu1 %v7042_v36 }
0x1332   :  { %v7501_v17 = vpop.eup %7500 }
0x1333   :  { %v6680_v23 = vmul.f32 %v7499_v59, %v6679_v33  ;;  %v6686_v42 = vmul.f32 %v7501_v17, %v6674_v62  ;;  %vm6692_vm9 = vweird.f32 %v7501_v17  ;;  %v7401_v62 = vld [vmem:[%s9547_s21 + $0x48] sm:$0xff] }
0x1334   :  { %vm6693_vm11 = vmor %vm6691_vm10, %vm6692_vm9  ;;  %v9467_v33 = vand.u32 4294901760, %v7401_v62 }
0x1335   :  { %v6684_v58 = vsel %vm6683_vm8, %v7499_v59, %v6680_v23  ;;  %v6687_v20 = vmul.f32 %v7501_v17, %v6686_v42  ;;  %v9459_v59 = vand.u32 4294901760, %v7402_v24  ;;  %v7400_v42 = vld [vmem:[%s9547_s21 + $0x40] sm:$0xff] }
0x1336   :  { %v6695_v15 = vmul.f32 %v6684_v58, %v9347_v40  ;;  %v7063_v58 = vsub.f32 %v7401_v62, %v9467_v33 }
0x1337   :  { %v6688_v18 = vmul.f32 0.5, %v6687_v20  ;;  %v7057_v23 = vsub.f32 %v7402_v24, %v9459_v59  ;;  %v9477_v20 = vand.u32 4294901760, %v7400_v42  ;;  %6996 = vmatpush.msrb.mxu0 %v9459_v59 }
0x1338   :  { %v6700_v5 = vmul.f32 %v7442_v9, %v6695_v15 }
0x1339   :  { %v6689_v54 = vsub.f32 1.5, %v6688_v18  ;;  %v7058_v18 = vand.u32 4294901760, %v7057_v23  ;;  %6998 = vmatpush.msrb.mxu0 %v9467_v33 }
0x133a   :  { %v9379_v49 = vadd.f32 %v7443_v51, %v6700_v5 }
0x133b   :  { %v6690_v16 = vmul.f32 %v7501_v17, %v6689_v54  ;;  %v7064_v54 = vand.u32 4294901760, %v7063_v58  ;;  %7000 = vmatpush.msrb.mxu0 %v9477_v20 }
0x133c   :  { %v6718_v3 = vsel %vm462_vm15, %v9379_v49, 0 }
0x133d   :  { %v6694_v56 = vsel %vm6693_vm11, %v7501_v17, %v6690_v16  ;;  %v6743_v1 = vand.u32 4294901760, %v6718_v3  ;;  %v7052_v17 = vand.u32 4294901760, %v9457_v21  ;;  %v7069_v16 = vsub.f32 %v7400_v42, %v9477_v20 }
0x133e   :  { %v6696_v26 = vmul.f32 %v6694_v56, %v9353_v39 }
0x133f   :  { %6797 = vmatmul.f32.vlgmr.msra.gmra.mxu3 %v6743_v1  ;;  %v6744_v41 = vsub.f32 %v6718_v3, %v6743_v1  ;;  %v7053_v15 = vsub.f32 %v9457_v21, %v7052_v17 }
0x1340   :  { %v6701_v2 = vmul.f32 %v7442_v9, %v6696_v26  ;;  %7135 = vmatpush.msra.mxu3 %v9391_v57  ;;  %v7048_v9 = vand.u32 4294901760, %v7047_v28  ;;  %v7059_v26 = vsub.f32 %v7057_v23, %v7058_v18 }
0x1341   :  { %6831 = vmatmul.f32.vlgmr.msra.gmra.mxu0 %v6744_v41  ;;  %v6745_v52 = vand.u32 4294901760, %v6744_v41 }
0x1342   :  { %v9384_v40 = vadd.f32 %v7443_v51, %v6701_v2  ;;  %7137 = vmatpush.msra.mxu3 %v9399_v7  ;;  %7049 = vmatpush.msrb.mxu1 %v7048_v9  ;;  %v7070_v2 = vand.u32 4294901760, %v7069_v16 }
0x1343   :  { %6863 = vmatmul.f32.vlgmr.msra.gmra.mxu1 %v6745_v52  ;;  %v6746_v53 = vsub.f32 %v6744_v41, %v6745_v52  ;;  %v7065_v41 = vsub.f32 %v7063_v58, %v7064_v54  ;;  %v7060_v52 = vand.u32 4294901760, %v7059_v26  ;;  %7174 = vmatpush.msra.mxu0 %v7028_v45 }
0x1344   :  { %v6721_v50 = vsel %vm462_vm15, %v9384_v40, 0  ;;  %7139 = vmatpush.msra.mxu3 %v9411_v25 }
0x1345   :  { %v6747_v31 = vand.u32 4294901760, %v6746_v53  ;;  %v6751_v55 = vand.u32 4294901760, %v6721_v50  ;;  %7178 = vmatpush.msra.mxu0 %v7034_v27 }
0x1346   :  { %7141 = vmatpush.msra.mxu3 %v9426_v38 }
0x1347   :  { %6748 = vmatmul.f32.vlgmr.msra.gmra.mxu2 %v6747_v31  ;;  %6801 = vmatmul.f32.gmra.mxu3 %v6751_v55  ;;  %v6752_v48 = vsub.f32 %v6721_v50, %v6751_v55  ;;  %v7066_v31 = vand.u32 4294901760, %v7065_v41 }
0x1348   :  { %7093 = vmatpush.msra.mxu2 %v9397_v19  ;;  %7143 = vmatpush.msra.mxu3 %v9445_v30 }
0x1349   :  { %6836 = vmatmul.f32.gmra.mxu0 %v6752_v48  ;;  %v6753_v44 = vand.u32 4294901760, %v6752_v48 }
0x134a   :  { %7096 = vmatpush.msra.mxu2 %v9408_v4  ;;  %7145 = vmatpush.msra.mxu3 %v9459_v59 }
0x134b   :  { %6869 = vmatmul.f32.gmra.mxu1 %v6753_v44  ;;  %v6754_v39 = vsub.f32 %v6752_v48, %v6753_v44  ;;  %7182 = vmatpush.msra.mxu0 %v7040_v32 }
0x134c   :  { %7099 = vmatpush.msra.mxu2 %v9423_v14  ;;  %7147 = vmatpush.msra.mxu3 %v9467_v33 }
0x134d   :  { %v6755_v22 = vand.u32 4294901760, %v6754_v39  ;;  %7186 = vmatpush.msra.mxu0 %v7046_v13 }
0x134e   :  { %7102 = vmatpush.msra.mxu2 %v9441_v37  ;;  %7149 = vmatpush.msra.mxu3 %v9477_v20 }
0x134f   :  { %6756 = vmatmul.f32.gmra.mxu2 %v6755_v22  ;;  %6931 = vmatmul.f32.vlgmr.msrb.gmra.mxu3 %v6743_v1 }
0x1350   :  { %7105 = vmatpush.msra.mxu2 %v9457_v21  ;;  %7190 = vmatpush.msra.mxu0 %v7052_v17 }
0x1352   :  { %7108 = vmatpush.msra.mxu2 %v7057_v23  ;;  %7194 = vmatpush.msra.mxu0 %v7058_v18 }
0x1354   :  { %7111 = vmatpush.msra.mxu2 %v7063_v58  ;;  %7198 = vmatpush.msra.mxu0 %v7064_v54 }
0x1356   :  { %7114 = vmatpush.msra.mxu2 %v7069_v16  ;;  %7202 = vmatpush.msra.mxu0 %v7070_v2 }
0x1357   :  { %6902 = vmatmul.f32.vlgmr.msrb.gmra.mxu2 %v6743_v1  ;;  %6935 = vmatmul.f32.gmra.mxu3 %v6751_v55  ;;  %v7054_v1 = vand.u32 4294901760, %v7053_v15 }
0x1359   :  { %7055 = vmatpush.msrb.mxu1 %v7054_v1 }
0x135b   :  { %7061 = vmatpush.msrb.mxu1 %v7060_v52 }
0x135d   :  { %7067 = vmatpush.msrb.mxu1 %v7066_v31 }
0x135f   :  { %6906 = vmatmul.f32.gmra.mxu2 %v6751_v55  ;;  %v7071_v55 = vsub.f32 %v7069_v16, %v7070_v2 }
0x1361   :  { %v7072_v44 = vand.u32 4294901760, %v7071_v55 }
0x1363   :  { %7073 = vmatpush.msrb.mxu1 %v7072_v44 }
0x1365   :  { %7221 = vmatpush.msra.mxu1 %v9391_v57 }
0x1367   :  { %7223 = vmatpush.msra.mxu1 %v9399_v7 }
0x1369   :  { %7225 = vmatpush.msra.mxu1 %v9411_v25 }
0x136b   :  { %7227 = vmatpush.msra.mxu1 %v9426_v38 }
0x136d   :  { %7229 = vmatpush.msra.mxu1 %v9445_v30 }
0x136f   :  { %7231 = vmatpush.msra.mxu1 %v9459_v59 }
0x1371   :  { %7233 = vmatpush.msra.mxu1 %v9467_v33 }
0x1373   :  { %7235 = vmatpush.msra.mxu1 %v9477_v20 }
0x13be   :  { %v6832_v3 = vpop.f32.mrf.mxu0 }
0x13c0   :  { %v6864_v48 = vpop.f32.mrf.mxu1 }
0x13c2   :  { %v6798_v0 = vpop.f32.mrf.mxu3 }
0x13c6   :  { %v6837_v19 = vpop.f32.mrf.mxu0 }
0x13c8   :  { %v6870_v46 = vpop.f32.mrf.mxu1 }
0x13ca   :  { %v6749_v47 = vpop.f32.mrf.mxu2  ;;  %v6802_v51 = vpop.f32.mrf.mxu3 }
0x13cb   :  { %v6750_v34 = vadd.f32 %v7444_v63, %v6749_v47 }
0x13cd   :  { %v6799_v5 = vadd.f32 %v6798_v0, %v6750_v34 }
0x13cf   :  { %v6833_v50 = vadd.f32 %v6832_v3, %v6799_v5  ;;  %v7445_v5 = vld [vmem:[%s9548_s22 + $0x1] ss:$0 sm:$0xff] }
0x13d1   :  { %v6865_v22 = vadd.f32 %v6864_v48, %v6833_v50 }
0x13d2   :  { %v6757_v56 = vpop.f32.mrf.mxu2  ;;  %v6932_v29 = vpop.f32.mrf.mxu3 }
0x13d3   :  { %v6758_v53 = vadd.f32 %v7444_v63, %v6757_v56 }
0x13d5   :  { %v6803_v39 = vadd.f32 %v6802_v51, %v6758_v53 }
0x13d7   :  { %v6838_v0 = vadd.f32 %v6837_v19, %v6803_v39 }
0x13d9   :  { %v6871_v27 = vadd.f32 %v6870_v46, %v6838_v0 }
0x13da   :  { %v6903_v8 = vpop.f32.mrf.mxu2  ;;  %v6936_v63 = vpop.f32.mrf.mxu3 }
0x13db   :  { %v6904_v60 = vadd.f32 %v6903_v8, %v6865_v22 }
0x13dd   :  { %v6933_v45 = vadd.f32 %v6932_v29, %v6904_v60 }
0x13df   :  { %v6939_v4 = vmul.f32 %v6933_v45, %v6933_v45 }
0x13e1   :  { %v6941_v6 = vmul.f32 %v6939_v4, %v6933_v45 }
0x13e2   :  { %v6907_v14 = vpop.f32.mrf.mxu2 }
0x13e3   :  { %v6943_v35 = vmul.f32 0.044715, %v6941_v6  ;;  %v6908_v57 = vadd.f32 %v6907_v14, %v6871_v27 }
0x13e5   :  { %v6945_v11 = vadd.f32 %v6943_v35, %v6933_v45  ;;  %v6937_v7 = vadd.f32 %v6936_v63, %v6908_v57 }
0x13e7   :  { %v6947_v10 = vmul.f32 0.7978846, %v6945_v11  ;;  %v6940_v25 = vmul.f32 %v6937_v7, %v6937_v7 }
0x13e9   :  { %7502 = vtanh.f32 %v6947_v10  ;;  %v6942_v32 = vmul.f32 %v6940_v25, %v6937_v7 }
0x13eb   :  { %v6944_v38 = vmul.f32 0.044715, %v6942_v32 }
0x13ed   :  { %v6946_v37 = vadd.f32 %v6944_v38, %v6937_v7 }
0x13ef   :  { %v7503_v47 = vpop.eup %7502  ;;  %v6948_v24 = vmul.f32 0.7978846, %v6946_v37 }
0x13f0   :  { %v6951_v61 = vadd.f32 1.0, %v7503_v47 }
0x13f1   :  { %7504 = vtanh.f32 %v6948_v24 }
0x13f2   :  { %v6953_v30 = vmul.f32 0.5, %v6951_v61 }
0x13f4   :  { %v6955_v12 = vmul.f32 %v6953_v30, %v6933_v45 }
0x13f6   :  { %v6972_v13 = vsel %vm3699_vm14, %v6955_v12, 0 }
0x13f7   :  { %v7505_v21 = vpop.eup %7504  ;;  %v7001_v59 = vand.u32 4294901760, %v6972_v13 }
0x13f8   :  { %v6952_v62 = vadd.f32 1.0, %v7505_v21 }
0x13f9   :  { %7075 = vmatmul.f32.vlgmr.msrb.gmra.mxu1 %v7001_v59  ;;  %v7002_v34 = vsub.f32 %v6972_v13, %v7001_v59 }
0x13fa   :  { %v6954_v36 = vmul.f32 0.5, %v6952_v62 }
0x13fb   :  { %7117 = vmatmul.f32.vlgmr.msra.gmra.mxu2 %v7002_v34  ;;  %v7003_v28 = vand.u32 4294901760, %v7002_v34 }
0x13fc   :  { %v6956_v33 = vmul.f32 %v6954_v36, %v6937_v7 }
0x13fd   :  { %7153 = vmatmul.f32.vlgmr.msra.gmra.mxu3 %v7003_v28  ;;  %v7004_v17 = vsub.f32 %v7002_v34, %v7003_v28  ;;  %v7446_v28 = vld [vmem:[%s9549_s23 + $0x1] ss:$0 sm:$0xff]  ;;  %s7541_s23 = smov [#allocation2]  }
0x13fe   :  { %v6975_v23 = vsel %vm3699_vm14, %v6956_v33, 0  ;;  %s7311_s19 = sshll.u32 %s7541_s23, 4  ;;  %s7312_s19 = int_to_ptr.vmem [resolvable:$true] %s7311_s19 }
0x13ff   :  { %v7005_v42 = vand.u32 4294901760, %v7004_v17  ;;  %v7009_v9 = vand.u32 4294901760, %v6975_v23 }
0x1401   :  { %7006 = vmatmul.f32.vlgmr.msrb.gmra.mxu0 %v7005_v42  ;;  %7079 = vmatmul.f32.gmra.mxu1 %v7009_v9  ;;  %v7010_v58 = vsub.f32 %v6975_v23, %v7009_v9  ;;  %v7447_v23 = vld [vmem:[%s9550_s24 + $0x1] ss:$0 sm:$0xff]  ;;  %s7542_s24 = smov 128  }
0x1403   :  { %7122 = vmatmul.f32.gmra.mxu2 %v7010_v58  ;;  %v7011_v20 = vand.u32 4294901760, %v7010_v58 }
0x1405   :  { %7159 = vmatmul.f32.gmra.mxu3 %v7011_v20  ;;  %v7012_v51 = vsub.f32 %v7010_v58, %v7011_v20 }
0x1407   :  { %v7013_v15 = vand.u32 4294901760, %v7012_v51 }
0x1409   :  { %7014 = vmatmul.f32.gmra.mxu0 %v7013_v15  ;;  %7237 = vmatmul.f32.vlgmr.msra.gmra.mxu1 %v7001_v59 }
0x1411   :  { %7204 = vmatmul.f32.vlgmr.msra.gmra.mxu0 %v7001_v59  ;;  %7241 = vmatmul.f32.gmra.mxu1 %v7009_v9 }
0x1419   :  { %7208 = vmatmul.f32.gmra.mxu0 %v7009_v9 }
0x1476   :  { %v7076_v18 = vpop.f32.mrf.mxu1 }
0x147e   :  { %v7007_v54 = vpop.f32.mrf.mxu0  ;;  %v7080_v3 = vpop.f32.mrf.mxu1 }
0x147f   :  { %v7008_v16 = vadd.f32 %v7445_v5, %v7007_v54  ;;  %v7118_v1 = vpop.f32.mrf.mxu2 }
0x1480   :  { %v7154_v52 = vpop.f32.mrf.mxu3 }
0x1481   :  { %v7077_v56 = vadd.f32 %v7076_v18, %v7008_v16 }
0x1483   :  { %v7119_v41 = vadd.f32 %v7118_v1, %v7077_v56 }
0x1485   :  { %v7155_v53 = vadd.f32 %v7154_v52, %v7119_v41 }
0x1486   :  { %v7015_v26 = vpop.f32.mrf.mxu0  ;;  %v7238_v31 = vpop.f32.mrf.mxu1 }
0x1487   :  { %v7016_v2 = vadd.f32 %v7445_v5, %v7015_v26  ;;  %v7123_v44 = vpop.f32.mrf.mxu2 }
0x1488   :  { %v7160_v8 = vpop.f32.mrf.mxu3 }
0x1489   :  { %v7081_v50 = vadd.f32 %v7080_v3, %v7016_v2 }
0x148b   :  { %v7124_v39 = vadd.f32 %v7123_v44, %v7081_v50 }
0x148d   :  { %v7161_v60 = vadd.f32 %v7160_v8, %v7124_v39 }
0x148e   :  { %v7205_v55 = vpop.f32.mrf.mxu0  ;;  %v7242_v4 = vpop.f32.mrf.mxu1 }
0x148f   :  { %v7206_v48 = vadd.f32 %v7205_v55, %v7155_v53 }
0x1491   :  { %v7239_v22 = vadd.f32 %v7238_v31, %v7206_v48 }
0x1493   :  { %v7245_v29 = vadd.f32 %v7239_v22, %v9379_v49 }
0x1495   :  { %v7251_v19 = vsel %vm462_vm15, %v7245_v29, 0.0 }
0x1496   :  { %v7209_v45 = vpop.f32.mrf.mxu0  ;;  %7252 = vadd.xlane.f32.xlu0 %v7251_v19 }
0x1497   :  { %v7210_v0 = vadd.f32 %v7209_v45, %v7161_v60 }
0x1499   :  { %v7243_v46 = vadd.f32 %v7242_v4, %v7210_v0 }
0x149b   :  { %v7246_v6 = vadd.f32 %v7243_v46, %v9384_v40 }
0x149d   :  { %v7254_v27 = vsel %vm462_vm15, %v7246_v6, 0.0 }
0x149e   :  { %7255 = vadd.xlane.f32.xlu1 %v7254_v27 }
0x1509   :  { %v7253_v14 = vpop.xlane.xlu0 %7252 }
0x150a   :  { %v7257_v35 = vmul.f32 %v7253_v14, %v7977_v43 }
0x150c   :  { %v7259_v57 = vsub.f32 %v7245_v29, %v7257_v35 }
0x150e   :  { %v7261_v63 = vmul.f32 %v7259_v57, %v7259_v57 }
0x1510   :  { %v7263_v49 = vsel %vm462_vm15, %v7261_v63, 0.0 }
0x1511   :  { %7264 = vadd.xlane.f32.xlu2 %v7263_v49  ;;  %v7256_v11 = vpop.xlane.xlu1 %7255 }
0x1512   :  { %v7258_v7 = vmul.f32 %v7256_v11, %v7977_v43 }
0x1514   :  { %v7260_v10 = vsub.f32 %v7246_v6, %v7258_v7 }
0x1516   :  { %v7262_v25 = vmul.f32 %v7260_v10, %v7260_v10 }
0x1518   :  { %v7266_v32 = vsel %vm462_vm15, %v7262_v25, 0.0 }
0x1519   :  { %7267 = vadd.xlane.f32.xlu0 %v7266_v32 }
0x1584   :  { %v7265_v40 = vpop.xlane.xlu2 %7264 }
0x1585   :  { %v7269_v38 = vmul.f32 %v7265_v40, %v7977_v43 }
0x1587   :  { %v7271_v37 = vadd.f32 1e-12, %v7269_v38 }
0x1589   :  { %7506 = vrsqrt.f32 %v7271_v37  ;;  %vm7279_vm13 = vweird.f32 %v7271_v37 }
0x158c   :  { %v7268_v47 = vpop.xlane.xlu0 %7267 }
0x158d   :  { %v7270_v24 = vmul.f32 %v7268_v47, %v7977_v43 }
0x158f   :  { %v7507_v61 = vpop.eup %7506  ;;  %v7272_v30 = vadd.f32 1e-12, %v7270_v24 }
0x1590   :  { %v7274_v12 = vmul.f32 %v7507_v61, %v7271_v37  ;;  %vm7280_vm12 = vweird.f32 %v7507_v61 }
0x1591   :  { %7508 = vrsqrt.f32 %v7272_v30  ;;  %vm7281_vm14 = vmor %vm7279_vm13, %vm7280_vm12  ;;  %vm7289_vm1 = vweird.f32 %v7272_v30 }
0x1592   :  { %v7275_v13 = vmul.f32 %v7507_v61, %v7274_v12 }
0x1594   :  { %v7276_v21 = vmul.f32 0.5, %v7275_v13 }
0x1596   :  { %v7277_v59 = vsub.f32 1.5, %v7276_v21 }
0x1597   :  { %v7509_v62 = vpop.eup %7508 }
0x1598   :  { %v7278_v34 = vmul.f32 %v7507_v61, %v7277_v59  ;;  %v7284_v36 = vmul.f32 %v7509_v62, %v7272_v30  ;;  %vm7290_vm0 = vweird.f32 %v7509_v62 }
0x1599   :  { %vm7291_vm2 = vmor %vm7289_vm1, %vm7290_vm0 }
0x159a   :  { %v7282_v33 = vsel %vm7281_vm14, %v7507_v61, %v7278_v34  ;;  %v7285_v17 = vmul.f32 %v7509_v62, %v7284_v36 }
0x159b   :  { %v7293_v43 = vmul.f32 %v7282_v33, %v7259_v57 }
0x159c   :  { %v7286_v42 = vmul.f32 0.5, %v7285_v17 }
0x159d   :  { %v7298_v9 = vmul.f32 %v7446_v28, %v7293_v43 }
0x159e   :  { %v7287_v58 = vsub.f32 1.5, %v7286_v42 }
0x159f   :  { %v7303_v20 = vadd.f32 %v7447_v23, %v7298_v9 }
0x15a0   :  { %v7288_v51 = vmul.f32 %v7509_v62, %v7287_v58 }
0x15a1   :  { %7305 = vst.msk [vmem:[#allocation2] sm:$0xff] %vm462_vm15, %v7303_v20 }
0x15a2   :  { %v7292_v15 = vsel %vm7291_vm2, %v7509_v62, %v7288_v51 }
0x15a3   :  { %v7294_v18 = vmul.f32 %v7292_v15, %v7260_v10 }
0x15a5   :  { %v7299_v5 = vmul.f32 %v7446_v28, %v7294_v18 }
0x15a7   :  { %v7304_v54 = vadd.f32 %v7447_v23, %v7299_v5 }
0x15a9   :  { %7306 = vst.msk [vmem:[#allocation2 + $0x8] sm:$0xff] %vm462_vm15, %v7304_v54 }
0x15aa   :  { %7319 = dma.vmem_to_hbm [thread:$0]  %s7312_s19, 256, %s7314_s10, [#allocation3], %s7542_s24, %s7542_s24, %s7543_s17  }
0x15ab   :  { %7536 = dma.done.wait [#allocation3], 256  }
0x15ac   :  { %7537 = vsyncadd [#allocation3], 4294967040 }
0x15ad   :  { %7324 = vsyncpa [#allocation3], 1 }

</bundles_post_ra>
